<compile_context>
chip_gen: v7x
topology: tpu7x:2x2x1
jax: 0.10.0
libtpu: 0.0.40
codegen_flags: <defaults>
</compile_context>

<pallas_src>
import jax
import jax.numpy as jnp
from jax.experimental import pallas as pl
from jax.experimental.pallas import tpu as pltpu


N_W = 14   # 13 linear layers, with layer 8's weight split into W8a / W8b
N_B = 13


# ---------------------------------------------------------------------------
# Pallas kernel: whole MLP on one batch tile, all weights resident in VMEM.
# ---------------------------------------------------------------------------
def render_kernel(x_ref, *refs):
    ws = refs[:N_W]                       # 14 bf16 weight refs, each (F_in, F_out)
    bs = refs[N_W:N_W + N_B]              # 13 f32 bias refs,    each (1, F_out)
    out_ref = refs[N_W + N_B]             # (bn, 128) f32: lanes 0..2 rgb, lane 3 sigma

    def lin(h, wi, bi, relu=True):
        # bf16 MXU matmul, f32 accumulate; bias-add / ReLU in f32.
        y = jnp.dot(h.astype(jnp.bfloat16), ws[wi][...],
                    preferred_element_type=jnp.float32) + bs[bi][...]
        return jnp.maximum(y, 0.0) if relu else y

    x = x_ref[...]                        # (bn, 640) bf16, zero-padded lanes 532..639

    # layers_main + layers_main2: 6 x (Linear(..., 256) + ReLU)
    h = x
    for i in range(6):
        h = lin(h, i, i)

    # layers_sigma: Linear(256,128)+ReLU, Linear(128,1) -> result lives in lane 3
    sigma = lin(lin(h, 6, 6), 7, 7, relu=False)           # (bn, 128), only lane 3 nonzero

    # skip connection without concat: relu(h @ W8a + x @ W8b + b8)
    r = (jnp.dot(h.astype(jnp.bfloat16), ws[8][...], preferred_element_type=jnp.float32)
         + jnp.dot(x, ws[9][...], preferred_element_type=jnp.float32)
         + bs[8][...])
    r = jnp.maximum(r, 0.0)

    # layers_rgb tail: 3 x (Linear 256 + ReLU), then Linear(256, 3) padded to 128 cols
    for li in range(9, 12):
        r = lin(r, li + 1, li)
    rgb = lin(r, 13, 12, relu=False)                       # (bn, 128), lanes 0..2 nonzero

    # Padded lanes are exact zeros on both branches, so a single add merges them.
    out_ref[...] = (rgb + sigma).astype(out_ref.dtype)


# ---------------------------------------------------------------------------
# Wrapper
# ---------------------------------------------------------------------------
def _round_up(a, m):
    return (a + m - 1) // m * m


def render_network_embedded(x, params, *, block_n=512):
    """x: (N, D) f32.  params: 13 (W (F_in,F_out), b (F_out,)) f32 pairs."""
    n, d = x.shape
    d_pad = _round_up(d, 128)

    # Batch tile: large enough to fill the MXU; clamp for small batches so a tiny
    # problem runs as a single grid step.
    bn = min(block_n, _round_up(n, 8))
    n_pad = _round_up(n, bn)

    # Pad + cast input once (bf16 is what the MXU consumes anyway; numerically
    # identical to casting at the dot).
    x_p = jnp.pad(x, ((0, n_pad - n), (0, d_pad - d))).astype(jnp.bfloat16)

    ws_in = [w for w, _ in params]
    bs_in = [b for _, b in params]

    # Split the skip-layer weight: rows [:256] multiply h, rows [256:] multiply x.
    w8 = ws_in[8]
    w8a, w8b = w8[:256, :], w8[256:, :]

    # 128-align the contraction dim of the two matmuls that consume the raw input.
    w0 = jnp.pad(ws_in[0], ((0, d_pad - d), (0, 0)))
    w8b = jnp.pad(w8b, ((0, d_pad - d), (0, 0)))

    # Lane-dense heads: sigma weight into column 3 of a (128,128); rgb weight padded
    # to (256,128) (columns 0..2).  Their padded lanes stay exactly zero.
    w7 = jnp.zeros((128, 128), jnp.float32).at[:, 3:4].set(ws_in[7])
    b7 = jnp.zeros((1, 128), jnp.float32).at[0, 3].set(bs_in[7][0])
    w12 = jnp.pad(ws_in[12], ((0, 0), (0, 128 - 3)))
    b12 = jnp.pad(bs_in[12], (0, 128 - 3)).reshape(1, -1)

    ws = ([w0] + list(ws_in[1:7]) + [w7, w8a, w8b] + list(ws_in[9:12]) + [w12])
    ws = [w.astype(jnp.bfloat16) for w in ws]                     # MXU-native weights
    bs = ([b.reshape(1, -1) for b in bs_in[:7]] + [b7]
          + [b.reshape(1, -1) for b in bs_in[8:12]] + [b12])
    bs = [b.astype(jnp.float32) for b in bs]                      # (1, F_out) f32

    in_specs = [pl.BlockSpec((bn, d_pad), lambda i: (i, 0))]
    for w in ws:
        in_specs.append(pl.BlockSpec(w.shape, lambda i: (0, 0)))  # resident in VMEM
    for b in bs:
        in_specs.append(pl.BlockSpec(b.shape, lambda i: (0, 0)))

    out = pl.pallas_call(
        render_kernel,
        out_shape=jax.ShapeDtypeStruct((n_pad, 128), jnp.float32),
        grid_spec=pltpu.PrefetchScalarGridSpec(
            num_scalar_prefetch=0,
            grid=(n_pad // bn,),
            in_specs=in_specs,
            out_specs=pl.BlockSpec((bn, 128), lambda i: (i, 0)),
        ),
        compiler_params=pltpu.CompilerParams(
            dimension_semantics=("parallel",),
            vmem_limit_bytes=32 * 1024 * 1024,   # safe on v7x's 64 MiB physical VMEM
        ),
    )(x_p, *ws, *bs)

    # lanes 0..2 = rgb, lane 3 = sigma  ->  matches torch.concat([rgb, sigma], dim=1)
    return out[:n, :4]


# ---------------------------------------------------------------------------
# Deterministic parameter init (PyTorch nn.Linear default: U(-1/sqrt(fan_in), ..))
# ---------------------------------------------------------------------------
def init_params(key, layer_dims):
    params = []
    for (fi, fo) in layer_dims:
        key, kw, kb = jax.random.split(key, 3)
        bound = 1.0 / (fi ** 0.5)
        w = jax.random.uniform(kw, (fi, fo), jnp.float32, -bound, bound)
        b = jax.random.uniform(kb, (fo,), jnp.float32, -bound, bound)
        params.append((w, b))
    return params


def ref_forward(x, params, *, bf16_weights=True):
    """Reference forward (emulates the kernel's numerics: bf16 matmul operands,
    f32 accumulation, f32 bias/ReLU)."""
    wd = jnp.bfloat16 if bf16_weights else jnp.float32

    def lin(h, i, relu):
        w, b = params[i]
        y = jnp.dot(h.astype(wd), w.astype(wd), preferred_element_type=jnp.float32) + b
        return jnp.maximum(y, 0.0) if relu else y

    h = x
    for i in range(6):
        h = lin(h, i, True)
    sigma = lin(lin(h, 6, True), 7, False)
    r = jnp.concatenate([h, x], axis=1)
    for i in range(8, 12):
        r = lin(r, i, True)
    rgb = lin(r, 12, False)
    return jnp.concatenate([rgb, sigma], axis=1)


if __name__ == "__main__":
    # Module default: input_size = 100*3 = 300 -> total feature dim 300+200+32 = 532
    INPUT_SIZE = 100 * 3
    D = INPUT_SIZE + 200 + 32                 # 532
    N = 64                                    # small batch of ray samples

    layer_dims = [
        (D, 256), (256, 256), (256, 256),        # layers_main
        (256, 256), (256, 256), (256, 256),      # layers_main2
        (256, 128), (128, 1),                    # layers_sigma
        (256 + D, 256), (256, 256), (256, 256),  # layers_rgb
        (256, 256), (256, 3),
    ]

    key = jax.random.PRNGKey(0)
    kp, kx = jax.random.split(key)
    params = init_params(kp, layer_dims)
    x = jax.random.normal(kx, (N, D), dtype=jnp.float32)

    out = render_network_embedded(x, params)        # N=64 -> single grid step
    out = jax.block_until_ready(out)

    # Check against a reference using the same bf16-weight / f32-accumulate numerics.
    ref = ref_forward(x, params, bf16_weights=True)
    assert out.shape == (N, 4), out.shape
    assert jnp.allclose(out, ref, rtol=1e-2, atol=1e-2), (
        float(jnp.max(jnp.abs(out - ref)))
    )

    print("KERNEL_OK")
</pallas_src>

<mosaic_0001>
module attributes {stable_mosaic.version = 11 : i64} {
  func.func @render_kernel(%arg0: i32, %arg1: memref<64x640xbf16, #tpu.memory_space<vmem>>, %arg2: memref<640x256xbf16, #tpu.memory_space<vmem>>, %arg3: memref<256x256xbf16, #tpu.memory_space<vmem>>, %arg4: memref<256x256xbf16, #tpu.memory_space<vmem>>, %arg5: memref<256x256xbf16, #tpu.memory_space<vmem>>, %arg6: memref<256x256xbf16, #tpu.memory_space<vmem>>, %arg7: memref<256x256xbf16, #tpu.memory_space<vmem>>, %arg8: memref<256x128xbf16, #tpu.memory_space<vmem>>, %arg9: memref<128x128xbf16, #tpu.memory_space<vmem>>, %arg10: memref<256x256xbf16, #tpu.memory_space<vmem>>, %arg11: memref<640x256xbf16, #tpu.memory_space<vmem>>, %arg12: memref<256x256xbf16, #tpu.memory_space<vmem>>, %arg13: memref<256x256xbf16, #tpu.memory_space<vmem>>, %arg14: memref<256x256xbf16, #tpu.memory_space<vmem>>, %arg15: memref<256x128xbf16, #tpu.memory_space<vmem>>, %arg16: memref<1x256xf32, #tpu.memory_space<vmem>>, %arg17: memref<1x256xf32, #tpu.memory_space<vmem>>, %arg18: memref<1x256xf32, #tpu.memory_space<vmem>>, %arg19: memref<1x256xf32, #tpu.memory_space<vmem>>, %arg20: memref<1x256xf32, #tpu.memory_space<vmem>>, %arg21: memref<1x256xf32, #tpu.memory_space<vmem>>, %arg22: memref<1x128xf32, #tpu.memory_space<vmem>>, %arg23: memref<1x128xf32, #tpu.memory_space<vmem>>, %arg24: memref<1x256xf32, #tpu.memory_space<vmem>>, %arg25: memref<1x256xf32, #tpu.memory_space<vmem>>, %arg26: memref<1x256xf32, #tpu.memory_space<vmem>>, %arg27: memref<1x256xf32, #tpu.memory_space<vmem>>, %arg28: memref<1x128xf32, #tpu.memory_space<vmem>>, %arg29: memref<64x128xf32, #tpu.memory_space<vmem>>) attributes {dimension_semantics = [#tpu.dimension_semantics<parallel>], iteration_bounds = array<i64: 1>, scalar_prefetch = 0 : i64, scratch_operands = 0 : i64, tpu.core_type = #tpu.core_type<tc>, window_params = [{transform_indices = @transform_0, window_bounds = array<i64: 64, 640>}, {pipeline_mode = #tpu.pipeline_mode<synchronous>, transform_indices = @transform_1, window_bounds = array<i64: 640, 256>}, {pipeline_mode = #tpu.pipeline_mode<synchronous>, transform_indices = @transform_2, window_bounds = array<i64: 256, 256>}, {pipeline_mode = #tpu.pipeline_mode<synchronous>, transform_indices = @transform_3, window_bounds = array<i64: 256, 256>}, {pipeline_mode = #tpu.pipeline_mode<synchronous>, transform_indices = @transform_4, window_bounds = array<i64: 256, 256>}, {pipeline_mode = #tpu.pipeline_mode<synchronous>, transform_indices = @transform_5, window_bounds = array<i64: 256, 256>}, {pipeline_mode = #tpu.pipeline_mode<synchronous>, transform_indices = @transform_6, window_bounds = array<i64: 256, 256>}, {pipeline_mode = #tpu.pipeline_mode<synchronous>, transform_indices = @transform_7, window_bounds = array<i64: 256, 128>}, {pipeline_mode = #tpu.pipeline_mode<synchronous>, transform_indices = @transform_8, window_bounds = array<i64: 128, 128>}, {pipeline_mode = #tpu.pipeline_mode<synchronous>, transform_indices = @transform_9, window_bounds = array<i64: 256, 256>}, {pipeline_mode = #tpu.pipeline_mode<synchronous>, transform_indices = @transform_10, window_bounds = array<i64: 640, 256>}, {pipeline_mode = #tpu.pipeline_mode<synchronous>, transform_indices = @transform_11, window_bounds = array<i64: 256, 256>}, {pipeline_mode = #tpu.pipeline_mode<synchronous>, transform_indices = @transform_12, window_bounds = array<i64: 256, 256>}, {pipeline_mode = #tpu.pipeline_mode<synchronous>, transform_indices = @transform_13, window_bounds = array<i64: 256, 256>}, {pipeline_mode = #tpu.pipeline_mode<synchronous>, transform_indices = @transform_14, window_bounds = array<i64: 256, 128>}, {pipeline_mode = #tpu.pipeline_mode<synchronous>, transform_indices = @transform_15, window_bounds = array<i64: 1, 256>}, {pipeline_mode = #tpu.pipeline_mode<synchronous>, transform_indices = @transform_16, window_bounds = array<i64: 1, 256>}, {pipeline_mode = #tpu.pipeline_mode<synchronous>, transform_indices = @transform_17, window_bounds = array<i64: 1, 256>}, {pipeline_mode = #tpu.pipeline_mode<synchronous>, transform_indices = @transform_18, window_bounds = array<i64: 1, 256>}, {pipeline_mode = #tpu.pipeline_mode<synchronous>, transform_indices = @transform_19, window_bounds = array<i64: 1, 256>}, {pipeline_mode = #tpu.pipeline_mode<synchronous>, transform_indices = @transform_20, window_bounds = array<i64: 1, 256>}, {pipeline_mode = #tpu.pipeline_mode<synchronous>, transform_indices = @transform_21, window_bounds = array<i64: 1, 128>}, {pipeline_mode = #tpu.pipeline_mode<synchronous>, transform_indices = @transform_22, window_bounds = array<i64: 1, 128>}, {pipeline_mode = #tpu.pipeline_mode<synchronous>, transform_indices = @transform_23, window_bounds = array<i64: 1, 256>}, {pipeline_mode = #tpu.pipeline_mode<synchronous>, transform_indices = @transform_24, window_bounds = array<i64: 1, 256>}, {pipeline_mode = #tpu.pipeline_mode<synchronous>, transform_indices = @transform_25, window_bounds = array<i64: 1, 256>}, {pipeline_mode = #tpu.pipeline_mode<synchronous>, transform_indices = @transform_26, window_bounds = array<i64: 1, 256>}, {pipeline_mode = #tpu.pipeline_mode<synchronous>, transform_indices = @transform_27, window_bounds = array<i64: 1, 128>}, {transform_indices = @transform_28, window_bounds = array<i64: 64, 128>}]} {
    %c0 = arith.constant 0 : index
    %c0_0 = arith.constant 0 : index
    %0 = vector.load %arg1[%c0, %c0_0] : memref<64x640xbf16, #tpu.memory_space<vmem>>, vector<64x640xbf16>
    %c0_1 = arith.constant 0 : index
    %c0_2 = arith.constant 0 : index
    %1 = vector.load %arg2[%c0_1, %c0_2] : memref<640x256xbf16, #tpu.memory_space<vmem>>, vector<640x256xbf16>
    %cst = arith.constant dense<0.000000e+00> : vector<64x256xf32>
    %2 = tpu.matmul %0, %1, %cst {dimension_numbers = #tpu.dot_dimension_numbers<[1], [0], [0], [1], [0, 0, 1, 1], [], []>} : vector<64x640xbf16>, vector<640x256xbf16>, vector<64x256xf32> -> vector<64x256xf32>
    %c0_3 = arith.constant 0 : index
    %c0_4 = arith.constant 0 : index
    %3 = vector.load %arg16[%c0_3, %c0_4] : memref<1x256xf32, #tpu.memory_space<vmem>>, vector<1x256xf32>
    %4 = vector.broadcast %3 : vector<1x256xf32> to vector<64x256xf32>
    %5 = arith.addf %2, %4 : vector<64x256xf32>
    %cst_5 = arith.constant 0.000000e+00 : f32
    %6 = vector.broadcast %cst_5 : f32 to vector<64x256xf32>
    %7 = arith.maximumf %5, %6 : vector<64x256xf32>
    %8 = arith.truncf %7 : vector<64x256xf32> to vector<64x256xbf16>
    %c0_6 = arith.constant 0 : index
    %c0_7 = arith.constant 0 : index
    %9 = vector.load %arg3[%c0_6, %c0_7] : memref<256x256xbf16, #tpu.memory_space<vmem>>, vector<256x256xbf16>
    %cst_8 = arith.constant dense<0.000000e+00> : vector<64x256xf32>
    %10 = tpu.matmul %8, %9, %cst_8 {dimension_numbers = #tpu.dot_dimension_numbers<[1], [0], [0], [1], [0, 0, 1, 1], [], []>} : vector<64x256xbf16>, vector<256x256xbf16>, vector<64x256xf32> -> vector<64x256xf32>
    %c0_9 = arith.constant 0 : index
    %c0_10 = arith.constant 0 : index
    %11 = vector.load %arg17[%c0_9, %c0_10] : memref<1x256xf32, #tpu.memory_space<vmem>>, vector<1x256xf32>
    %12 = vector.broadcast %11 : vector<1x256xf32> to vector<64x256xf32>
    %13 = arith.addf %10, %12 : vector<64x256xf32>
    %cst_11 = arith.constant 0.000000e+00 : f32
    %14 = vector.broadcast %cst_11 : f32 to vector<64x256xf32>
    %15 = arith.maximumf %13, %14 : vector<64x256xf32>
    %16 = arith.truncf %15 : vector<64x256xf32> to vector<64x256xbf16>
    %c0_12 = arith.constant 0 : index
    %c0_13 = arith.constant 0 : index
    %17 = vector.load %arg4[%c0_12, %c0_13] : memref<256x256xbf16, #tpu.memory_space<vmem>>, vector<256x256xbf16>
    %cst_14 = arith.constant dense<0.000000e+00> : vector<64x256xf32>
    %18 = tpu.matmul %16, %17, %cst_14 {dimension_numbers = #tpu.dot_dimension_numbers<[1], [0], [0], [1], [0, 0, 1, 1], [], []>} : vector<64x256xbf16>, vector<256x256xbf16>, vector<64x256xf32> -> vector<64x256xf32>
    %c0_15 = arith.constant 0 : index
    %c0_16 = arith.constant 0 : index
    %19 = vector.load %arg18[%c0_15, %c0_16] : memref<1x256xf32, #tpu.memory_space<vmem>>, vector<1x256xf32>
    %20 = vector.broadcast %19 : vector<1x256xf32> to vector<64x256xf32>
    %21 = arith.addf %18, %20 : vector<64x256xf32>
    %cst_17 = arith.constant 0.000000e+00 : f32
    %22 = vector.broadcast %cst_17 : f32 to vector<64x256xf32>
    %23 = arith.maximumf %21, %22 : vector<64x256xf32>
    %24 = arith.truncf %23 : vector<64x256xf32> to vector<64x256xbf16>
    %c0_18 = arith.constant 0 : index
    %c0_19 = arith.constant 0 : index
    %25 = vector.load %arg5[%c0_18, %c0_19] : memref<256x256xbf16, #tpu.memory_space<vmem>>, vector<256x256xbf16>
    %cst_20 = arith.constant dense<0.000000e+00> : vector<64x256xf32>
    %26 = tpu.matmul %24, %25, %cst_20 {dimension_numbers = #tpu.dot_dimension_numbers<[1], [0], [0], [1], [0, 0, 1, 1], [], []>} : vector<64x256xbf16>, vector<256x256xbf16>, vector<64x256xf32> -> vector<64x256xf32>
    %c0_21 = arith.constant 0 : index
    %c0_22 = arith.constant 0 : index
    %27 = vector.load %arg19[%c0_21, %c0_22] : memref<1x256xf32, #tpu.memory_space<vmem>>, vector<1x256xf32>
    %28 = vector.broadcast %27 : vector<1x256xf32> to vector<64x256xf32>
    %29 = arith.addf %26, %28 : vector<64x256xf32>
    %cst_23 = arith.constant 0.000000e+00 : f32
    %30 = vector.broadcast %cst_23 : f32 to vector<64x256xf32>
    %31 = arith.maximumf %29, %30 : vector<64x256xf32>
    %32 = arith.truncf %31 : vector<64x256xf32> to vector<64x256xbf16>
    %c0_24 = arith.constant 0 : index
    %c0_25 = arith.constant 0 : index
    %33 = vector.load %arg6[%c0_24, %c0_25] : memref<256x256xbf16, #tpu.memory_space<vmem>>, vector<256x256xbf16>
    %cst_26 = arith.constant dense<0.000000e+00> : vector<64x256xf32>
    %34 = tpu.matmul %32, %33, %cst_26 {dimension_numbers = #tpu.dot_dimension_numbers<[1], [0], [0], [1], [0, 0, 1, 1], [], []>} : vector<64x256xbf16>, vector<256x256xbf16>, vector<64x256xf32> -> vector<64x256xf32>
    %c0_27 = arith.constant 0 : index
    %c0_28 = arith.constant 0 : index
    %35 = vector.load %arg20[%c0_27, %c0_28] : memref<1x256xf32, #tpu.memory_space<vmem>>, vector<1x256xf32>
    %36 = vector.broadcast %35 : vector<1x256xf32> to vector<64x256xf32>
    %37 = arith.addf %34, %36 : vector<64x256xf32>
    %cst_29 = arith.constant 0.000000e+00 : f32
    %38 = vector.broadcast %cst_29 : f32 to vector<64x256xf32>
    %39 = arith.maximumf %37, %38 : vector<64x256xf32>
    %40 = arith.truncf %39 : vector<64x256xf32> to vector<64x256xbf16>
    %c0_30 = arith.constant 0 : index
    %c0_31 = arith.constant 0 : index
    %41 = vector.load %arg7[%c0_30, %c0_31] : memref<256x256xbf16, #tpu.memory_space<vmem>>, vector<256x256xbf16>
    %cst_32 = arith.constant dense<0.000000e+00> : vector<64x256xf32>
    %42 = tpu.matmul %40, %41, %cst_32 {dimension_numbers = #tpu.dot_dimension_numbers<[1], [0], [0], [1], [0, 0, 1, 1], [], []>} : vector<64x256xbf16>, vector<256x256xbf16>, vector<64x256xf32> -> vector<64x256xf32>
    %c0_33 = arith.constant 0 : index
    %c0_34 = arith.constant 0 : index
    %43 = vector.load %arg21[%c0_33, %c0_34] : memref<1x256xf32, #tpu.memory_space<vmem>>, vector<1x256xf32>
    %44 = vector.broadcast %43 : vector<1x256xf32> to vector<64x256xf32>
    %45 = arith.addf %42, %44 : vector<64x256xf32>
    %cst_35 = arith.constant 0.000000e+00 : f32
    %46 = vector.broadcast %cst_35 : f32 to vector<64x256xf32>
    %47 = arith.maximumf %45, %46 : vector<64x256xf32>
    %48 = arith.truncf %47 : vector<64x256xf32> to vector<64x256xbf16>
    %c0_36 = arith.constant 0 : index
    %c0_37 = arith.constant 0 : index
    %49 = vector.load %arg8[%c0_36, %c0_37] : memref<256x128xbf16, #tpu.memory_space<vmem>>, vector<256x128xbf16>
    %cst_38 = arith.constant dense<0.000000e+00> : vector<64x128xf32>
    %50 = tpu.matmul %48, %49, %cst_38 {dimension_numbers = #tpu.dot_dimension_numbers<[1], [0], [0], [1], [0, 0, 1, 1], [], []>} : vector<64x256xbf16>, vector<256x128xbf16>, vector<64x128xf32> -> vector<64x128xf32>
    %c0_39 = arith.constant 0 : index
    %c0_40 = arith.constant 0 : index
    %51 = vector.load %arg22[%c0_39, %c0_40] : memref<1x128xf32, #tpu.memory_space<vmem>>, vector<1x128xf32>
    %52 = vector.broadcast %51 : vector<1x128xf32> to vector<64x128xf32>
    %53 = arith.addf %50, %52 : vector<64x128xf32>
    %cst_41 = arith.constant 0.000000e+00 : f32
    %54 = vector.broadcast %cst_41 : f32 to vector<64x128xf32>
    %55 = arith.maximumf %53, %54 : vector<64x128xf32>
    %56 = arith.truncf %55 : vector<64x128xf32> to vector<64x128xbf16>
    %c0_42 = arith.constant 0 : index
    %c0_43 = arith.constant 0 : index
    %57 = vector.load %arg9[%c0_42, %c0_43] : memref<128x128xbf16, #tpu.memory_space<vmem>>, vector<128x128xbf16>
    %cst_44 = arith.constant dense<0.000000e+00> : vector<64x128xf32>
    %58 = tpu.matmul %56, %57, %cst_44 {dimension_numbers = #tpu.dot_dimension_numbers<[1], [0], [0], [1], [0, 0, 1, 1], [], []>} : vector<64x128xbf16>, vector<128x128xbf16>, vector<64x128xf32> -> vector<64x128xf32>
    %c0_45 = arith.constant 0 : index
    %c0_46 = arith.constant 0 : index
    %59 = vector.load %arg23[%c0_45, %c0_46] : memref<1x128xf32, #tpu.memory_space<vmem>>, vector<1x128xf32>
    %60 = vector.broadcast %59 : vector<1x128xf32> to vector<64x128xf32>
    %61 = arith.addf %58, %60 : vector<64x128xf32>
    %62 = arith.truncf %47 : vector<64x256xf32> to vector<64x256xbf16>
    %c0_47 = arith.constant 0 : index
    %c0_48 = arith.constant 0 : index
    %63 = vector.load %arg10[%c0_47, %c0_48] : memref<256x256xbf16, #tpu.memory_space<vmem>>, vector<256x256xbf16>
    %cst_49 = arith.constant dense<0.000000e+00> : vector<64x256xf32>
    %64 = tpu.matmul %62, %63, %cst_49 {dimension_numbers = #tpu.dot_dimension_numbers<[1], [0], [0], [1], [0, 0, 1, 1], [], []>} : vector<64x256xbf16>, vector<256x256xbf16>, vector<64x256xf32> -> vector<64x256xf32>
    %c0_50 = arith.constant 0 : index
    %c0_51 = arith.constant 0 : index
    %65 = vector.load %arg11[%c0_50, %c0_51] : memref<640x256xbf16, #tpu.memory_space<vmem>>, vector<640x256xbf16>
    %cst_52 = arith.constant dense<0.000000e+00> : vector<64x256xf32>
    %66 = tpu.matmul %0, %65, %cst_52 {dimension_numbers = #tpu.dot_dimension_numbers<[1], [0], [0], [1], [0, 0, 1, 1], [], []>} : vector<64x640xbf16>, vector<640x256xbf16>, vector<64x256xf32> -> vector<64x256xf32>
    %67 = arith.addf %64, %66 : vector<64x256xf32>
    %c0_53 = arith.constant 0 : index
    %c0_54 = arith.constant 0 : index
    %68 = vector.load %arg24[%c0_53, %c0_54] : memref<1x256xf32, #tpu.memory_space<vmem>>, vector<1x256xf32>
    %69 = vector.broadcast %68 : vector<1x256xf32> to vector<64x256xf32>
    %70 = arith.addf %67, %69 : vector<64x256xf32>
    %cst_55 = arith.constant 0.000000e+00 : f32
    %71 = vector.broadcast %cst_55 : f32 to vector<64x256xf32>
    %72 = arith.maximumf %70, %71 : vector<64x256xf32>
    %73 = arith.truncf %72 : vector<64x256xf32> to vector<64x256xbf16>
    %c0_56 = arith.constant 0 : index
    %c0_57 = arith.constant 0 : index
    %74 = vector.load %arg12[%c0_56, %c0_57] : memref<256x256xbf16, #tpu.memory_space<vmem>>, vector<256x256xbf16>
    %cst_58 = arith.constant dense<0.000000e+00> : vector<64x256xf32>
    %75 = tpu.matmul %73, %74, %cst_58 {dimension_numbers = #tpu.dot_dimension_numbers<[1], [0], [0], [1], [0, 0, 1, 1], [], []>} : vector<64x256xbf16>, vector<256x256xbf16>, vector<64x256xf32> -> vector<64x256xf32>
    %c0_59 = arith.constant 0 : index
    %c0_60 = arith.constant 0 : index
    %76 = vector.load %arg25[%c0_59, %c0_60] : memref<1x256xf32, #tpu.memory_space<vmem>>, vector<1x256xf32>
    %77 = vector.broadcast %76 : vector<1x256xf32> to vector<64x256xf32>
    %78 = arith.addf %75, %77 : vector<64x256xf32>
    %cst_61 = arith.constant 0.000000e+00 : f32
    %79 = vector.broadcast %cst_61 : f32 to vector<64x256xf32>
    %80 = arith.maximumf %78, %79 : vector<64x256xf32>
    %81 = arith.truncf %80 : vector<64x256xf32> to vector<64x256xbf16>
    %c0_62 = arith.constant 0 : index
    %c0_63 = arith.constant 0 : index
    %82 = vector.load %arg13[%c0_62, %c0_63] : memref<256x256xbf16, #tpu.memory_space<vmem>>, vector<256x256xbf16>
    %cst_64 = arith.constant dense<0.000000e+00> : vector<64x256xf32>
    %83 = tpu.matmul %81, %82, %cst_64 {dimension_numbers = #tpu.dot_dimension_numbers<[1], [0], [0], [1], [0, 0, 1, 1], [], []>} : vector<64x256xbf16>, vector<256x256xbf16>, vector<64x256xf32> -> vector<64x256xf32>
    %c0_65 = arith.constant 0 : index
    %c0_66 = arith.constant 0 : index
    %84 = vector.load %arg26[%c0_65, %c0_66] : memref<1x256xf32, #tpu.memory_space<vmem>>, vector<1x256xf32>
    %85 = vector.broadcast %84 : vector<1x256xf32> to vector<64x256xf32>
    %86 = arith.addf %83, %85 : vector<64x256xf32>
    %cst_67 = arith.constant 0.000000e+00 : f32
    %87 = vector.broadcast %cst_67 : f32 to vector<64x256xf32>
    %88 = arith.maximumf %86, %87 : vector<64x256xf32>
    %89 = arith.truncf %88 : vector<64x256xf32> to vector<64x256xbf16>
    %c0_68 = arith.constant 0 : index
    %c0_69 = arith.constant 0 : index
    %90 = vector.load %arg14[%c0_68, %c0_69] : memref<256x256xbf16, #tpu.memory_space<vmem>>, vector<256x256xbf16>
    %cst_70 = arith.constant dense<0.000000e+00> : vector<64x256xf32>
    %91 = tpu.matmul %89, %90, %cst_70 {dimension_numbers = #tpu.dot_dimension_numbers<[1], [0], [0], [1], [0, 0, 1, 1], [], []>} : vector<64x256xbf16>, vector<256x256xbf16>, vector<64x256xf32> -> vector<64x256xf32>
    %c0_71 = arith.constant 0 : index
    %c0_72 = arith.constant 0 : index
    %92 = vector.load %arg27[%c0_71, %c0_72] : memref<1x256xf32, #tpu.memory_space<vmem>>, vector<1x256xf32>
    %93 = vector.broadcast %92 : vector<1x256xf32> to vector<64x256xf32>
    %94 = arith.addf %91, %93 : vector<64x256xf32>
    %cst_73 = arith.constant 0.000000e+00 : f32
    %95 = vector.broadcast %cst_73 : f32 to vector<64x256xf32>
    %96 = arith.maximumf %94, %95 : vector<64x256xf32>
    %97 = arith.truncf %96 : vector<64x256xf32> to vector<64x256xbf16>
    %c0_74 = arith.constant 0 : index
    %c0_75 = arith.constant 0 : index
    %98 = vector.load %arg15[%c0_74, %c0_75] : memref<256x128xbf16, #tpu.memory_space<vmem>>, vector<256x128xbf16>
    %cst_76 = arith.constant dense<0.000000e+00> : vector<64x128xf32>
    %99 = tpu.matmul %97, %98, %cst_76 {dimension_numbers = #tpu.dot_dimension_numbers<[1], [0], [0], [1], [0, 0, 1, 1], [], []>} : vector<64x256xbf16>, vector<256x128xbf16>, vector<64x128xf32> -> vector<64x128xf32>
    %c0_77 = arith.constant 0 : index
    %c0_78 = arith.constant 0 : index
    %100 = vector.load %arg28[%c0_77, %c0_78] : memref<1x128xf32, #tpu.memory_space<vmem>>, vector<1x128xf32>
    %101 = vector.broadcast %100 : vector<1x128xf32> to vector<64x128xf32>
    %102 = arith.addf %99, %101 : vector<64x128xf32>
    %103 = arith.addf %102, %61 : vector<64x128xf32>
    %c0_79 = arith.constant 0 : index
    %c0_80 = arith.constant 0 : index
    %104 = vector.load %arg29[%c0_79, %c0_80] : memref<64x128xf32, #tpu.memory_space<vmem>>, vector<64x128xf32>
    tpu.vector_store %arg29[%c0_79, %c0_80], %103 {strides = array<i32>} : memref<64x128xf32, #tpu.memory_space<vmem>>, vector<64x128xf32>,
    return
  }
  func.func @transform_0(%arg0: i32) -> (i32, i32) {
    %c0_i32 = arith.constant 0 : i32
    %c0_i32_0 = arith.constant 0 : i32
    return %arg0, %c0_i32 : i32, i32
  }
  func.func @transform_1(%arg0: i32) -> (i32, i32) {
    %c0_i32 = arith.constant 0 : i32
    %c0_i32_0 = arith.constant 0 : i32
    %c0_i32_1 = arith.constant 0 : i32
    return %c0_i32, %c0_i32_0 : i32, i32
  }
  func.func @transform_2(%arg0: i32) -> (i32, i32) {
    %c0_i32 = arith.constant 0 : i32
    %c0_i32_0 = arith.constant 0 : i32
    %c0_i32_1 = arith.constant 0 : i32
    return %c0_i32, %c0_i32_0 : i32, i32
  }
  func.func @transform_3(%arg0: i32) -> (i32, i32) {
    %c0_i32 = arith.constant 0 : i32
    %c0_i32_0 = arith.constant 0 : i32
    %c0_i32_1 = arith.constant 0 : i32
    return %c0_i32, %c0_i32_0 : i32, i32
  }
  func.func @transform_4(%arg0: i32) -> (i32, i32) {
    %c0_i32 = arith.constant 0 : i32
    %c0_i32_0 = arith.constant 0 : i32
    %c0_i32_1 = arith.constant 0 : i32
    return %c0_i32, %c0_i32_0 : i32, i32
  }
  func.func @transform_5(%arg0: i32) -> (i32, i32) {
    %c0_i32 = arith.constant 0 : i32
    %c0_i32_0 = arith.constant 0 : i32
    %c0_i32_1 = arith.constant 0 : i32
    return %c0_i32, %c0_i32_0 : i32, i32
  }
  func.func @transform_6(%arg0: i32) -> (i32, i32) {
    %c0_i32 = arith.constant 0 : i32
    %c0_i32_0 = arith.constant 0 : i32
    %c0_i32_1 = arith.constant 0 : i32
    return %c0_i32, %c0_i32_0 : i32, i32
  }
  func.func @transform_7(%arg0: i32) -> (i32, i32) {
    %c0_i32 = arith.constant 0 : i32
    %c0_i32_0 = arith.constant 0 : i32
    %c0_i32_1 = arith.constant 0 : i32
    return %c0_i32, %c0_i32_0 : i32, i32
  }
  func.func @transform_8(%arg0: i32) -> (i32, i32) {
    %c0_i32 = arith.constant 0 : i32
    %c0_i32_0 = arith.constant 0 : i32
    %c0_i32_1 = arith.constant 0 : i32
    return %c0_i32, %c0_i32_0 : i32, i32
  }
  func.func @transform_9(%arg0: i32) -> (i32, i32) {
    %c0_i32 = arith.constant 0 : i32
    %c0_i32_0 = arith.constant 0 : i32
    %c0_i32_1 = arith.constant 0 : i32
    return %c0_i32, %c0_i32_0 : i32, i32
  }
  func.func @transform_10(%arg0: i32) -> (i32, i32) {
    %c0_i32 = arith.constant 0 : i32
    %c0_i32_0 = arith.constant 0 : i32
    %c0_i32_1 = arith.constant 0 : i32
    return %c0_i32, %c0_i32_0 : i32, i32
  }
  func.func @transform_11(%arg0: i32) -> (i32, i32) {
    %c0_i32 = arith.constant 0 : i32
    %c0_i32_0 = arith.constant 0 : i32
    %c0_i32_1 = arith.constant 0 : i32
    return %c0_i32, %c0_i32_0 : i32, i32
  }
  func.func @transform_12(%arg0: i32) -> (i32, i32) {
    %c0_i32 = arith.constant 0 : i32
    %c0_i32_0 = arith.constant 0 : i32
    %c0_i32_1 = arith.constant 0 : i32
    return %c0_i32, %c0_i32_0 : i32, i32
  }
  func.func @transform_13(%arg0: i32) -> (i32, i32) {
    %c0_i32 = arith.constant 0 : i32
    %c0_i32_0 = arith.constant 0 : i32
    %c0_i32_1 = arith.constant 0 : i32
    return %c0_i32, %c0_i32_0 : i32, i32
  }
  func.func @transform_14(%arg0: i32) -> (i32, i32) {
    %c0_i32 = arith.constant 0 : i32
    %c0_i32_0 = arith.constant 0 : i32
    %c0_i32_1 = arith.constant 0 : i32
    return %c0_i32, %c0_i32_0 : i32, i32
  }
  func.func @transform_15(%arg0: i32) -> (i32, i32) {
    %c0_i32 = arith.constant 0 : i32
    %c0_i32_0 = arith.constant 0 : i32
    %c0_i32_1 = arith.constant 0 : i32
    return %c0_i32, %c0_i32_0 : i32, i32
  }
  func.func @transform_16(%arg0: i32) -> (i32, i32) {
    %c0_i32 = arith.constant 0 : i32
    %c0_i32_0 = arith.constant 0 : i32
    %c0_i32_1 = arith.constant 0 : i32
    return %c0_i32, %c0_i32_0 : i32, i32
  }
  func.func @transform_17(%arg0: i32) -> (i32, i32) {
    %c0_i32 = arith.constant 0 : i32
    %c0_i32_0 = arith.constant 0 : i32
    %c0_i32_1 = arith.constant 0 : i32
    return %c0_i32, %c0_i32_0 : i32, i32
  }
  func.func @transform_18(%arg0: i32) -> (i32, i32) {
    %c0_i32 = arith.constant 0 : i32
    %c0_i32_0 = arith.constant 0 : i32
    %c0_i32_1 = arith.constant 0 : i32
    return %c0_i32, %c0_i32_0 : i32, i32
  }
  func.func @transform_19(%arg0: i32) -> (i32, i32) {
    %c0_i32 = arith.constant 0 : i32
    %c0_i32_0 = arith.constant 0 : i32
    %c0_i32_1 = arith.constant 0 : i32
    return %c0_i32, %c0_i32_0 : i32, i32
  }
  func.func @transform_20(%arg0: i32) -> (i32, i32) {
    %c0_i32 = arith.constant 0 : i32
    %c0_i32_0 = arith.constant 0 : i32
    %c0_i32_1 = arith.constant 0 : i32
    return %c0_i32, %c0_i32_0 : i32, i32
  }
  func.func @transform_21(%arg0: i32) -> (i32, i32) {
    %c0_i32 = arith.constant 0 : i32
    %c0_i32_0 = arith.constant 0 : i32
    %c0_i32_1 = arith.constant 0 : i32
    return %c0_i32, %c0_i32_0 : i32, i32
  }
  func.func @transform_22(%arg0: i32) -> (i32, i32) {
    %c0_i32 = arith.constant 0 : i32
    %c0_i32_0 = arith.constant 0 : i32
    %c0_i32_1 = arith.constant 0 : i32
    return %c0_i32, %c0_i32_0 : i32, i32
  }
  func.func @transform_23(%arg0: i32) -> (i32, i32) {
    %c0_i32 = arith.constant 0 : i32
    %c0_i32_0 = arith.constant 0 : i32
    %c0_i32_1 = arith.constant 0 : i32
    return %c0_i32, %c0_i32_0 : i32, i32
  }
  func.func @transform_24(%arg0: i32) -> (i32, i32) {
    %c0_i32 = arith.constant 0 : i32
    %c0_i32_0 = arith.constant 0 : i32
    %c0_i32_1 = arith.constant 0 : i32
    return %c0_i32, %c0_i32_0 : i32, i32
  }
  func.func @transform_25(%arg0: i32) -> (i32, i32) {
    %c0_i32 = arith.constant 0 : i32
    %c0_i32_0 = arith.constant 0 : i32
    %c0_i32_1 = arith.constant 0 : i32
    return %c0_i32, %c0_i32_0 : i32, i32
  }
  func.func @transform_26(%arg0: i32) -> (i32, i32) {
    %c0_i32 = arith.constant 0 : i32
    %c0_i32_0 = arith.constant 0 : i32
    %c0_i32_1 = arith.constant 0 : i32
    return %c0_i32, %c0_i32_0 : i32, i32
  }
  func.func @transform_27(%arg0: i32) -> (i32, i32) {
    %c0_i32 = arith.constant 0 : i32
    %c0_i32_0 = arith.constant 0 : i32
    %c0_i32_1 = arith.constant 0 : i32
    return %c0_i32, %c0_i32_0 : i32, i32
  }
  func.func @transform_28(%arg0: i32) -> (i32, i32) {
    %c0_i32 = arith.constant 0 : i32
    %c0_i32_0 = arith.constant 0 : i32
    return %arg0, %c0_i32 : i32, i32
  }
}

</mosaic_0001>

<bundles_post_ra>
// kernel: tpu_custom_call.1
= control target key start
LH: loop header
LB: loop body
LE: loop exit
PB: predicated region body
PF: predicated region fallthrough
CT: control target
= control target key end

     0   :  { %s7774_s0 = inlined_call_operand.hbm [shape: bf16[64,640], index: 0, kind: input, shape index: {}]   ;;  %s7775_s1 = inlined_call_operand.hbm [shape: bf16[640,256], index: 1, kind: input, shape index: {}]   ;;  %s7776_s2 = inlined_call_operand.hbm [shape: bf16[256,256], index: 2, kind: input, shape index: {}]   ;;  %s7777_s3 = inlined_call_operand.hbm [shape: bf16[256,256], index: 3, kind: input, shape index: {}]   ;;  %s7778_s4 = inlined_call_operand.hbm [shape: bf16[256,256], index: 4, kind: input, shape index: {}]   ;;  %s7779_s5 = inlined_call_operand.hbm [shape: bf16[256,256], index: 5, kind: input, shape index: {}]   ;;  %s7780_s6 = inlined_call_operand.hbm [shape: bf16[256,256], index: 6, kind: input, shape index: {}]   ;;  %s7781_s7 = inlined_call_operand.hbm [shape: bf16[256,128], index: 7, kind: input, shape index: {}]   ;;  %s7782_s8 = inlined_call_operand.hbm [shape: bf16[128,128], index: 8, kind: input, shape index: {}]   ;;  %s7783_s9 = inlined_call_operand.hbm [shape: bf16[256,256], index: 9, kind: input, shape index: {}]   ;;  %s7784_s10 = inlined_call_operand.hbm [shape: bf16[640,256], index: 10, kind: input, shape index: {}]   ;;  %s7785_s11 = inlined_call_operand.hbm [shape: bf16[256,256], index: 11, kind: input, shape index: {}]   ;;  %s7786_s12 = inlined_call_operand.hbm [shape: bf16[256,256], index: 12, kind: input, shape index: {}]   ;;  %s7787_s13 = inlined_call_operand.hbm [shape: bf16[256,256], index: 13, kind: input, shape index: {}]   ;;  %s7788_s14 = inlined_call_operand.hbm [shape: bf16[256,128], index: 14, kind: input, shape index: {}]   ;;  %s7789_s15 = inlined_call_operand.vmem [shape: f32[1,256], index: 15, kind: input, shape index: {}]   ;;  %s7790_s16 = inlined_call_operand.vmem [shape: f32[1,256], index: 16, kind: input, shape index: {}]   ;;  %s7791_s17 = inlined_call_operand.vmem [shape: f32[1,256], index: 17, kind: input, shape index: {}]   ;;  %s7792_s18 = inlined_call_operand.vmem [shape: f32[1,256], index: 18, kind: input, shape index: {}]   ;;  %s7793_s19 = inlined_call_operand.vmem [shape: f32[1,256], index: 19, kind: input, shape index: {}]   ;;  %s7794_s20 = inlined_call_operand.vmem [shape: f32[1,256], index: 20, kind: input, shape index: {}]   ;;  %s7795_s21 = inlined_call_operand.vmem [shape: f32[1,128], index: 21, kind: input, shape index: {}]   ;;  %s7796_s22 = inlined_call_operand.vmem [shape: f32[1,128], index: 22, kind: input, shape index: {}]   ;;  %s7797_s23 = inlined_call_operand.vmem [shape: f32[1,256], index: 23, kind: input, shape index: {}]   ;;  %s7798_s24 = inlined_call_operand.vmem [shape: f32[1,256], index: 24, kind: input, shape index: {}]   ;;  %s7799_s25 = inlined_call_operand.vmem [shape: f32[1,256], index: 25, kind: input, shape index: {}]   ;;  %s7800_s26 = inlined_call_operand.vmem [shape: f32[1,256], index: 26, kind: input, shape index: {}]   ;;  %s7801_s27 = inlined_call_operand.vmem [shape: f32[1,128], index: 27, kind: input, shape index: {}]   ;;  %s7802_s28 = inlined_call_operand.hbm [shape: f32[64,128], index: 28, kind: output, shape index: {}]  }
   0x1   :  { %7825 = sst [smem:[#allocation36_spill]] %s7774_s0 }
   0x2   :  { %7826 = sst [smem:[#allocation37_spill]] %s7775_s1 }
   0x3   :  { %7827 = sst [smem:[#allocation38_spill]] %s7776_s2 }
   0x4   :  { %7828 = sst [smem:[#allocation39_spill]] %s7777_s3 }
   0x5   :  { %7829 = sst [smem:[#allocation40_spill]] %s7778_s4 }
   0x6   :  { %7830 = sst [smem:[#allocation41_spill]] %s7779_s5 }
   0x7   :  { %7831 = sst [smem:[#allocation42_spill]] %s7780_s6 }
   0x8   :  { %7832 = sst [smem:[#allocation43_spill]] %s7781_s7 }
   0x9   :  { %7833 = sst [smem:[#allocation44_spill]] %s7782_s8 }
   0xa   :  { %7834 = sst [smem:[#allocation45_spill]] %s7783_s9 }
   0xb   :  { %7835 = sst [smem:[#allocation46_spill]] %s7784_s10 }
   0xc   :  { %7836 = sst [smem:[#allocation47_spill]] %s7785_s11 }
   0xd   :  { %7837 = sst [smem:[#allocation48_spill]] %s7786_s12 }
   0xe   :  { %7838 = sst [smem:[#allocation49_spill]] %s7796_s22 }
   0xf   :  { %7839 = sst [smem:[#allocation50_spill]] %s7800_s26 }
  0x10   :  { %7840 = sst [smem:[#allocation51_spill]] %s7801_s27 }
  0x11   :  { %7841 = sst [smem:[#allocation52_spill]] %s7802_s28 }
  0x12   :  { %33 = vsyncpa [#allocation3], 0 }
  0x13   :  { %34 = vsyncpa [#allocation6], 0 }
  0x14   :  { %35 = vsyncpa [#allocation9], 0 }
  0x15   :  { %36 = vsyncpa [#allocation12], 0 }
  0x16   :  { %37 = vsyncpa [#allocation15], 0 }
  0x17   :  { %38 = vsyncpa [#allocation18], 0 }
  0x18   :  { %39 = vsyncpa [#allocation21], 0 }
  0x19   :  { %40 = vsyncpa [#allocation24], 0 }
  0x1a   :  { %41 = vsyncpa [#allocation4], 0  ;;  %s7061_s8 = smov [#allocation5]   ;;  %s7842_s3 = sld [smem:[#allocation37_spill]] }
  0x1b   :  { %s59_s5 = sshll.u32 %s7061_s8, 4  ;;  %s60_s5 = int_to_ptr.vmem [resolvable:$true] %s59_s5 }
  0x20   :  { %s6691_s6 = scalar_lea.hbm %s7842_s3, 10240 }
  0x21   :  { %p6692_p0 = scmp.ne.s32.totalorder %s7842_s3, %s6691_s6  ;;  %p6695_p1 = scmp.lt.u32.totalorder %s6691_s6, %s7842_s3 }
  0x23   :  { %p6697_p2 = pnand %p6695_p1, %p6692_p0 }
  0x25   :  { %6700 = shalt.err (!%p6697_p2)
}
  0x26   :  { %s6701_s2 = scalar_lea.vmem %s60_s5, 10240  ;;  %p6706_p4 = scmp.lt.s32.totalorder %s60_s5, %s60_s5 }
  0x27   :  { %p6702_p3 = scmp.ne.s32.totalorder %s60_s5, %s6701_s2  ;;  %p6707_p5 = scmp.lt.s32.totalorder %s6701_s2, %s6701_s2 }
  0x29   :  { %p6708_p6 = por %p6707_p5, %p6706_p4 }
  0x2b   :  { %p6709_p7 = pnand %p6708_p6, %p6702_p3 }
  0x2d   :  { %6712 = shalt.err (!%p6709_p7)
}
  0x2e   :  { %s7817_s7 = smov 128   ;;  %s7819_s12 = smov 8  }
  0x2f   :  { %65 = dma.hbm_to_vmem [thread:$0]  %s7842_s3, 10240, %s60_s5, [#allocation6], %s7817_s7, %s7817_s7, %s7819_s12  }
  0x30   :  { %s7064_s8 = smov [#allocation8]   ;;  %s7065_s30 = smov [#allocation11]  }
  0x31   :  { %s83_s9 = sshll.u32 %s7064_s8, 4  ;;  %s107_s6 = sshll.u32 %s7065_s30, 4  ;;  %s84_s9 = int_to_ptr.vmem [resolvable:$true] %s83_s9  ;;  %s108_s6 = int_to_ptr.vmem [resolvable:$true] %s107_s6 }
  0x32   :  { %s7843_s11 = sld [smem:[#allocation39_spill]] }
  0x38   :  { %s6713_s29 = scalar_lea.hbm %s7843_s11, 4096 }
  0x39   :  { %p6714_p8 = scmp.ne.s32.totalorder %s7843_s11, %s6713_s29  ;;  %p6717_p9 = scmp.lt.u32.totalorder %s6713_s29, %s7843_s11 }
  0x3b   :  { %p6719_p10 = pnand %p6717_p9, %p6714_p8 }
  0x3d   :  { %6722 = shalt.err (!%p6719_p10)
}
  0x3e   :  { %s6723_s5 = scalar_lea.vmem %s84_s9, 4096  ;;  %p6728_p12 = scmp.lt.s32.totalorder %s84_s9, %s84_s9 }
  0x3f   :  { %p6724_p11 = scmp.ne.s32.totalorder %s84_s9, %s6723_s5  ;;  %p6729_p13 = scmp.lt.s32.totalorder %s6723_s5, %s6723_s5 }
  0x41   :  { %p6730_p0 = por %p6729_p13, %p6728_p12 }
  0x43   :  { %p6731_p1 = pnand %p6730_p0, %p6724_p11 }
  0x45   :  { %6734 = shalt.err (!%p6731_p1)
}
  0x46   :  { %89 = dma.hbm_to_vmem [thread:$0]  %s7843_s11, 4096, %s84_s9, [#allocation9], %s7817_s7, %s7817_s7, %s7819_s12  }
  0x47   :  { %s7844_s27 = sld [smem:[#allocation41_spill]] }
  0x4d   :  { %s6735_s4 = scalar_lea.hbm %s7844_s27, 4096 }
  0x4e   :  { %p6736_p2 = scmp.ne.s32.totalorder %s7844_s27, %s6735_s4  ;;  %p6739_p3 = scmp.lt.u32.totalorder %s6735_s4, %s7844_s27 }
  0x50   :  { %p6741_p4 = pnand %p6739_p3, %p6736_p2 }
  0x52   :  { %6744 = shalt.err (!%p6741_p4)
}
  0x53   :  { %s6745_s29 = scalar_lea.vmem %s108_s6, 4096  ;;  %p6750_p6 = scmp.lt.s32.totalorder %s108_s6, %s108_s6 }
  0x54   :  { %p6746_p5 = scmp.ne.s32.totalorder %s108_s6, %s6745_s29  ;;  %p6751_p7 = scmp.lt.s32.totalorder %s6745_s29, %s6745_s29 }
  0x56   :  { %p6752_p8 = por %p6751_p7, %p6750_p6 }
  0x58   :  { %p6753_p9 = pnand %p6752_p8, %p6746_p5 }
  0x5a   :  { %6756 = shalt.err (!%p6753_p9)
}
  0x5b   :  { %113 = dma.hbm_to_vmem [thread:$0]  %s7844_s27, 4096, %s108_s6, [#allocation12], %s7817_s7, %s7817_s7, %s7819_s12  }
  0x5c   :  { %s7066_s2 = smov [#allocation14]   ;;  %s7845_s28 = sld [smem:[#allocation43_spill]] }
  0x5d   :  { %s131_s5 = sshll.u32 %s7066_s2, 4  ;;  %s132_s5 = int_to_ptr.vmem [resolvable:$true] %s131_s5 }
  0x62   :  { %s6757_s22 = scalar_lea.hbm %s7845_s28, 2048 }
  0x63   :  { %p6758_p10 = scmp.ne.s32.totalorder %s7845_s28, %s6757_s22  ;;  %p6761_p11 = scmp.lt.u32.totalorder %s6757_s22, %s7845_s28 }
  0x65   :  { %p6763_p12 = pnand %p6761_p11, %p6758_p10 }
  0x67   :  { %6766 = shalt.err (!%p6763_p12)
}
  0x68   :  { %s6767_s0 = scalar_lea.vmem %s132_s5, 2048  ;;  %p6772_p0 = scmp.lt.s32.totalorder %s132_s5, %s132_s5 }
  0x69   :  { %p6768_p13 = scmp.ne.s32.totalorder %s132_s5, %s6767_s0  ;;  %p6773_p1 = scmp.lt.s32.totalorder %s6767_s0, %s6767_s0 }
  0x6b   :  { %p6774_p2 = por %p6773_p1, %p6772_p0 }
  0x6d   :  { %p6775_p3 = pnand %p6774_p2, %p6768_p13 }
  0x6f   :  { %6778 = shalt.err (!%p6775_p3)
}
  0x70   :  { %s7821_s6 = smov 64   ;;  %s7823_s27 = smov 4  }
  0x71   :  { %137 = dma.hbm_to_vmem [thread:$0]  %s7845_s28, 2048, %s132_s5, [#allocation15], %s7821_s6, %s7821_s6, %s7823_s27  }
  0x72   :  { %s7069_s11 = smov [#allocation17]   ;;  %s7070_s3 = smov [#allocation20]  }
  0x73   :  { %s155_s2 = sshll.u32 %s7069_s11, 4  ;;  %s179_s1 = sshll.u32 %s7070_s3, 4  ;;  %s156_s2 = int_to_ptr.vmem [resolvable:$true] %s155_s2  ;;  %s7289_s1 = int_to_ptr.vmem [resolvable:$true] %s179_s1 }
  0x74   :  { %s7846_s8 = sld [smem:[#allocation45_spill]] }
  0x7a   :  { %s6779_s30 = scalar_lea.hbm %s7846_s8, 4096 }
  0x7b   :  { %p6780_p4 = scmp.ne.s32.totalorder %s7846_s8, %s6779_s30  ;;  %p6783_p5 = scmp.lt.u32.totalorder %s6779_s30, %s7846_s8 }
  0x7d   :  { %p6785_p6 = pnand %p6783_p5, %p6780_p4 }
  0x7f   :  { %6788 = shalt.err (!%p6785_p6)
}
  0x80   :  { %s6789_s5 = scalar_lea.vmem %s156_s2, 4096  ;;  %p6794_p8 = scmp.lt.s32.totalorder %s156_s2, %s156_s2 }
  0x81   :  { %p6790_p7 = scmp.ne.s32.totalorder %s156_s2, %s6789_s5  ;;  %p6795_p9 = scmp.lt.s32.totalorder %s6789_s5, %s6789_s5 }
  0x83   :  { %p6796_p10 = por %p6795_p9, %p6794_p8 }
  0x85   :  { %p6797_p11 = pnand %p6796_p10, %p6790_p7 }
  0x87   :  { %6800 = shalt.err (!%p6797_p11)
}
  0x88   :  { %s7847_s28 = smov 8   ;;  %s7848_s29 = smov 128  }
  0x89   :  { %161 = dma.hbm_to_vmem [thread:$0]  %s7846_s8, 4096, %s156_s2, [#allocation18], %s7848_s29, %s7848_s29, %s7847_s28  }
  0x8a   :  { %s7849_s7 = sld [smem:[#allocation47_spill]] }
  0x90   :  { %s6801_s12 = scalar_lea.hbm %s7849_s7, 4096 }
  0x91   :  { %p6802_p12 = scmp.ne.s32.totalorder %s7849_s7, %s6801_s12  ;;  %p6805_p13 = scmp.lt.u32.totalorder %s6801_s12, %s7849_s7 }
  0x93   :  { %p6807_p0 = pnand %p6805_p13, %p6802_p12 }
  0x95   :  { %6810 = shalt.err (!%p6807_p0)
}
  0x96   :  { %s6811_s5 = scalar_lea.vmem %s7289_s1, 4096  ;;  %p6816_p2 = scmp.lt.s32.totalorder %s7289_s1, %s7289_s1 }
  0x97   :  { %p6812_p1 = scmp.ne.s32.totalorder %s7289_s1, %s6811_s5  ;;  %p6817_p3 = scmp.lt.s32.totalorder %s6811_s5, %s6811_s5 }
  0x99   :  { %p6818_p4 = por %p6817_p3, %p6816_p2 }
  0x9b   :  { %p6819_p5 = pnand %p6818_p4, %p6812_p1 }
  0x9d   :  { %6822 = shalt.err (!%p6819_p5)
}
  0x9e   :  { %185 = dma.hbm_to_vmem [thread:$0]  %s7849_s7, 4096, %s7289_s1, [#allocation21], %s7848_s29, %s7848_s29, %s7847_s28  }
  0x9f   :  { %s7071_s9 = smov [#allocation23]   ;;  %s7072_s3 = smov [#allocation2]  }
  0xa0   :  { %s203_s11 = sshll.u32 %s7071_s9, 4  ;;  %s47_s22 = sshll.u32 %s7072_s3, 4  ;;  %s204_s11 = int_to_ptr.vmem [resolvable:$true] %s203_s11  ;;  %s7326_s22 = int_to_ptr.vmem [resolvable:$true] %s47_s22 }
  0xa1   :  { %s6823_s30 = scalar_lea.hbm %s7787_s13, 4096 }
  0xa2   :  { %p6824_p6 = scmp.ne.s32.totalorder %s7787_s13, %s6823_s30  ;;  %p6827_p7 = scmp.lt.u32.totalorder %s6823_s30, %s7787_s13 }
  0xa4   :  { %p6829_p8 = pnand %p6827_p7, %p6824_p6 }
  0xa6   :  { %6832 = shalt.err (!%p6829_p8)
}
  0xa7   :  { %s6833_s1 = scalar_lea.vmem %s204_s11, 4096  ;;  %p6838_p10 = scmp.lt.s32.totalorder %s204_s11, %s204_s11 }
  0xa8   :  { %p6834_p9 = scmp.ne.s32.totalorder %s204_s11, %s6833_s1  ;;  %p6839_p11 = scmp.lt.s32.totalorder %s6833_s1, %s6833_s1 }
  0xaa   :  { %p6840_p12 = por %p6839_p11, %p6838_p10 }
  0xac   :  { %p6841_p13 = pnand %p6840_p12, %p6834_p9 }
  0xae   :  { %6844 = shalt.err (!%p6841_p13)
}
  0xaf   :  { %209 = dma.hbm_to_vmem [thread:$0]  %s7787_s13, 4096, %s204_s11, [#allocation24], %s7848_s29, %s7848_s29, %s7847_s28  }
  0xb0   :  { %s7850_s6 = sld [smem:[#allocation36_spill]] }
  0xb6   :  { %s6845_s3 = scalar_lea.hbm %s7850_s6, 2560 }
  0xb7   :  { %p6846_p0 = scmp.ne.s32.totalorder %s7850_s6, %s6845_s3  ;;  %p6849_p1 = scmp.lt.u32.totalorder %s6845_s3, %s7850_s6 }
  0xb9   :  { %p6851_p2 = pnand %p6849_p1, %p6846_p0 }
  0xbb   :  { %6854 = shalt.err (!%p6851_p2)
}
  0xbc   :  { %s6855_s0 = scalar_lea.vmem %s7326_s22, 2560  ;;  %p6860_p4 = scmp.lt.s32.totalorder %s7326_s22, %s7326_s22 }
  0xbd   :  { %p6856_p3 = scmp.ne.s32.totalorder %s7326_s22, %s6855_s0  ;;  %p6861_p5 = scmp.lt.s32.totalorder %s6855_s0, %s6855_s0 }
  0xbf   :  { %p6862_p6 = por %p6861_p5, %p6860_p4 }
  0xc1   :  { %p6863_p7 = pnand %p6862_p6, %p6856_p3 }
  0xc3   :  { %6866 = shalt.err (!%p6863_p7)
}
  0xc4   :  { %s7073_s13 = smov 320   ;;  %s7074_s11 = smov 20  }
  0xc5   :  { %53 = dma.hbm_to_vmem [thread:$0]  %s7850_s6, 2560, %s7326_s22, [#allocation3], %s7073_s13, %s7073_s13, %s7074_s11  }
  0xc6   :  { %s7075_s7 = smov [#allocation7]   ;;  %s7076_s8 = smov [#allocation10]  }
  0xc7   :  { %s71_s2 = sshll.u32 %s7075_s7, 4  ;;  %s95_s9 = sshll.u32 %s7076_s8, 4  ;;  %s72_s2 = int_to_ptr.vmem [resolvable:$true] %s71_s2  ;;  %s7360_s9 = int_to_ptr.vmem [resolvable:$true] %s95_s9 }
  0xc8   :  { %s7851_s4 = sld [smem:[#allocation38_spill]] }
  0xce   :  { %s6867_s30 = scalar_lea.hbm %s7851_s4, 4096 }
  0xcf   :  { %p6868_p8 = scmp.ne.s32.totalorder %s7851_s4, %s6867_s30  ;;  %p6871_p9 = scmp.lt.u32.totalorder %s6867_s30, %s7851_s4 }
  0xd1   :  { %p6873_p10 = pnand %p6871_p9, %p6868_p8 }
  0xd3   :  { %6876 = shalt.err (!%p6873_p10)
}
  0xd4   :  { %s6877_s22 = scalar_lea.vmem %s72_s2, 4096  ;;  %p6882_p12 = scmp.lt.s32.totalorder %s72_s2, %s72_s2 }
  0xd5   :  { %p6878_p11 = scmp.ne.s32.totalorder %s72_s2, %s6877_s22  ;;  %p6883_p13 = scmp.lt.s32.totalorder %s6877_s22, %s6877_s22 }
  0xd7   :  { %p6884_p0 = por %p6883_p13, %p6882_p12 }
  0xd9   :  { %p6885_p1 = pnand %p6884_p0, %p6878_p11 }
  0xdb   :  { %6888 = shalt.err (!%p6885_p1)
}
  0xdc   :  { %77 = dma.hbm_to_vmem [thread:$0]  %s7851_s4, 4096, %s72_s2, [#allocation6], %s7848_s29, %s7848_s29, %s7847_s28  }
  0xdd   :  { %s7852_s26 = sld [smem:[#allocation40_spill]] }
  0xe3   :  { %s6889_s27 = scalar_lea.hbm %s7852_s26, 4096 }
  0xe4   :  { %p6890_p2 = scmp.ne.s32.totalorder %s7852_s26, %s6889_s27  ;;  %p6893_p3 = scmp.lt.u32.totalorder %s6889_s27, %s7852_s26 }
  0xe6   :  { %p6895_p4 = pnand %p6893_p3, %p6890_p2 }
  0xe8   :  { %6898 = shalt.err (!%p6895_p4)
}
  0xe9   :  { %s6899_s12 = scalar_lea.vmem %s7360_s9, 4096  ;;  %p6904_p6 = scmp.lt.s32.totalorder %s7360_s9, %s7360_s9 }
  0xea   :  { %p6900_p5 = scmp.ne.s32.totalorder %s7360_s9, %s6899_s12  ;;  %p6905_p7 = scmp.lt.s32.totalorder %s6899_s12, %s6899_s12 }
  0xec   :  { %p6906_p8 = por %p6905_p7, %p6904_p6 }
  0xee   :  { %p6907_p9 = pnand %p6906_p8, %p6900_p5 }
  0xf0   :  { %6910 = shalt.err (!%p6907_p9)
}
  0xf1   :  { %101 = dma.hbm_to_vmem [thread:$0]  %s7852_s26, 4096, %s7360_s9, [#allocation9], %s7848_s29, %s7848_s29, %s7847_s28  }
  0xf2   :  { %s7077_s30 = smov [#allocation13]   ;;  %s7078_s0 = smov [#allocation16]  }
  0xf3   :  { %s119_s10 = sshll.u32 %s7077_s30, 4  ;;  %s143_s22 = sshll.u32 %s7078_s0, 4  ;;  %s120_s10 = int_to_ptr.vmem [resolvable:$true] %s119_s10  ;;  %s7397_s22 = int_to_ptr.vmem [resolvable:$true] %s143_s22 }
  0xf4   :  { %s7853_s11 = sld [smem:[#allocation42_spill]] }
  0xfa   :  { %s6911_s5 = scalar_lea.hbm %s7853_s11, 4096 }
  0xfb   :  { %p6912_p10 = scmp.ne.s32.totalorder %s7853_s11, %s6911_s5  ;;  %p6915_p11 = scmp.lt.u32.totalorder %s6911_s5, %s7853_s11 }
  0xfd   :  { %p6917_p12 = pnand %p6915_p11, %p6912_p10 }
  0xff   :  { %6920 = shalt.err (!%p6917_p12)
}
 0x100   :  { %s6921_s9 = scalar_lea.vmem %s120_s10, 4096  ;;  %p6926_p0 = scmp.lt.s32.totalorder %s120_s10, %s120_s10 }
 0x101   :  { %p6922_p13 = scmp.ne.s32.totalorder %s120_s10, %s6921_s9  ;;  %p6927_p1 = scmp.lt.s32.totalorder %s6921_s9, %s6921_s9 }
 0x103   :  { %p6928_p2 = por %p6927_p1, %p6926_p0 }
 0x105   :  { %p6929_p3 = pnand %p6928_p2, %p6922_p13 }
 0x107   :  { %6932 = shalt.err (!%p6929_p3)
}
 0x108   :  { %125 = dma.hbm_to_vmem [thread:$0]  %s7853_s11, 4096, %s120_s10, [#allocation12], %s7848_s29, %s7848_s29, %s7847_s28  }
 0x109   :  { %s7854_s4 = sld [smem:[#allocation44_spill]] }
 0x10f   :  { %s6933_s30 = scalar_lea.hbm %s7854_s4, 1024 }
 0x110   :  { %p6934_p4 = scmp.ne.s32.totalorder %s7854_s4, %s6933_s30  ;;  %p6937_p5 = scmp.lt.u32.totalorder %s6933_s30, %s7854_s4 }
 0x112   :  { %p6939_p6 = pnand %p6937_p5, %p6934_p4 }
 0x114   :  { %6942 = shalt.err (!%p6939_p6)
}
 0x115   :  { %s6943_s27 = scalar_lea.vmem %s7397_s22, 1024  ;;  %p6948_p8 = scmp.lt.s32.totalorder %s7397_s22, %s7397_s22 }
 0x116   :  { %p6944_p7 = scmp.ne.s32.totalorder %s7397_s22, %s6943_s27  ;;  %p6949_p9 = scmp.lt.s32.totalorder %s6943_s27, %s6943_s27 }
 0x118   :  { %p6950_p10 = por %p6949_p9, %p6948_p8 }
 0x11a   :  { %p6951_p11 = pnand %p6950_p10, %p6944_p7 }
 0x11c   :  { %6954 = shalt.err (!%p6951_p11)
}
 0x11d   :  { %s7855_s10 = smov 4   ;;  %s7856_s11 = smov 64  }
 0x11e   :  { %149 = dma.hbm_to_vmem [thread:$0]  %s7854_s4, 1024, %s7397_s22, [#allocation15], %s7856_s11, %s7856_s11, %s7855_s10  }
 0x11f   :  { %s7079_s8 = smov [#allocation19]   ;;  %s7080_s26 = smov [#allocation22]  }
 0x120   :  { %s167_s9 = sshll.u32 %s7079_s8, 4  ;;  %s191_s3 = sshll.u32 %s7080_s26, 4  ;;  %s168_s9 = int_to_ptr.vmem [resolvable:$true] %s167_s9  ;;  %s7434_s3 = int_to_ptr.vmem [resolvable:$true] %s191_s3 }
 0x121   :  { %s7857_s30 = sld [smem:[#allocation46_spill]] }
 0x127   :  { %s6955_s0 = scalar_lea.hbm %s7857_s30, 10240 }
 0x128   :  { %p6956_p12 = scmp.ne.s32.totalorder %s7857_s30, %s6955_s0  ;;  %p6959_p13 = scmp.lt.u32.totalorder %s6955_s0, %s7857_s30 }
 0x12a   :  { %p6961_p0 = pnand %p6959_p13, %p6956_p12 }
 0x12c   :  { %6964 = shalt.err (!%p6961_p0)
}
 0x12d   :  { %s6965_s22 = scalar_lea.vmem %s168_s9, 10240  ;;  %p6970_p2 = scmp.lt.s32.totalorder %s168_s9, %s168_s9 }
 0x12e   :  { %p6966_p1 = scmp.ne.s32.totalorder %s168_s9, %s6965_s22  ;;  %p6971_p3 = scmp.lt.s32.totalorder %s6965_s22, %s6965_s22 }
 0x130   :  { %p6972_p4 = por %p6971_p3, %p6970_p2 }
 0x132   :  { %p6973_p5 = pnand %p6972_p4, %p6966_p1 }
 0x134   :  { %6976 = shalt.err (!%p6973_p5)
}
 0x135   :  { %173 = dma.hbm_to_vmem [thread:$0]  %s7857_s30, 10240, %s168_s9, [#allocation18], %s7848_s29, %s7848_s29, %s7847_s28  }
 0x136   :  { %s7858_s26 = sld [smem:[#allocation48_spill]] }
 0x13c   :  { %s6977_s12 = scalar_lea.hbm %s7858_s26, 4096 }
 0x13d   :  { %p6978_p6 = scmp.ne.s32.totalorder %s7858_s26, %s6977_s12  ;;  %p6981_p7 = scmp.lt.u32.totalorder %s6977_s12, %s7858_s26 }
 0x13f   :  { %p6983_p8 = pnand %p6981_p7, %p6978_p6 }
 0x141   :  { %6986 = shalt.err (!%p6983_p8)
}
 0x142   :  { %s6987_s5 = scalar_lea.vmem %s7434_s3, 4096  ;;  %p6992_p10 = scmp.lt.s32.totalorder %s7434_s3, %s7434_s3 }
 0x143   :  { %p6988_p9 = scmp.ne.s32.totalorder %s7434_s3, %s6987_s5  ;;  %p6993_p11 = scmp.lt.s32.totalorder %s6987_s5, %s6987_s5 }
 0x145   :  { %p6994_p12 = por %p6993_p11, %p6992_p10 }
 0x147   :  { %p6995_p13 = pnand %p6994_p12, %p6988_p9 }
 0x149   :  { %6998 = shalt.err (!%p6995_p13)
}
 0x14a   :  { %197 = dma.hbm_to_vmem [thread:$0]  %s7858_s26, 4096, %s7434_s3, [#allocation21], %s7848_s29, %s7848_s29, %s7847_s28  }
 0x14b   :  { %s7081_s27 = smov [#allocation25]   ;;  %s6999_s7 = scalar_lea.hbm %s7788_s14, 2048 }
 0x14c   :  { %s215_s22 = sshll.u32 %s7081_s27, 4  ;;  %p7000_p0 = scmp.ne.s32.totalorder %s7788_s14, %s6999_s7  ;;  %s216_s22 = int_to_ptr.vmem [resolvable:$true] %s215_s22 }
 0x14d   :  { %p7003_p1 = scmp.lt.u32.totalorder %s6999_s7, %s7788_s14 }
 0x14f   :  { %p7005_p2 = pnand %p7003_p1, %p7000_p0 }
 0x151   :  { %7008 = shalt.err (!%p7005_p2)
}
 0x152   :  { %s7009_s6 = scalar_lea.vmem %s216_s22, 2048  ;;  %p7014_p4 = scmp.lt.s32.totalorder %s216_s22, %s216_s22 }
 0x153   :  { %p7010_p3 = scmp.ne.s32.totalorder %s216_s22, %s7009_s6  ;;  %p7015_p5 = scmp.lt.s32.totalorder %s7009_s6, %s7009_s6 }
 0x155   :  { %p7016_p6 = por %p7015_p5, %p7014_p4 }
 0x157   :  { %p7017_p7 = pnand %p7016_p6, %p7010_p3 }
 0x159   :  { %7020 = shalt.err (!%p7017_p7)
}
 0x15a   :  { %221 = dma.hbm_to_vmem [thread:$0]  %s7788_s14, 2048, %s216_s22, [#allocation24], %s7856_s11, %s7856_s11, %s7855_s10  }
 0x15b   :  { %7043 = dma.done.wait [#allocation3], 2560  }
 0x15c   :  { %7044 = vsyncadd [#allocation3], 4294964736 }
 0x15d   :  { %7045 = dma.done.wait [#allocation6], 14336  }
 0x15e   :  { %7046 = vsyncadd [#allocation6], 4294952960 }
 0x15f   :  { %7047 = dma.done.wait [#allocation9], 8192  }
 0x160   :  { %7048 = vsyncadd [#allocation9], 4294959104 }
 0x161   :  { %7049 = dma.done.wait [#allocation12], 8192  }
 0x162   :  { %7050 = vsyncadd [#allocation12], 4294959104 }
 0x163   :  { %7051 = dma.done.wait [#allocation15], 3072  }
 0x164   :  { %7052 = vsyncadd [#allocation15], 4294964224 }
 0x165   :  { %7053 = dma.done.wait [#allocation18], 14336  }
 0x166   :  { %7054 = vsyncadd [#allocation18], 4294952960 }
 0x167   :  { %7055 = dma.done.wait [#allocation21], 8192  }
 0x168   :  { %7056 = vsyncadd [#allocation21], 4294959104 }
 0x169   :  { %7057 = dma.done.wait [#allocation24], 6144  }
 0x16a   :  { %7058 = vsyncadd [#allocation24], 4294961152  ;;  %v5931_v0 = vld [vmem:[#allocation5 + $0x4] ss:$8 sps:$4 sm:$0xff]   ;;  %v5933_v1 = vld [vmem:[#allocation5] ss:$8 sps:$4 sm:$0xff]  }
 0x16b   :  { %914 = vmatprep.subr.bf16.mxu0 %v5931_v0  ;;  %v5934_v2 = vld [vmem:[#allocation5 + $0x14] ss:$8 sps:$4 sm:$0xff]   ;;  %v5936_v3 = vld [vmem:[#allocation5 + $0x10] ss:$8 sps:$4 sm:$0xff]   ;;  %v5937_v4 = vld [vmem:[#allocation5 + $0x24] ss:$8 sps:$4 sm:$0xff]  }
 0x16c   :  { %915 = vmatpush1.bf16.msra.mxu0 %v5933_v1  ;;  %v5939_v5 = vld [vmem:[#allocation5 + $0x20] ss:$8 sps:$4 sm:$0xff]   ;;  %v5940_v6 = vld [vmem:[#allocation5 + $0x34] ss:$8 sps:$4 sm:$0xff]   ;;  %v5942_v7 = vld [vmem:[#allocation5 + $0x30] ss:$8 sps:$4 sm:$0xff]  }
 0x16d   :  { %916 = vmatprep.subr.bf16.mxu0 %v5934_v2  ;;  %v5943_v8 = vld [vmem:[#allocation5 + $0x44] ss:$8 sps:$4 sm:$0xff]   ;;  %v5945_v9 = vld [vmem:[#allocation5 + $0x40] ss:$8 sps:$4 sm:$0xff]   ;;  %v5946_v10 = vld [vmem:[#allocation5 + $0x54] ss:$8 sps:$4 sm:$0xff]  }
 0x16e   :  { %v5948_v11 = vld [vmem:[#allocation5 + $0x50] ss:$8 sps:$4 sm:$0xff]   ;;  %v5949_v12 = vld [vmem:[#allocation5 + $0x64] ss:$8 sps:$4 sm:$0xff]   ;;  %v5951_v14 = vld [vmem:[#allocation5 + $0x60] ss:$8 sps:$4 sm:$0xff]  }
 0x16f   :  { %v5981_v13 = vld [vmem:[#allocation2 + $0x4] ss:$20 sps:$4 sm:$0xff]   ;;  %v5952_v15 = vld [vmem:[#allocation5 + $0x74] ss:$8 sps:$4 sm:$0xff]   ;;  %v5957_v18 = vld [vmem:[#allocation5 + $0x80] ss:$8 sps:$4 sm:$0xff]  }
 0x170   :  { %917 = vmatpush1.bf16.msra.mxu0 %v5936_v3  ;;  %946 = vmatprep.mubr.bf16.mxu0 %v5981_v13  ;;  %v5954_v16 = vld [vmem:[#allocation5 + $0x70] ss:$8 sps:$4 sm:$0xff]   ;;  %v5955_v17 = vld [vmem:[#allocation5 + $0x84] ss:$8 sps:$4 sm:$0xff]   ;;  %v5958_v19 = vld [vmem:[#allocation5 + $0x94] ss:$8 sps:$4 sm:$0xff]  }
 0x171   :  { %918 = vmatprep.subr.bf16.mxu0 %v5937_v4  ;;  %v5960_v20 = vld [vmem:[#allocation5 + $0x90] ss:$8 sps:$4 sm:$0xff]   ;;  %v5961_v21 = vld [vmem:[#allocation5 + $0xa4] ss:$8 sps:$4 sm:$0xff]   ;;  %v5963_v22 = vld [vmem:[#allocation5 + $0xa0] ss:$8 sps:$4 sm:$0xff]  }
 0x172   :  { %v5964_v23 = vld [vmem:[#allocation5 + $0xb4] ss:$8 sps:$4 sm:$0xff]   ;;  %v5966_v24 = vld [vmem:[#allocation5 + $0xb0] ss:$8 sps:$4 sm:$0xff]   ;;  %v5967_v25 = vld [vmem:[#allocation5 + $0xc4] ss:$8 sps:$4 sm:$0xff]  }
 0x173   :  { %v5969_v26 = vld [vmem:[#allocation5 + $0xc0] ss:$8 sps:$4 sm:$0xff]   ;;  %v5970_v27 = vld [vmem:[#allocation5 + $0xd4] ss:$8 sps:$4 sm:$0xff]   ;;  %v5972_v28 = vld [vmem:[#allocation5 + $0xd0] ss:$8 sps:$4 sm:$0xff]  }
 0x174   :  { %919 = vmatpush1.bf16.msra.mxu0 %v5939_v5  ;;  %v5973_v29 = vld [vmem:[#allocation5 + $0xe4] ss:$8 sps:$4 sm:$0xff]   ;;  %v5975_v30 = vld [vmem:[#allocation5 + $0xe0] ss:$8 sps:$4 sm:$0xff]   ;;  %v5976_v31 = vld [vmem:[#allocation5 + $0xf4] ss:$8 sps:$4 sm:$0xff]  }
 0x175   :  { %920 = vmatprep.subr.bf16.mxu0 %v5940_v6  ;;  %v5978_v32 = vld [vmem:[#allocation5 + $0xf0] ss:$8 sps:$4 sm:$0xff]   ;;  %v5984_v33 = vld [vmem:[#allocation5 + $0x104] ss:$8 sps:$4 sm:$0xff]   ;;  %v5979_v34 = vld [vmem:[#allocation2] ss:$20 sps:$4 sm:$0xff]  }
 0x176   :  { %v5982_v35 = vld [vmem:[#allocation5 + $0x100] ss:$8 sps:$4 sm:$0xff]   ;;  %v5987_v37 = vld [vmem:[#allocation5 + $0x114] ss:$8 sps:$4 sm:$0xff]   ;;  %v5985_v38 = vld [vmem:[#allocation5 + $0x110] ss:$8 sps:$4 sm:$0xff]  }
 0x177   :  { %v6012_v36 = vld [vmem:[#allocation2 + $0x2c] ss:$20 sps:$4 sm:$0xff]   ;;  %v6014_v43 = vld [vmem:[#allocation2 + $0x28] ss:$20 sps:$4 sm:$0xff]   ;;  %v6084_v47 = vld [vmem:[#allocation7 + $0x10] ss:$8 sps:$4 sm:$0xff]  }
 0x178   :  { %921 = vmatpush1.bf16.msra.mxu0 %v5942_v7  ;;  %v5990_v39 = vld [vmem:[#allocation5 + $0x124] ss:$8 sps:$4 sm:$0xff]   ;;  %v5988_v41 = vld [vmem:[#allocation5 + $0x120] ss:$8 sps:$4 sm:$0xff]   ;;  %v6082_v44 = vld [vmem:[#allocation7 + $0x14] ss:$8 sps:$4 sm:$0xff]  }
 0x179   :  { %922 = vmatprep.subr.bf16.mxu0 %v5943_v8  ;;  %v6079_v40 = vld [vmem:[#allocation7 + $0x4] ss:$8 sps:$4 sm:$0xff]   ;;  %v6081_v42 = vld [vmem:[#allocation7] ss:$8 sps:$4 sm:$0xff]   ;;  %v5993_v45 = vld [vmem:[#allocation5 + $0x134] ss:$8 sps:$4 sm:$0xff]  }
 0x17a   :  { %1361 = vmatprep.subr.bf16.mxu1 %v6079_v40  ;;  %v6021_v46 = vld [vmem:[#allocation2 + $0x54] ss:$20 sps:$4 sm:$0xff]   ;;  %v6085_v48 = vld [vmem:[#allocation7 + $0x24] ss:$8 sps:$4 sm:$0xff]   ;;  %v5991_v49 = vld [vmem:[#allocation5 + $0x130] ss:$8 sps:$4 sm:$0xff]  }
 0x17b   :  { %1362 = vmatpush1.bf16.msra.mxu1 %v6081_v42  ;;  %v5996_v50 = vld [vmem:[#allocation5 + $0x144] ss:$8 sps:$4 sm:$0xff]   ;;  %v6087_v51 = vld [vmem:[#allocation7 + $0x20] ss:$8 sps:$4 sm:$0xff]   ;;  %v6088_v52 = vld [vmem:[#allocation7 + $0x34] ss:$8 sps:$4 sm:$0xff]  }
 0x17c   :  { %923 = vmatpush1.bf16.msra.mxu0 %v5945_v9  ;;  %1363 = vmatprep.subr.bf16.mxu1 %v6082_v44  ;;  %v5994_v53 = vld [vmem:[#allocation5 + $0x140] ss:$8 sps:$4 sm:$0xff]   ;;  %v6023_v54 = vld [vmem:[#allocation2 + $0x50] ss:$20 sps:$4 sm:$0xff]   ;;  %v5999_v55 = vld [vmem:[#allocation5 + $0x154] ss:$8 sps:$4 sm:$0xff]  }
 0x17d   :  { %924 = vmatprep.subr.bf16.mxu0 %v5946_v10  ;;  %v6030_v56 = vld [vmem:[#allocation2 + $0x7c] ss:$20 sps:$4 sm:$0xff]   ;;  %v6091_v58 = vld [vmem:[#allocation7 + $0x44] ss:$8 sps:$4 sm:$0xff]   ;;  %v6093_v62 = vld [vmem:[#allocation7 + $0x40] ss:$8 sps:$4 sm:$0xff]  }
 0x17e   :  { %v6090_v57 = vld [vmem:[#allocation7 + $0x30] ss:$8 sps:$4 sm:$0xff]   ;;  %v6002_v60 = vld [vmem:[#allocation5 + $0x164] ss:$8 sps:$4 sm:$0xff]   ;;  %v6000_v63 = vld [vmem:[#allocation5 + $0x160] ss:$8 sps:$4 sm:$0xff]  }
 0x17f   :  { %1364 = vmatpush1.bf16.msra.mxu1 %v6084_v47  ;;  %v5997_v59 = vld [vmem:[#allocation5 + $0x150] ss:$8 sps:$4 sm:$0xff]   ;;  %v6094_v0 = vld [vmem:[#allocation7 + $0x54] ss:$8 sps:$4 sm:$0xff]   ;;  %v6041_v2 = vld [vmem:[#allocation2 + $0xc] ss:$20 sps:$4 sm:$0xff]  }
 0x180   :  { %925 = vmatpush1.bf16.msra.mxu0 %v5948_v11  ;;  %1365 = vmatprep.subr.bf16.mxu1 %v6085_v48  ;;  %v6032_v61 = vld [vmem:[#allocation2 + $0x78] ss:$20 sps:$4 sm:$0xff]   ;;  %v6005_v1 = vld [vmem:[#allocation5 + $0x174] ss:$8 sps:$4 sm:$0xff]   ;;  %v6099_v7 = vld [vmem:[#allocation7 + $0x60] ss:$8 sps:$4 sm:$0xff]  }
 0x181   :  { %926 = vmatprep.subr.bf16.mxu0 %v5949_v12  ;;  %v6096_v3 = vld [vmem:[#allocation7 + $0x50] ss:$8 sps:$4 sm:$0xff]   ;;  %v6097_v4 = vld [vmem:[#allocation7 + $0x64] ss:$8 sps:$4 sm:$0xff]   ;;  %v6100_v8 = vld [vmem:[#allocation7 + $0x74] ss:$8 sps:$4 sm:$0xff]  }
 0x182   :  { %v6003_v5 = vld [vmem:[#allocation5 + $0x170] ss:$8 sps:$4 sm:$0xff]   ;;  %v6008_v6 = vld [vmem:[#allocation5 + $0x184] ss:$8 sps:$4 sm:$0xff]   ;;  %v6006_v9 = vld [vmem:[#allocation5 + $0x180] ss:$8 sps:$4 sm:$0xff]  }
 0x183   :  { %1366 = vmatpush1.bf16.msra.mxu1 %v6087_v51  ;;  %v6011_v10 = vld [vmem:[#allocation5 + $0x194] ss:$8 sps:$4 sm:$0xff]   ;;  %v6102_v11 = vld [vmem:[#allocation7 + $0x70] ss:$8 sps:$4 sm:$0xff]   ;;  %v6103_v12 = vld [vmem:[#allocation7 + $0x84] ss:$8 sps:$4 sm:$0xff]  }
 0x184   :  { %927 = vmatpush1.bf16.msra.mxu0 %v5951_v14  ;;  %1367 = vmatprep.subr.bf16.mxu1 %v6088_v52  ;;  %v6009_v13 = vld [vmem:[#allocation5 + $0x190] ss:$8 sps:$4 sm:$0xff]   ;;  %v6017_v14 = vld [vmem:[#allocation5 + $0x1a4] ss:$8 sps:$4 sm:$0xff]   ;;  %v6047_v40 = vld [vmem:[#allocation5 + $0x214] ss:$8 sps:$4 sm:$0xff]  }
 0x185   :  { %928 = vmatprep.subr.bf16.mxu0 %v5952_v15  ;;  %v6105_v15 = vld [vmem:[#allocation7 + $0x80] ss:$8 sps:$4 sm:$0xff]   ;;  %v6053_v42 = vld [vmem:[#allocation5 + $0x224] ss:$8 sps:$4 sm:$0xff]   ;;  %v6054_v47 = vld [vmem:[#allocation5 + $0x230] ss:$8 sps:$4 sm:$0xff]  }
 0x186   :  { %v6051_v44 = vld [vmem:[#allocation5 + $0x220] ss:$8 sps:$4 sm:$0xff]   ;;  %v6062_v48 = vld [vmem:[#allocation5 + $0x244] ss:$8 sps:$4 sm:$0xff]   ;;  %v6065_v52 = vld [vmem:[#allocation5 + $0x254] ss:$8 sps:$4 sm:$0xff]  }
 0x187   :  { %1368 = vmatpush1.bf16.msra.mxu1 %v6090_v57  ;;  %v6066_v51 = vld [vmem:[#allocation2 + $0x84] ss:$20 sps:$4 sm:$0xff]   ;;  %v6074_v57 = vld [vmem:[#allocation5 + $0x274] ss:$8 sps:$4 sm:$0xff]   ;;  %s7859_s8 = sld [smem:[#allocation50_spill]]  ;;  %s7860_s0 = sld [smem:[#allocation49_spill]] }
 0x188   :  { %929 = vmatpush1.bf16.msra.mxu0 %v5954_v16  ;;  %1369 = vmatprep.subr.bf16.mxu1 %v6091_v58  ;;  %v6106_v16 = vld [vmem:[#allocation7 + $0x94] ss:$8 sps:$4 sm:$0xff]   ;;  %v6072_v58 = vld [vmem:[#allocation5 + $0x270] ss:$8 sps:$4 sm:$0xff]   ;;  %s7861_s26 = sld [smem:[#allocation51_spill]]  ;;  %s7083_s14 = smov [#allocation26]  }
 0x189   :  { %930 = vmatprep.subr.bf16.mxu0 %v5955_v17  ;;  %v6015_v17 = vld [vmem:[#allocation5 + $0x1a0] ss:$8 sps:$4 sm:$0xff]   ;;  %s5150_s10 = sshll.u32 %s7083_s14, 4  ;;  %s5151_s10 = int_to_ptr.vmem [resolvable:$true] %s5150_s10 }
 0x18a   :  { %p7026_p9 = scmp.lt.s32.totalorder %s5151_s10, %s5151_s10 }
 0x18b   :  { %1370 = vmatpush1.bf16.msra.mxu1 %v6093_v62  ;;  %v6077_v62 = vld [vmem:[#allocation2 + $0x60] ss:$20 sps:$4 sm:$0xff]  }
 0x18c   :  { %931 = vmatpush1.bf16.msra.mxu0 %v5957_v18  ;;  %1371 = vmatprep.subr.bf16.mxu1 %v6094_v0  ;;  %v6020_v18 = vld [vmem:[#allocation5 + $0x1b4] ss:$8 sps:$4 sm:$0xff]   ;;  %v6120_v0 = vld [vmem:[#allocation7 + $0xd0] ss:$8 sps:$4 sm:$0xff]  }
 0x18d   :  { %932 = vmatprep.subr.bf16.mxu0 %v5958_v19  ;;  %v6108_v19 = vld [vmem:[#allocation7 + $0x90] ss:$8 sps:$4 sm:$0xff]  }
 0x18f   :  { %1372 = vmatpush1.bf16.msra.mxu1 %v6096_v3  ;;  %v6124_v3 = vld [vmem:[#allocation7 + $0xf4] ss:$8 sps:$4 sm:$0xff]  }
 0x190   :  { %933 = vmatpush1.bf16.msra.mxu0 %v5960_v20  ;;  %1373 = vmatprep.subr.bf16.mxu1 %v6097_v4  ;;  %v6109_v20 = vld [vmem:[#allocation7 + $0xa4] ss:$8 sps:$4 sm:$0xff]   ;;  %v6126_v4 = vld [vmem:[#allocation7 + $0xf0] ss:$8 sps:$4 sm:$0xff]  }
 0x191   :  { %934 = vmatprep.subr.bf16.mxu0 %v5961_v21  ;;  %v6018_v21 = vld [vmem:[#allocation5 + $0x1b0] ss:$8 sps:$4 sm:$0xff]  }
 0x193   :  { %1374 = vmatpush1.bf16.msra.mxu1 %v6099_v7 }
 0x194   :  { %935 = vmatpush1.bf16.msra.mxu0 %v5963_v22  ;;  %1375 = vmatprep.subr.bf16.mxu1 %v6100_v8  ;;  %v6026_v22 = vld [vmem:[#allocation5 + $0x1c4] ss:$8 sps:$4 sm:$0xff]  }
 0x195   :  { %936 = vmatprep.subr.bf16.mxu0 %v5964_v23  ;;  %v6111_v23 = vld [vmem:[#allocation7 + $0xa0] ss:$8 sps:$4 sm:$0xff]  }
 0x197   :  { %1376 = vmatpush1.bf16.msra.mxu1 %v6102_v11 }
 0x198   :  { %937 = vmatpush1.bf16.msra.mxu0 %v5966_v24  ;;  %1377 = vmatprep.subr.bf16.mxu1 %v6103_v12  ;;  %v6112_v24 = vld [vmem:[#allocation7 + $0xb4] ss:$8 sps:$4 sm:$0xff]  }
 0x199   :  { %938 = vmatprep.subr.bf16.mxu0 %v5967_v25  ;;  %v6024_v25 = vld [vmem:[#allocation5 + $0x1c0] ss:$8 sps:$4 sm:$0xff]  }
 0x19b   :  { %1378 = vmatpush1.bf16.msra.mxu1 %v6105_v15 }
 0x19c   :  { %939 = vmatpush1.bf16.msra.mxu0 %v5969_v26  ;;  %1379 = vmatprep.subr.bf16.mxu1 %v6106_v16  ;;  %v6029_v26 = vld [vmem:[#allocation5 + $0x1d4] ss:$8 sps:$4 sm:$0xff]  }
 0x19d   :  { %940 = vmatprep.subr.bf16.mxu0 %v5970_v27  ;;  %v6114_v27 = vld [vmem:[#allocation7 + $0xb0] ss:$8 sps:$4 sm:$0xff]  }
 0x19f   :  { %1380 = vmatpush1.bf16.msra.mxu1 %v6108_v19 }
 0x1a0   :  { %941 = vmatpush1.bf16.msra.mxu0 %v5972_v28  ;;  %1381 = vmatprep.subr.bf16.mxu1 %v6109_v20  ;;  %v6115_v28 = vld [vmem:[#allocation7 + $0xc4] ss:$8 sps:$4 sm:$0xff]  }
 0x1a1   :  { %942 = vmatprep.subr.bf16.mxu0 %v5973_v29  ;;  %v6027_v29 = vld [vmem:[#allocation5 + $0x1d0] ss:$8 sps:$4 sm:$0xff]  }
 0x1a3   :  { %1382 = vmatpush1.bf16.msra.mxu1 %v6111_v23 }
 0x1a4   :  { %943 = vmatpush1.bf16.msra.mxu0 %v5975_v30  ;;  %1383 = vmatprep.subr.bf16.mxu1 %v6112_v24  ;;  %v6035_v30 = vld [vmem:[#allocation5 + $0x1e4] ss:$8 sps:$4 sm:$0xff]  }
 0x1a5   :  { %944 = vmatprep.subr.bf16.mxu0 %v5976_v31  ;;  %v6117_v31 = vld [vmem:[#allocation7 + $0xc0] ss:$8 sps:$4 sm:$0xff]  }
 0x1a7   :  { %1384 = vmatpush1.bf16.msra.mxu1 %v6114_v27 }
 0x1a8   :  { %945 = vmatpush1.bf16.msra.mxu0 %v5978_v32  ;;  %v6118_v32 = vld [vmem:[#allocation7 + $0xd4] ss:$8 sps:$4 sm:$0xff]   ;;  %1385 = vmatprep.subr.bf16.mxu1 %v6115_v28  ;;  %v6127_v28 = vld [vmem:[#allocation8] ss:$8 sps:$4 sm:$0xff]  }
 0x1a9   :  { %987 = vmatprep.subr.bf16.mxu0 %v5984_v33  ;;  %v6033_v33 = vld [vmem:[#allocation5 + $0x1e0] ss:$8 sps:$4 sm:$0xff]  }
 0x1ab   :  { %947 = vmatmul.mubr.bf16.vlgmr.msra.gmra.mrb[0].mxu0 %v5979_v34  ;;  %v6038_v34 = vld [vmem:[#allocation5 + $0x1f4] ss:$8 sps:$4 sm:$0xff]   ;;  %1386 = vmatpush1.bf16.msra.mxu1 %v6117_v31 }
 0x1ac   :  { %988 = vmatpush1.bf16.msra.mxu0 %v5982_v35  ;;  %956 = vmatprep.mubr.bf16.mxu0 %v6012_v36  ;;  %v6036_v35 = vld [vmem:[#allocation5 + $0x1f0] ss:$8 sps:$4 sm:$0xff]   ;;  %v6044_v36 = vld [vmem:[#allocation5 + $0x204] ss:$8 sps:$4 sm:$0xff]   ;;  %v6132_v31 = vld [vmem:[#allocation8 + $0x14] ss:$8 sps:$4 sm:$0xff]  }
 0x1ad   :  { %989 = vmatprep.subr.bf16.mxu0 %v5987_v37  ;;  %1387 = vmatprep.subr.bf16.mxu1 %v6118_v32  ;;  %v6039_v37 = vld [vmem:[#allocation2 + $0x8] ss:$20 sps:$4 sm:$0xff]  }
 0x1af   :  { %1388 = vmatpush1.bf16.msra.mxu1 %v6120_v0 }
 0x1b0   :  { %990 = vmatpush1.bf16.msra.mxu0 %v5985_v38  ;;  %v6042_v38 = vld [vmem:[#allocation5 + $0x200] ss:$8 sps:$4 sm:$0xff]  }
 0x1b1   :  { %991 = vmatprep.subr.bf16.mxu0 %v5990_v39  ;;  %v6048_v39 = vld [vmem:[#allocation2 + $0x34] ss:$20 sps:$4 sm:$0xff]  }
 0x1b3   :  { %957 = vmatmul.mubr.bf16.gmra.mrb[4].mxu0 %v6014_v43  ;;  %v6050_v43 = vld [vmem:[#allocation2 + $0x30] ss:$20 sps:$4 sm:$0xff]  }
 0x1b4   :  { %992 = vmatpush1.bf16.msra.mxu0 %v5988_v41  ;;  %966 = vmatprep.mubr.bf16.mxu0 %v6021_v46  ;;  %v6045_v41 = vld [vmem:[#allocation5 + $0x210] ss:$8 sps:$4 sm:$0xff]   ;;  %v6056_v46 = vld [vmem:[#allocation5 + $0x234] ss:$8 sps:$4 sm:$0xff]  }
 0x1b5   :  { %993 = vmatprep.subr.bf16.mxu0 %v5993_v45  ;;  %v6057_v45 = vld [vmem:[#allocation2 + $0x5c] ss:$20 sps:$4 sm:$0xff]  }
 0x1b8   :  { %994 = vmatpush1.bf16.msra.mxu0 %v5991_v49  ;;  %v6059_v49 = vld [vmem:[#allocation2 + $0x58] ss:$20 sps:$4 sm:$0xff]  }
 0x1b9   :  { %995 = vmatprep.subr.bf16.mxu0 %v5996_v50  ;;  %v6060_v50 = vld [vmem:[#allocation5 + $0x240] ss:$8 sps:$4 sm:$0xff]  }
 0x1bb   :  { %967 = vmatmul.mubr.bf16.gmra.mrb[8].mxu0 %v6023_v54  ;;  %v6071_v54 = vld [vmem:[#allocation5 + $0x264] ss:$8 sps:$4 sm:$0xff]  }
 0x1bc   :  { %996 = vmatpush1.bf16.msra.mxu0 %v5994_v53  ;;  %976 = vmatprep.mubr.bf16.mxu0 %v6030_v56  ;;  %v6063_v53 = vld [vmem:[#allocation5 + $0x250] ss:$8 sps:$4 sm:$0xff]   ;;  %v6069_v56 = vld [vmem:[#allocation5 + $0x260] ss:$8 sps:$4 sm:$0xff]  }
 0x1bd   :  { %997 = vmatprep.subr.bf16.mxu0 %v5999_v55  ;;  %v6068_v55 = vld [vmem:[#allocation2 + $0x80] ss:$20 sps:$4 sm:$0xff]  }
 0x1c0   :  { %998 = vmatpush1.bf16.msra.mxu0 %v5997_v59  ;;  %v7082_v59 = vmov 0  }
 0x1c1   :  { %999 = vmatprep.subr.bf16.mxu0 %v6002_v60  ;;  %v6075_v60 = vld [vmem:[#allocation2 + $0x10] ss:$20 sps:$4 sm:$0xff]  }
 0x1c3   :  { %977 = vmatmul.mubr.bf16.gmra.mrb[12].mxu0 %v6032_v61  ;;  %v6076_v61 = vld [vmem:[#allocation2 + $0x38] ss:$20 sps:$4 sm:$0xff]  }
 0x1c4   :  { %1000 = vmatpush1.bf16.msra.mxu0 %v6000_v63  ;;  %1019 = vmatprep.mubr.bf16.mxu0 %v6041_v2  ;;  %v6078_v63 = vld [vmem:[#allocation2 + $0x88] ss:$20 sps:$4 sm:$0xff]  }
 0x1c5   :  { %1001 = vmatprep.subr.bf16.mxu0 %v6005_v1  ;;  %v6121_v1 = vld [vmem:[#allocation7 + $0xe4] ss:$8 sps:$4 sm:$0xff]   ;;  %v6123_v2 = vld [vmem:[#allocation7 + $0xe0] ss:$8 sps:$4 sm:$0xff]  }
 0x1c6   :  { %1389 = vmatprep.subr.bf16.mxu1 %v6121_v1  ;;  %v6139_v1 = vld [vmem:[#allocation8 + $0x40] ss:$8 sps:$4 sm:$0xff]  }
 0x1c7   :  { %1390 = vmatpush1.bf16.msra.mxu1 %v6123_v2 }
 0x1c8   :  { %1002 = vmatpush1.bf16.msra.mxu0 %v6003_v5  ;;  %1391 = vmatprep.subr.bf16.mxu1 %v6124_v3  ;;  %v6129_v5 = vld [vmem:[#allocation8 + $0x4] ss:$8 sps:$4 sm:$0xff]  }
 0x1c9   :  { %1003 = vmatprep.subr.bf16.mxu0 %v6008_v6  ;;  %v400_v6 = vlaneseq }
 0x1cb   :  { %1392 = vmatpush1.bf16.msra.mxu1 %v6126_v4  ;;  %v401_v7 = vshrl.u32 %v400_v6, 7  ;;  %v6144_v4 = vld [vmem:[#allocation8 + $0x54] ss:$8 sps:$4 sm:$0xff]  }
 0x1cc   :  { %1004 = vmatpush1.bf16.msra.mxu0 %v6006_v9  ;;  %1662 = vmatprep.subr.bf16.mxu1 %v6129_v5  ;;  %v398_v9 = vld [vmem:[%s7789_s15] sm:$0x3]  ;;  %s7021_s15 = scalar_lea.vmem %s5151_s10, 1024 }
 0x1cd   :  { %1005 = vmatprep.subr.bf16.mxu0 %v6011_v10  ;;  %v7490_v8 = vsub.s32 0, %v401_v7  ;;  %v7495_v10 = vsub.s32 1, %v401_v7  ;;  %p7022_p8 = scmp.ne.s32.totalorder %s5151_s10, %s7021_s15  ;;  %p7027_p10 = scmp.lt.s32.totalorder %s7021_s15, %s7021_s15 }
 0x1cf   :  { %v7498_v11 = vrot.slane %v398_v9, %v7490_v8  ;;  %v7501_v12 = vrot.slane %v398_v9, %v7495_v10  ;;  %p7028_p11 = por %p7027_p10, %p7026_p9 }
 0x1d0   :  { %1006 = vmatpush1.bf16.msra.mxu0 %v6009_v13 }
 0x1d1   :  { %1007 = vmatprep.subr.bf16.mxu0 %v6017_v14  ;;  %p7029_p12 = pnand %p7028_p11, %p7022_p8 }
 0x1d4   :  { %1008 = vmatpush1.bf16.msra.mxu0 %v6015_v17 }
 0x1d5   :  { %1009 = vmatprep.subr.bf16.mxu0 %v6020_v18 }
 0x1d8   :  { %1010 = vmatpush1.bf16.msra.mxu0 %v6018_v21 }
 0x1d9   :  { %1011 = vmatprep.subr.bf16.mxu0 %v6026_v22 }
 0x1dc   :  { %1012 = vmatpush1.bf16.msra.mxu0 %v6024_v25 }
 0x1dd   :  { %1013 = vmatprep.subr.bf16.mxu0 %v6029_v26 }
 0x1e0   :  { %1014 = vmatpush1.bf16.msra.mxu0 %v6027_v29 }
 0x1e1   :  { %1015 = vmatprep.subr.bf16.mxu0 %v6035_v30 }
 0x1e4   :  { %1016 = vmatpush1.bf16.msra.mxu0 %v6033_v33 }
 0x1e5   :  { %1017 = vmatprep.subr.bf16.mxu0 %v6038_v34 }
 0x1e8   :  { %1018 = vmatpush1.bf16.msra.mxu0 %v6036_v35 }
 0x1e9   :  { %1060 = vmatprep.subr.bf16.mxu0 %v6044_v36 }
 0x1eb   :  { %1020 = vmatmul.mubr.bf16.vlgmr.msra.gmra.mrb[0].mxu0 %v6039_v37  ;;  %v6130_v37 = vld [vmem:[#allocation8 + $0x10] ss:$8 sps:$4 sm:$0xff]  }
 0x1ec   :  { %1061 = vmatpush1.bf16.msra.mxu0 %v6042_v38  ;;  %1029 = vmatprep.mubr.bf16.mxu0 %v6048_v39 }
 0x1ed   :  { %1062 = vmatprep.subr.bf16.mxu0 %v6047_v40  ;;  %v6135_v40 = vld [vmem:[#allocation8 + $0x24] ss:$8 sps:$4 sm:$0xff]  }
 0x1f0   :  { %1063 = vmatpush1.bf16.msra.mxu0 %v6045_v41 }
 0x1f1   :  { %1064 = vmatprep.subr.bf16.mxu0 %v6053_v42 }
 0x1f3   :  { %1030 = vmatmul.mubr.bf16.gmra.mrb[4].mxu0 %v6050_v43 }
 0x1f4   :  { %1065 = vmatpush1.bf16.msra.mxu0 %v6051_v44  ;;  %1039 = vmatprep.mubr.bf16.mxu0 %v6057_v45 }
 0x1f5   :  { %1066 = vmatprep.subr.bf16.mxu0 %v6056_v46  ;;  %v6133_v46 = vld [vmem:[#allocation8 + $0x20] ss:$8 sps:$4 sm:$0xff]  }
 0x1f8   :  { %1067 = vmatpush1.bf16.msra.mxu0 %v6054_v47 }
 0x1f9   :  { %1068 = vmatprep.subr.bf16.mxu0 %v6062_v48 }
 0x1fb   :  { %1040 = vmatmul.mubr.bf16.gmra.mrb[8].mxu0 %v6059_v49  ;;  %v6138_v49 = vld [vmem:[#allocation8 + $0x34] ss:$8 sps:$4 sm:$0xff]  }
 0x1fc   :  { %1069 = vmatpush1.bf16.msra.mxu0 %v6060_v50  ;;  %1049 = vmatprep.mubr.bf16.mxu0 %v6066_v51 }
 0x1fd   :  { %1070 = vmatprep.subr.bf16.mxu0 %v6065_v52 }
 0x200   :  { %1071 = vmatpush1.bf16.msra.mxu0 %v6063_v53 }
 0x201   :  { %1072 = vmatprep.subr.bf16.mxu0 %v6071_v54 }
 0x203   :  { %1050 = vmatmul.mubr.bf16.gmra.mrb[12].mxu0 %v6068_v55  ;;  %v6136_v55 = vld [vmem:[#allocation8 + $0x30] ss:$8 sps:$4 sm:$0xff]  }
 0x204   :  { %1073 = vmatpush1.bf16.msra.mxu0 %v6069_v56  ;;  %1092 = vmatprep.mubr.bf16.mxu0 %v7082_v59 }
 0x205   :  { %1074 = vmatprep.subr.bf16.mxu0 %v6074_v57 }
 0x208   :  { %1075 = vmatpush1.bf16.msra.mxu0 %v6072_v58  ;;  %v6141_v58 = vld [vmem:[#allocation8 + $0x44] ss:$8 sps:$4 sm:$0xff]  }
 0x20b   :  { %1093 = vmatmul.mubr.bf16.vlgmr.msra.gmra.mrb[0].mxu0 %v6075_v60 }
 0x20c   :  { %1102 = vmatprep.mubr.bf16.mxu0 %v7082_v59 }
 0x213   :  { %1103 = vmatmul.mubr.bf16.gmra.mrb[4].mxu0 %v6076_v61 }
 0x214   :  { %1112 = vmatprep.mubr.bf16.mxu0 %v7082_v59 }
 0x21b   :  { %1113 = vmatmul.mubr.bf16.gmra.mrb[8].mxu0 %v6077_v62 }
 0x21c   :  { %1122 = vmatprep.mubr.bf16.mxu0 %v7082_v59 }
 0x223   :  { %1123 = vmatmul.mubr.bf16.gmra.mrb[12].mxu0 %v6078_v63 }
 0x2de   :  { %v1094_v13 = vpop.f32.mrb[0].mxu0 }
 0x2df   :  { %v5812_v14 = vadd.f32 %v1094_v13, %v7498_v11  ;;  %v1096_v15 = vpop.f32.mrb[1].mxu0 }
 0x2e0   :  { %v5813_v16 = vadd.f32 %v1096_v15, %v7501_v12  ;;  %v1098_v17 = vpop.f32.mrb[2].mxu0 }
 0x2e1   :  { %v5814_v18 = vadd.f32 %v1098_v17, %v7498_v11  ;;  %v1100_v19 = vpop.f32.mrb[3].mxu0  ;;  %v1133_v21 = vmax.f32 %v5812_v14, 0.0  ;;  %v6142_v14 = vld [vmem:[#allocation8 + $0x50] ss:$8 sps:$4 sm:$0xff]   ;;  %v6147_v17 = vld [vmem:[#allocation8 + $0x64] ss:$8 sps:$4 sm:$0xff]  }
 0x2e2   :  { %v5815_v20 = vadd.f32 %v1100_v19, %v7501_v12  ;;  %v1134_v23 = vmax.f32 %v5813_v16, 0.0 }
 0x2e3   :  { %v1135_v22 = vmax.f32 %v5814_v18, 0.0 }
 0x2e4   :  { %v1136_v24 = vmax.f32 %v5815_v20, 0.0 }
 0x2e5   :  { %v1149_v25 = vpack.c.bf16 %v1135_v22, %v1133_v21  ;;  %v6145_v22 = vld [vmem:[#allocation8 + $0x60] ss:$8 sps:$4 sm:$0xff]  }
 0x2e6   :  { %v1104_v26 = vpop.f32.mrb[4].mxu0  ;;  %v1150_v27 = vpack.c.bf16 %v1136_v24, %v1134_v23  ;;  %v6150_v23 = vld [vmem:[#allocation8 + $0x74] ss:$8 sps:$4 sm:$0xff]   ;;  %v6151_v24 = vld [vmem:[#allocation8 + $0x80] ss:$8 sps:$4 sm:$0xff]  }
 0x2e7   :  { %v5816_v29 = vadd.f32 %v1104_v26, %v7498_v11  ;;  %v1106_v30 = vpop.f32.mrb[5].mxu0  ;;  %v6154_v26 = vld [vmem:[#allocation8 + $0x90] ss:$8 sps:$4 sm:$0xff]  }
 0x2e8   :  { %v5817_v32 = vadd.f32 %v1106_v30, %v7501_v12  ;;  %v1108_v33 = vpop.f32.mrb[6].mxu0  ;;  %1393 = vmatprep.mubr.bf16.mxu1 %v1150_v27  ;;  %v6159_v27 = vld [vmem:[#allocation8 + $0xa4] ss:$8 sps:$4 sm:$0xff]   ;;  %v6160_v30 = vld [vmem:[#allocation8 + $0xb0] ss:$8 sps:$4 sm:$0xff]  }
 0x2e9   :  { %v5818_v34 = vadd.f32 %v1108_v33, %v7498_v11  ;;  %v1110_v35 = vpop.f32.mrb[7].mxu0  ;;  %1394 = vmatmul.mubr.bf16.vlgmr.msra.gmra.mrb[0].mxu1 %v1149_v25  ;;  %v1137_v38 = vmax.f32 %v5816_v29, 0.0  ;;  %v6156_v25 = vld [vmem:[#allocation8 + $0x94] ss:$8 sps:$4 sm:$0xff]  }
 0x2ea   :  { %v5819_v36 = vadd.f32 %v1110_v35, %v7501_v12  ;;  %1663 = vmatpush1.bf16.msra.mxu1 %v6127_v28  ;;  %v1138_v41 = vmax.f32 %v5817_v32, 0.0  ;;  %v6157_v28 = vld [vmem:[#allocation8 + $0xa0] ss:$8 sps:$4 sm:$0xff]   ;;  %v6162_v29 = vld [vmem:[#allocation8 + $0xb4] ss:$8 sps:$4 sm:$0xff]  }
 0x2eb   :  { %v1139_v39 = vmax.f32 %v5818_v34, 0.0  ;;  %1664 = vmatprep.subr.bf16.mxu1 %v6132_v31  ;;  %v6165_v31 = vld [vmem:[#allocation8 + $0xc4] ss:$8 sps:$4 sm:$0xff]   ;;  %v6163_v32 = vld [vmem:[#allocation8 + $0xc0] ss:$8 sps:$4 sm:$0xff]  }
 0x2ec   :  { %v1140_v42 = vmax.f32 %v5819_v36, 0.0  ;;  %v6168_v33 = vld [vmem:[#allocation8 + $0xd4] ss:$8 sps:$4 sm:$0xff]   ;;  %v6166_v34 = vld [vmem:[#allocation8 + $0xd0] ss:$8 sps:$4 sm:$0xff]  }
 0x2ed   :  { %v1151_v43 = vpack.c.bf16 %v1139_v39, %v1137_v38  ;;  %v6171_v35 = vld [vmem:[#allocation8 + $0xe4] ss:$8 sps:$4 sm:$0xff]   ;;  %v6169_v36 = vld [vmem:[#allocation8 + $0xe0] ss:$8 sps:$4 sm:$0xff]   ;;  %v6172_v38 = vld [vmem:[#allocation8 + $0xf0] ss:$8 sps:$4 sm:$0xff]  }
 0x2ee   :  { %v1152_v44 = vpack.c.bf16 %v1140_v42, %v1138_v41  ;;  %v1114_v45 = vpop.f32.mrb[8].mxu0  ;;  %1665 = vmatpush1.bf16.msra.mxu1 %v6130_v37  ;;  %v6174_v37 = vld [vmem:[#allocation8 + $0xf4] ss:$8 sps:$4 sm:$0xff]   ;;  %v6177_v39 = vld [vmem:[#allocation10 + $0x4] ss:$8 sps:$4 sm:$0xff]  }
 0x2ef   :  { %v5820_v47 = vadd.f32 %v1114_v45, %v7498_v11  ;;  %v1116_v48 = vpop.f32.mrb[9].mxu0  ;;  %1666 = vmatprep.subr.bf16.mxu1 %v6135_v40  ;;  %v1189_v40 = vld [vmem:[%s7790_s16] sm:$0x3] }
 0x2f0   :  { %v5821_v50 = vadd.f32 %v1116_v48, %v7501_v12  ;;  %v1118_v51 = vpop.f32.mrb[10].mxu0  ;;  %1403 = vmatprep.mubr.bf16.mxu1 %v1152_v44  ;;  %v7523_v41 = vrot.slane %v1189_v40, %v7490_v8  ;;  %v7526_v42 = vrot.slane %v1189_v40, %v7495_v10 }
 0x2f1   :  { %v5822_v52 = vadd.f32 %v1118_v51, %v7498_v11  ;;  %v1120_v53 = vpop.f32.mrb[11].mxu0  ;;  %1404 = vmatmul.mubr.bf16.gmra.mrb[4].mxu1 %v1151_v43  ;;  %v1141_v56 = vmax.f32 %v5820_v47, 0.0 }
 0x2f2   :  { %v5823_v54 = vadd.f32 %v1120_v53, %v7501_v12  ;;  %1667 = vmatpush1.bf16.msra.mxu1 %v6133_v46  ;;  %v1142_v60 = vmax.f32 %v5821_v50, 0.0 }
 0x2f3   :  { %v1143_v57 = vmax.f32 %v5822_v52, 0.0  ;;  %1668 = vmatprep.subr.bf16.mxu1 %v6138_v49 }
 0x2f4   :  { %v1144_v61 = vmax.f32 %v5823_v54, 0.0 }
 0x2f5   :  { %v1153_v62 = vpack.c.bf16 %v1143_v57, %v1141_v56 }
 0x2f6   :  { %v1154_v63 = vpack.c.bf16 %v1144_v61, %v1142_v60  ;;  %v1124_v0 = vpop.f32.mrb[12].mxu0  ;;  %1669 = vmatpush1.bf16.msra.mxu1 %v6136_v55 }
 0x2f7   :  { %v5824_v2 = vadd.f32 %v1124_v0, %v7498_v11  ;;  %v1126_v3 = vpop.f32.mrb[13].mxu0  ;;  %1670 = vmatprep.subr.bf16.mxu1 %v6141_v58  ;;  %v6175_v58 = vld [vmem:[#allocation10] ss:$8 sps:$4 sm:$0xff]  }
 0x2f8   :  { %v5825_v5 = vadd.f32 %v1126_v3, %v7501_v12  ;;  %v1128_v6 = vpop.f32.mrb[14].mxu0  ;;  %1413 = vmatprep.mubr.bf16.mxu1 %v1154_v63 }
 0x2f9   :  { %v5826_v7 = vadd.f32 %v1128_v6, %v7498_v11  ;;  %v1130_v9 = vpop.f32.mrb[15].mxu0  ;;  %1414 = vmatmul.mubr.bf16.gmra.mrb[8].mxu1 %v1153_v62  ;;  %v1145_v15 = vmax.f32 %v5824_v2, 0.0  ;;  %v6148_v11 = vld [vmem:[#allocation8 + $0x70] ss:$8 sps:$4 sm:$0xff]   ;;  %v6180_v62 = vld [vmem:[#allocation10 + $0x14] ss:$8 sps:$4 sm:$0xff]  }
 0x2fa   :  { %v5827_v13 = vadd.f32 %v1130_v9, %v7501_v12  ;;  %1671 = vmatpush1.bf16.msra.mxu1 %v6139_v1  ;;  %v1146_v18 = vmax.f32 %v5825_v5, 0.0  ;;  %v6153_v12 = vld [vmem:[#allocation8 + $0x84] ss:$8 sps:$4 sm:$0xff]  }
 0x2fb   :  { %v1147_v16 = vmax.f32 %v5826_v7, 0.0  ;;  %1672 = vmatprep.subr.bf16.mxu1 %v6144_v4  ;;  %v6178_v4 = vld [vmem:[#allocation10 + $0x10] ss:$8 sps:$4 sm:$0xff]   ;;  %v6183_v7 = vld [vmem:[#allocation10 + $0x24] ss:$8 sps:$4 sm:$0xff]  }
 0x2fc   :  { %v1148_v19 = vmax.f32 %v5827_v13, 0.0 }
 0x2fd   :  { %v1155_v20 = vpack.c.bf16 %v1147_v16, %v1145_v15 }
 0x2fe   :  { %v1156_v21 = vpack.c.bf16 %v1148_v19, %v1146_v18  ;;  %1673 = vmatpush1.bf16.msra.mxu1 %v6142_v14 }
 0x2ff   :  { %1674 = vmatprep.subr.bf16.mxu1 %v6147_v17  ;;  %v6181_v17 = vld [vmem:[#allocation10 + $0x20] ss:$8 sps:$4 sm:$0xff]  }
 0x300   :  { %1423 = vmatprep.mubr.bf16.mxu1 %v1156_v21 }
 0x301   :  { %1424 = vmatmul.mubr.bf16.gmra.mrb[12].mxu1 %v1155_v20  ;;  %v6186_v20 = vld [vmem:[#allocation10 + $0x34] ss:$8 sps:$4 sm:$0xff]  }
 0x302   :  { %1675 = vmatpush1.bf16.msra.mxu1 %v6145_v22 }
 0x303   :  { %1676 = vmatprep.subr.bf16.mxu1 %v6150_v23 }
 0x306   :  { %1677 = vmatpush1.bf16.msra.mxu1 %v6148_v11 }
 0x307   :  { %1678 = vmatprep.subr.bf16.mxu1 %v6153_v12 }
 0x30a   :  { %1679 = vmatpush1.bf16.msra.mxu1 %v6151_v24  ;;  %v6184_v24 = vld [vmem:[#allocation10 + $0x30] ss:$8 sps:$4 sm:$0xff]  }
 0x30b   :  { %1680 = vmatprep.subr.bf16.mxu1 %v6156_v25 }
 0x30e   :  { %1681 = vmatpush1.bf16.msra.mxu1 %v6154_v26 }
 0x30f   :  { %1682 = vmatprep.subr.bf16.mxu1 %v6159_v27  ;;  %v6189_v27 = vld [vmem:[#allocation10 + $0x44] ss:$8 sps:$4 sm:$0xff]  }
 0x312   :  { %1683 = vmatpush1.bf16.msra.mxu1 %v6157_v28 }
 0x313   :  { %1684 = vmatprep.subr.bf16.mxu1 %v6162_v29 }
 0x316   :  { %1685 = vmatpush1.bf16.msra.mxu1 %v6160_v30 }
 0x317   :  { %1686 = vmatprep.subr.bf16.mxu1 %v6165_v31 }
 0x31a   :  { %1687 = vmatpush1.bf16.msra.mxu1 %v6163_v32 }
 0x31b   :  { %1688 = vmatprep.subr.bf16.mxu1 %v6168_v33  ;;  %v6187_v33 = vld [vmem:[#allocation10 + $0x40] ss:$8 sps:$4 sm:$0xff]  }
 0x31e   :  { %1689 = vmatpush1.bf16.msra.mxu1 %v6166_v34 }
 0x31f   :  { %1690 = vmatprep.subr.bf16.mxu1 %v6171_v35 }
 0x322   :  { %1691 = vmatpush1.bf16.msra.mxu1 %v6169_v36  ;;  %v6192_v36 = vld [vmem:[#allocation10 + $0x54] ss:$8 sps:$4 sm:$0xff]  }
 0x323   :  { %1692 = vmatprep.subr.bf16.mxu1 %v6174_v37 }
 0x326   :  { %1693 = vmatpush1.bf16.msra.mxu1 %v6172_v38 }
 0x327   :  { %1963 = vmatprep.subr.bf16.mxu1 %v6177_v39 }
 0x3bc   :  { %v1395_v43 = vpop.f32.mrb[0].mxu1 }
 0x3bd   :  { %v1396_v44 = vadd.f32 %v1395_v43, %v7523_v41  ;;  %v1397_v45 = vpop.f32.mrb[1].mxu1 }
 0x3be   :  { %v1398_v46 = vadd.f32 %v1397_v45, %v7526_v42  ;;  %v1399_v47 = vpop.f32.mrb[2].mxu1 }
 0x3bf   :  { %v1400_v48 = vadd.f32 %v1399_v47, %v7523_v41  ;;  %v1401_v49 = vpop.f32.mrb[3].mxu1  ;;  %v1434_v51 = vmax.f32 %v1396_v44, 0.0  ;;  %v6190_v44 = vld [vmem:[#allocation10 + $0x50] ss:$8 sps:$4 sm:$0xff]   ;;  %v6195_v47 = vld [vmem:[#allocation10 + $0x64] ss:$8 sps:$4 sm:$0xff]  }
 0x3c0   :  { %v1402_v50 = vadd.f32 %v1401_v49, %v7526_v42  ;;  %v1435_v53 = vmax.f32 %v1398_v46, 0.0 }
 0x3c1   :  { %v1436_v52 = vmax.f32 %v1400_v48, 0.0 }
 0x3c2   :  { %v1437_v54 = vmax.f32 %v1402_v50, 0.0 }
 0x3c3   :  { %v1450_v55 = vpack.c.bf16 %v1436_v52, %v1434_v51  ;;  %v6193_v52 = vld [vmem:[#allocation10 + $0x60] ss:$8 sps:$4 sm:$0xff]  }
 0x3c4   :  { %v1451_v56 = vpack.c.bf16 %v1437_v54, %v1435_v53  ;;  %v1405_v57 = vpop.f32.mrb[4].mxu1  ;;  %v6198_v53 = vld [vmem:[#allocation10 + $0x74] ss:$8 sps:$4 sm:$0xff]   ;;  %v6199_v54 = vld [vmem:[#allocation10 + $0x80] ss:$8 sps:$4 sm:$0xff]  }
 0x3c5   :  { %v1406_v60 = vadd.f32 %v1405_v57, %v7523_v41  ;;  %v1407_v61 = vpop.f32.mrb[5].mxu1  ;;  %v6207_v57 = vld [vmem:[#allocation10 + $0xa4] ss:$8 sps:$4 sm:$0xff]  }
 0x3c6   :  { %v1408_v63 = vadd.f32 %v1407_v61, %v7526_v42  ;;  %v1409_v0 = vpop.f32.mrb[6].mxu1  ;;  %1694 = vmatprep.mubr.bf16.mxu1 %v1451_v56  ;;  %v6202_v56 = vld [vmem:[#allocation10 + $0x90] ss:$8 sps:$4 sm:$0xff]  }
 0x3c7   :  { %v1410_v1 = vadd.f32 %v1409_v0, %v7523_v41  ;;  %v1411_v2 = vpop.f32.mrb[7].mxu1  ;;  %1695 = vmatmul.mubr.bf16.vlgmr.msra.gmra.mrb[16].mxu1 %v1450_v55  ;;  %v1438_v5 = vmax.f32 %v1406_v60, 0.0  ;;  %v6204_v55 = vld [vmem:[#allocation10 + $0x94] ss:$8 sps:$4 sm:$0xff]   ;;  %v6208_v61 = vld [vmem:[#allocation10 + $0xb0] ss:$8 sps:$4 sm:$0xff]  }
 0x3c8   :  { %v1412_v3 = vadd.f32 %v1411_v2, %v7526_v42  ;;  %1964 = vmatpush1.bf16.msra.mxu1 %v6175_v58  ;;  %v1439_v9 = vmax.f32 %v1408_v63, 0.0  ;;  %v6205_v58 = vld [vmem:[#allocation10 + $0xa0] ss:$8 sps:$4 sm:$0xff]   ;;  %v6210_v60 = vld [vmem:[#allocation10 + $0xb4] ss:$8 sps:$4 sm:$0xff]  }
 0x3c9   :  { %v1440_v6 = vmax.f32 %v1410_v1, 0.0  ;;  %1965 = vmatprep.subr.bf16.mxu1 %v6180_v62  ;;  %v6213_v62 = vld [vmem:[#allocation10 + $0xc4] ss:$8 sps:$4 sm:$0xff]   ;;  %v6211_v63 = vld [vmem:[#allocation10 + $0xc0] ss:$8 sps:$4 sm:$0xff]  }
 0x3ca   :  { %v1441_v13 = vmax.f32 %v1412_v3, 0.0  ;;  %v6216_v0 = vld [vmem:[#allocation10 + $0xd4] ss:$8 sps:$4 sm:$0xff]   ;;  %v6214_v1 = vld [vmem:[#allocation10 + $0xd0] ss:$8 sps:$4 sm:$0xff]  }
 0x3cb   :  { %v1452_v14 = vpack.c.bf16 %v1440_v6, %v1438_v5  ;;  %v6219_v2 = vld [vmem:[#allocation10 + $0xe4] ss:$8 sps:$4 sm:$0xff]   ;;  %v6217_v3 = vld [vmem:[#allocation10 + $0xe0] ss:$8 sps:$4 sm:$0xff]   ;;  %v6220_v5 = vld [vmem:[#allocation10 + $0xf0] ss:$8 sps:$4 sm:$0xff]  }
 0x3cc   :  { %v1453_v15 = vpack.c.bf16 %v1441_v13, %v1439_v9  ;;  %v1415_v16 = vpop.f32.mrb[8].mxu1  ;;  %1966 = vmatpush1.bf16.msra.mxu1 %v6178_v4  ;;  %v6222_v4 = vld [vmem:[#allocation10 + $0xf4] ss:$8 sps:$4 sm:$0xff]   ;;  %v6223_v6 = vld [vmem:[#allocation11] ss:$8 sps:$4 sm:$0xff]  }
 0x3cd   :  { %v1416_v18 = vadd.f32 %v1415_v16, %v7523_v41  ;;  %v1417_v19 = vpop.f32.mrb[9].mxu1  ;;  %1967 = vmatprep.subr.bf16.mxu1 %v6183_v7  ;;  %v6225_v7 = vld [vmem:[#allocation11 + $0x4] ss:$8 sps:$4 sm:$0xff]   ;;  %v6228_v9 = vld [vmem:[#allocation11 + $0x14] ss:$8 sps:$4 sm:$0xff]  }
 0x3ce   :  { %v1418_v21 = vadd.f32 %v1417_v19, %v7526_v42  ;;  %v1419_v22 = vpop.f32.mrb[10].mxu1  ;;  %1704 = vmatprep.mubr.bf16.mxu1 %v1453_v15  ;;  %2264 = vmatprep.subr.bf16.mxu0 %v6225_v7  ;;  %v6226_v13 = vld [vmem:[#allocation11 + $0x10] ss:$8 sps:$4 sm:$0xff]   ;;  %v6229_v15 = vld [vmem:[#allocation11 + $0x20] ss:$8 sps:$4 sm:$0xff]  }
 0x3cf   :  { %v1420_v23 = vadd.f32 %v1419_v22, %v7523_v41  ;;  %v1421_v11 = vpop.f32.mrb[11].mxu1  ;;  %1705 = vmatmul.mubr.bf16.gmra.mrb[20].mxu1 %v1452_v14  ;;  %v1442_v25 = vmax.f32 %v1416_v18, 0.0  ;;  %2265 = vmatpush1.bf16.msra.mxu0 %v6223_v6  ;;  %v6231_v14 = vld [vmem:[#allocation11 + $0x24] ss:$8 sps:$4 sm:$0xff]   ;;  %v6234_v16 = vld [vmem:[#allocation11 + $0x34] ss:$8 sps:$4 sm:$0xff]  }
 0x3d0   :  { %v1422_v12 = vadd.f32 %v1421_v11, %v7526_v42  ;;  %1968 = vmatpush1.bf16.msra.mxu1 %v6181_v17  ;;  %v1443_v28 = vmax.f32 %v1418_v21, 0.0  ;;  %2266 = vmatprep.subr.bf16.mxu0 %v6228_v9  ;;  %v6232_v17 = vld [vmem:[#allocation11 + $0x30] ss:$8 sps:$4 sm:$0xff]   ;;  %v6237_v18 = vld [vmem:[#allocation11 + $0x44] ss:$8 sps:$4 sm:$0xff]  }
 0x3d1   :  { %v1444_v26 = vmax.f32 %v1420_v23, 0.0  ;;  %1969 = vmatprep.subr.bf16.mxu1 %v6186_v20  ;;  %v6235_v19 = vld [vmem:[#allocation11 + $0x40] ss:$8 sps:$4 sm:$0xff]   ;;  %v6240_v20 = vld [vmem:[#allocation11 + $0x54] ss:$8 sps:$4 sm:$0xff]  }
 0x3d2   :  { %v1445_v29 = vmax.f32 %v1422_v12, 0.0  ;;  %v6238_v21 = vld [vmem:[#allocation11 + $0x50] ss:$8 sps:$4 sm:$0xff]   ;;  %v6243_v22 = vld [vmem:[#allocation11 + $0x64] ss:$8 sps:$4 sm:$0xff]  }
 0x3d3   :  { %v1454_v30 = vpack.c.bf16 %v1444_v26, %v1442_v25  ;;  %2267 = vmatpush1.bf16.msra.mxu0 %v6226_v13  ;;  %v6241_v23 = vld [vmem:[#allocation11 + $0x60] ss:$8 sps:$4 sm:$0xff]   ;;  %v6246_v11 = vld [vmem:[#allocation11 + $0x74] ss:$8 sps:$4 sm:$0xff]   ;;  %v6244_v12 = vld [vmem:[#allocation11 + $0x70] ss:$8 sps:$4 sm:$0xff]  }
 0x3d4   :  { %v1455_v31 = vpack.c.bf16 %v1445_v29, %v1443_v28  ;;  %v1425_v32 = vpop.f32.mrb[12].mxu1  ;;  %1970 = vmatpush1.bf16.msra.mxu1 %v6184_v24  ;;  %2268 = vmatprep.subr.bf16.mxu0 %v6231_v14  ;;  %v6249_v24 = vld [vmem:[#allocation11 + $0x84] ss:$8 sps:$4 sm:$0xff]   ;;  %v6247_v25 = vld [vmem:[#allocation11 + $0x80] ss:$8 sps:$4 sm:$0xff]  }
 0x3d5   :  { %v1426_v34 = vadd.f32 %v1425_v32, %v7523_v41  ;;  %v1427_v35 = vpop.f32.mrb[13].mxu1  ;;  %1971 = vmatprep.subr.bf16.mxu1 %v6189_v27  ;;  %v6252_v26 = vld [vmem:[#allocation11 + $0x94] ss:$8 sps:$4 sm:$0xff]   ;;  %v6250_v27 = vld [vmem:[#allocation11 + $0x90] ss:$8 sps:$4 sm:$0xff]  }
 0x3d6   :  { %v1428_v37 = vadd.f32 %v1427_v35, %v7526_v42  ;;  %v1429_v38 = vpop.f32.mrb[14].mxu1  ;;  %1714 = vmatprep.mubr.bf16.mxu1 %v1455_v31  ;;  %v6255_v28 = vld [vmem:[#allocation11 + $0xa4] ss:$8 sps:$4 sm:$0xff]   ;;  %v6253_v29 = vld [vmem:[#allocation11 + $0xa0] ss:$8 sps:$4 sm:$0xff]  }
 0x3d7   :  { %v1430_v39 = vadd.f32 %v1429_v38, %v7523_v41  ;;  %v1431_v40 = vpop.f32.mrb[15].mxu1  ;;  %1715 = vmatmul.mubr.bf16.gmra.mrb[24].mxu1 %v1454_v30  ;;  %v1446_v45 = vmax.f32 %v1426_v34, 0.0  ;;  %v6196_v41 = vld [vmem:[#allocation10 + $0x70] ss:$8 sps:$4 sm:$0xff]   ;;  %2269 = vmatpush1.bf16.msra.mxu0 %v6229_v15  ;;  %v6258_v30 = vld [vmem:[#allocation11 + $0xb4] ss:$8 sps:$4 sm:$0xff]  }
 0x3d8   :  { %v1432_v43 = vadd.f32 %v1431_v40, %v7526_v42  ;;  %1972 = vmatpush1.bf16.msra.mxu1 %v6187_v33  ;;  %v1447_v48 = vmax.f32 %v1428_v37, 0.0  ;;  %v6201_v42 = vld [vmem:[#allocation10 + $0x84] ss:$8 sps:$4 sm:$0xff]   ;;  %2270 = vmatprep.subr.bf16.mxu0 %v6234_v16  ;;  %v6256_v31 = vld [vmem:[#allocation11 + $0xb0] ss:$8 sps:$4 sm:$0xff]  }
 0x3d9   :  { %v1448_v46 = vmax.f32 %v1430_v39, 0.0  ;;  %1973 = vmatprep.subr.bf16.mxu1 %v6192_v36  ;;  %v6261_v32 = vld [vmem:[#allocation11 + $0xc4] ss:$8 sps:$4 sm:$0xff]   ;;  %v6259_v33 = vld [vmem:[#allocation11 + $0xc0] ss:$8 sps:$4 sm:$0xff]  }
 0x3da   :  { %v1449_v49 = vmax.f32 %v1432_v43, 0.0  ;;  %v6264_v34 = vld [vmem:[#allocation11 + $0xd4] ss:$8 sps:$4 sm:$0xff]   ;;  %v6262_v35 = vld [vmem:[#allocation11 + $0xd0] ss:$8 sps:$4 sm:$0xff]  }
 0x3db   :  { %v1456_v50 = vpack.c.bf16 %v1448_v46, %v1446_v45  ;;  %2271 = vmatpush1.bf16.msra.mxu0 %v6232_v17  ;;  %v1490_v36 = vld [vmem:[%s7791_s17] sm:$0x3] }
 0x3dc   :  { %v1457_v51 = vpack.c.bf16 %v1449_v49, %v1447_v48  ;;  %1974 = vmatpush1.bf16.msra.mxu1 %v6190_v44  ;;  %2272 = vmatprep.subr.bf16.mxu0 %v6237_v18  ;;  %v1495_v37 = vrot.slane %v1490_v36, %v7490_v8  ;;  %v1499_v38 = vrot.slane %v1490_v36, %v7495_v10  ;;  %v6270_v36 = vld [vmem:[#allocation11 + $0xf4] ss:$8 sps:$4 sm:$0xff]  }
 0x3dd   :  { %1975 = vmatprep.subr.bf16.mxu1 %v6195_v47 }
 0x3de   :  { %1724 = vmatprep.mubr.bf16.mxu1 %v1457_v51 }
 0x3df   :  { %1725 = vmatmul.mubr.bf16.gmra.mrb[28].mxu1 %v1456_v50  ;;  %2273 = vmatpush1.bf16.msra.mxu0 %v6235_v19 }
 0x3e0   :  { %1976 = vmatpush1.bf16.msra.mxu1 %v6193_v52  ;;  %2274 = vmatprep.subr.bf16.mxu0 %v6240_v20 }
 0x3e1   :  { %1977 = vmatprep.subr.bf16.mxu1 %v6198_v53 }
 0x3e3   :  { %2275 = vmatpush1.bf16.msra.mxu0 %v6238_v21 }
 0x3e4   :  { %1978 = vmatpush1.bf16.msra.mxu1 %v6196_v41  ;;  %2276 = vmatprep.subr.bf16.mxu0 %v6243_v22 }
 0x3e5   :  { %1979 = vmatprep.subr.bf16.mxu1 %v6201_v42 }
 0x3e7   :  { %2277 = vmatpush1.bf16.msra.mxu0 %v6241_v23 }
 0x3e8   :  { %1980 = vmatpush1.bf16.msra.mxu1 %v6199_v54  ;;  %2278 = vmatprep.subr.bf16.mxu0 %v6246_v11 }
 0x3e9   :  { %1981 = vmatprep.subr.bf16.mxu1 %v6204_v55 }
 0x3eb   :  { %2279 = vmatpush1.bf16.msra.mxu0 %v6244_v12 }
 0x3ec   :  { %1982 = vmatpush1.bf16.msra.mxu1 %v6202_v56  ;;  %2280 = vmatprep.subr.bf16.mxu0 %v6249_v24 }
 0x3ed   :  { %1983 = vmatprep.subr.bf16.mxu1 %v6207_v57 }
 0x3ef   :  { %2281 = vmatpush1.bf16.msra.mxu0 %v6247_v25 }
 0x3f0   :  { %1984 = vmatpush1.bf16.msra.mxu1 %v6205_v58  ;;  %2282 = vmatprep.subr.bf16.mxu0 %v6252_v26 }
 0x3f1   :  { %1985 = vmatprep.subr.bf16.mxu1 %v6210_v60 }
 0x3f3   :  { %2283 = vmatpush1.bf16.msra.mxu0 %v6250_v27 }
 0x3f4   :  { %1986 = vmatpush1.bf16.msra.mxu1 %v6208_v61  ;;  %2284 = vmatprep.subr.bf16.mxu0 %v6255_v28 }
 0x3f5   :  { %1987 = vmatprep.subr.bf16.mxu1 %v6213_v62 }
 0x3f7   :  { %2285 = vmatpush1.bf16.msra.mxu0 %v6253_v29 }
 0x3f8   :  { %1988 = vmatpush1.bf16.msra.mxu1 %v6211_v63  ;;  %2286 = vmatprep.subr.bf16.mxu0 %v6258_v30 }
 0x3f9   :  { %1989 = vmatprep.subr.bf16.mxu1 %v6216_v0 }
 0x3fb   :  { %2287 = vmatpush1.bf16.msra.mxu0 %v6256_v31 }
 0x3fc   :  { %1990 = vmatpush1.bf16.msra.mxu1 %v6214_v1  ;;  %2288 = vmatprep.subr.bf16.mxu0 %v6261_v32 }
 0x3fd   :  { %1991 = vmatprep.subr.bf16.mxu1 %v6219_v2 }
 0x3ff   :  { %2289 = vmatpush1.bf16.msra.mxu0 %v6259_v33 }
 0x400   :  { %1992 = vmatpush1.bf16.msra.mxu1 %v6217_v3  ;;  %2290 = vmatprep.subr.bf16.mxu0 %v6264_v34  ;;  %v6267_v34 = vld [vmem:[#allocation11 + $0xe4] ss:$8 sps:$4 sm:$0xff]  }
 0x401   :  { %1993 = vmatprep.subr.bf16.mxu1 %v6222_v4 }
 0x403   :  { %2291 = vmatpush1.bf16.msra.mxu0 %v6262_v35  ;;  %v6265_v35 = vld [vmem:[#allocation11 + $0xe0] ss:$8 sps:$4 sm:$0xff]  }
 0x404   :  { %1994 = vmatpush1.bf16.msra.mxu1 %v6220_v5  ;;  %2292 = vmatprep.subr.bf16.mxu0 %v6267_v34 }
 0x407   :  { %2293 = vmatpush1.bf16.msra.mxu0 %v6265_v35 }
 0x408   :  { %2294 = vmatprep.subr.bf16.mxu0 %v6270_v36 }
 0x49a   :  { %v1696_v39 = vpop.f32.mrb[16].mxu1 }
 0x49b   :  { %v1697_v40 = vadd.f32 %v1696_v39, %v1495_v37  ;;  %v1698_v43 = vpop.f32.mrb[17].mxu1  ;;  %v6268_v39 = vld [vmem:[#allocation11 + $0xf0] ss:$8 sps:$4 sm:$0xff]  }
 0x49c   :  { %v1699_v44 = vadd.f32 %v1698_v43, %v1499_v38  ;;  %v1700_v45 = vpop.f32.mrb[18].mxu1  ;;  %2295 = vmatpush1.bf16.msra.mxu0 %v6268_v39  ;;  %v6276_v43 = vld [vmem:[#allocation13 + $0x14] ss:$8 sps:$4 sm:$0xff]  }
 0x49d   :  { %v1701_v46 = vadd.f32 %v1700_v45, %v1495_v37  ;;  %v1702_v47 = vpop.f32.mrb[19].mxu1  ;;  %v1735_v49 = vmax.f32 %v1697_v40, 0.0  ;;  %v6273_v40 = vld [vmem:[#allocation13 + $0x4] ss:$8 sps:$4 sm:$0xff]   ;;  %v6277_v45 = vld [vmem:[#allocation13 + $0x20] ss:$8 sps:$4 sm:$0xff]  }
 0x49e   :  { %v1703_v48 = vadd.f32 %v1702_v47, %v1499_v38  ;;  %v1736_v51 = vmax.f32 %v1699_v44, 0.0  ;;  %2565 = vmatprep.subr.bf16.mxu1 %v6273_v40  ;;  %v6279_v44 = vld [vmem:[#allocation13 + $0x24] ss:$8 sps:$4 sm:$0xff]   ;;  %v6280_v47 = vld [vmem:[#allocation13 + $0x30] ss:$8 sps:$4 sm:$0xff]  }
 0x49f   :  { %v1737_v50 = vmax.f32 %v1701_v46, 0.0  ;;  %v6282_v46 = vld [vmem:[#allocation13 + $0x34] ss:$8 sps:$4 sm:$0xff]  }
 0x4a0   :  { %v1738_v52 = vmax.f32 %v1703_v48, 0.0  ;;  %v6285_v48 = vld [vmem:[#allocation13 + $0x44] ss:$8 sps:$4 sm:$0xff]  }
 0x4a1   :  { %v1751_v53 = vpack.c.bf16 %v1737_v50, %v1735_v49  ;;  %v6283_v49 = vld [vmem:[#allocation13 + $0x40] ss:$8 sps:$4 sm:$0xff]   ;;  %v6288_v50 = vld [vmem:[#allocation13 + $0x54] ss:$8 sps:$4 sm:$0xff]  }
 0x4a2   :  { %v1752_v41 = vpack.c.bf16 %v1738_v52, %v1736_v51  ;;  %v1706_v42 = vpop.f32.mrb[20].mxu1  ;;  %v6286_v51 = vld [vmem:[#allocation13 + $0x50] ss:$8 sps:$4 sm:$0xff]   ;;  %v6291_v52 = vld [vmem:[#allocation13 + $0x64] ss:$8 sps:$4 sm:$0xff]  }
 0x4a3   :  { %v1707_v54 = vadd.f32 %v1706_v42, %v1495_v37  ;;  %v1708_v55 = vpop.f32.mrb[21].mxu1  ;;  %v6292_v42 = vld [vmem:[#allocation13 + $0x70] ss:$8 sps:$4 sm:$0xff]  }
 0x4a4   :  { %v1709_v56 = vadd.f32 %v1708_v55, %v1499_v38  ;;  %v1710_v57 = vpop.f32.mrb[22].mxu1  ;;  %1995 = vmatprep.mubr.bf16.mxu1 %v1752_v41  ;;  %v6294_v41 = vld [vmem:[#allocation13 + $0x74] ss:$8 sps:$4 sm:$0xff]   ;;  %v6295_v55 = vld [vmem:[#allocation13 + $0x80] ss:$8 sps:$4 sm:$0xff]  }
 0x4a5   :  { %v1711_v58 = vadd.f32 %v1710_v57, %v1495_v37  ;;  %v1712_v60 = vpop.f32.mrb[23].mxu1  ;;  %1996 = vmatmul.mubr.bf16.vlgmr.msra.gmra.mrb[32].mxu1 %v1751_v53  ;;  %v1739_v62 = vmax.f32 %v1707_v54, 0.0  ;;  %v6289_v53 = vld [vmem:[#allocation13 + $0x60] ss:$8 sps:$4 sm:$0xff]   ;;  %v6297_v54 = vld [vmem:[#allocation13 + $0x84] ss:$8 sps:$4 sm:$0xff]  }
 0x4a6   :  { %v1713_v61 = vadd.f32 %v1712_v60, %v1499_v38  ;;  %v1740_v0 = vmax.f32 %v1709_v56, 0.0  ;;  %v6300_v56 = vld [vmem:[#allocation13 + $0x94] ss:$8 sps:$4 sm:$0xff]   ;;  %v6298_v57 = vld [vmem:[#allocation13 + $0x90] ss:$8 sps:$4 sm:$0xff]  }
 0x4a7   :  { %v1741_v63 = vmax.f32 %v1711_v58, 0.0  ;;  %v6303_v58 = vld [vmem:[#allocation13 + $0xa4] ss:$8 sps:$4 sm:$0xff]   ;;  %v6301_v60 = vld [vmem:[#allocation13 + $0xa0] ss:$8 sps:$4 sm:$0xff]  }
 0x4a8   :  { %v1742_v1 = vmax.f32 %v1713_v61, 0.0  ;;  %v6306_v61 = vld [vmem:[#allocation13 + $0xb4] ss:$8 sps:$4 sm:$0xff]  }
 0x4a9   :  { %v1753_v2 = vpack.c.bf16 %v1741_v63, %v1739_v62  ;;  %v6304_v62 = vld [vmem:[#allocation13 + $0xb0] ss:$8 sps:$4 sm:$0xff]   ;;  %v6309_v63 = vld [vmem:[#allocation13 + $0xc4] ss:$8 sps:$4 sm:$0xff]  }
 0x4aa   :  { %v1754_v3 = vpack.c.bf16 %v1742_v1, %v1740_v0  ;;  %v1716_v4 = vpop.f32.mrb[24].mxu1  ;;  %v6307_v0 = vld [vmem:[#allocation13 + $0xc0] ss:$8 sps:$4 sm:$0xff]   ;;  %v6312_v1 = vld [vmem:[#allocation13 + $0xd4] ss:$8 sps:$4 sm:$0xff]  }
 0x4ab   :  { %v1717_v5 = vadd.f32 %v1716_v4, %v1495_v37  ;;  %v1718_v6 = vpop.f32.mrb[25].mxu1 }
 0x4ac   :  { %v1719_v7 = vadd.f32 %v1718_v6, %v1499_v38  ;;  %v1720_v9 = vpop.f32.mrb[26].mxu1  ;;  %2005 = vmatprep.mubr.bf16.mxu1 %v1754_v3  ;;  %v1791_v3 = vld [vmem:[%s7792_s18] sm:$0x3] }
 0x4ad   :  { %v1721_v13 = vadd.f32 %v1720_v9, %v1495_v37  ;;  %v1722_v14 = vpop.f32.mrb[27].mxu1  ;;  %2006 = vmatmul.mubr.bf16.gmra.mrb[36].mxu1 %v1753_v2  ;;  %v1743_v16 = vmax.f32 %v1717_v5, 0.0  ;;  %v6310_v2 = vld [vmem:[#allocation13 + $0xd0] ss:$8 sps:$4 sm:$0xff]   ;;  %v1796_v4 = vrot.slane %v1791_v3, %v7490_v8  ;;  %v1800_v5 = vrot.slane %v1791_v3, %v7495_v10  ;;  %v6318_v3 = vld [vmem:[#allocation13 + $0xf4] ss:$8 sps:$4 sm:$0xff]  }
 0x4ae   :  { %v1723_v15 = vadd.f32 %v1722_v14, %v1499_v38  ;;  %v1744_v18 = vmax.f32 %v1719_v7, 0.0 }
 0x4af   :  { %v1745_v17 = vmax.f32 %v1721_v13, 0.0 }
 0x4b0   :  { %v1746_v19 = vmax.f32 %v1723_v15, 0.0 }
 0x4b1   :  { %v1755_v20 = vpack.c.bf16 %v1745_v17, %v1743_v16 }
 0x4b2   :  { %v1756_v21 = vpack.c.bf16 %v1746_v19, %v1744_v18  ;;  %v1726_v22 = vpop.f32.mrb[28].mxu1 }
 0x4b3   :  { %v1727_v23 = vadd.f32 %v1726_v22, %v1495_v37  ;;  %v1728_v11 = vpop.f32.mrb[29].mxu1 }
 0x4b4   :  { %v1729_v12 = vadd.f32 %v1728_v11, %v1499_v38  ;;  %v1730_v24 = vpop.f32.mrb[30].mxu1  ;;  %2015 = vmatprep.mubr.bf16.mxu1 %v1756_v21 }
 0x4b5   :  { %v1731_v25 = vadd.f32 %v1730_v24, %v1495_v37  ;;  %v1732_v26 = vpop.f32.mrb[31].mxu1  ;;  %2016 = vmatmul.mubr.bf16.gmra.mrb[40].mxu1 %v1755_v20  ;;  %v1747_v28 = vmax.f32 %v1727_v23, 0.0  ;;  %v6271_v37 = vld [vmem:[#allocation13] ss:$8 sps:$4 sm:$0xff]  }
 0x4b6   :  { %v1733_v27 = vadd.f32 %v1732_v26, %v1499_v38  ;;  %v1748_v30 = vmax.f32 %v1729_v12, 0.0  ;;  %2566 = vmatpush1.bf16.msra.mxu1 %v6271_v37  ;;  %v6274_v38 = vld [vmem:[#allocation13 + $0x10] ss:$8 sps:$4 sm:$0xff]  }
 0x4b7   :  { %v1749_v29 = vmax.f32 %v1731_v25, 0.0  ;;  %2567 = vmatprep.subr.bf16.mxu1 %v6276_v43 }
 0x4b8   :  { %v1750_v31 = vmax.f32 %v1733_v27, 0.0 }
 0x4b9   :  { %v1757_v32 = vpack.c.bf16 %v1749_v29, %v1747_v28 }
 0x4ba   :  { %v1758_v33 = vpack.c.bf16 %v1750_v31, %v1748_v30  ;;  %2568 = vmatpush1.bf16.msra.mxu1 %v6274_v38 }
 0x4bb   :  { %2569 = vmatprep.subr.bf16.mxu1 %v6279_v44 }
 0x4bc   :  { %2025 = vmatprep.mubr.bf16.mxu1 %v1758_v33 }
 0x4bd   :  { %2026 = vmatmul.mubr.bf16.gmra.mrb[44].mxu1 %v1757_v32 }
 0x4be   :  { %2570 = vmatpush1.bf16.msra.mxu1 %v6277_v45 }
 0x4bf   :  { %2571 = vmatprep.subr.bf16.mxu1 %v6282_v46 }
 0x4c2   :  { %2572 = vmatpush1.bf16.msra.mxu1 %v6280_v47 }
 0x4c3   :  { %2573 = vmatprep.subr.bf16.mxu1 %v6285_v48 }
 0x4c6   :  { %2574 = vmatpush1.bf16.msra.mxu1 %v6283_v49 }
 0x4c7   :  { %2575 = vmatprep.subr.bf16.mxu1 %v6288_v50 }
 0x4ca   :  { %2576 = vmatpush1.bf16.msra.mxu1 %v6286_v51 }
 0x4cb   :  { %2577 = vmatprep.subr.bf16.mxu1 %v6291_v52 }
 0x4ce   :  { %2578 = vmatpush1.bf16.msra.mxu1 %v6289_v53 }
 0x4cf   :  { %2579 = vmatprep.subr.bf16.mxu1 %v6294_v41 }
 0x4d2   :  { %2580 = vmatpush1.bf16.msra.mxu1 %v6292_v42 }
 0x4d3   :  { %2581 = vmatprep.subr.bf16.mxu1 %v6297_v54 }
 0x4d6   :  { %2582 = vmatpush1.bf16.msra.mxu1 %v6295_v55 }
 0x4d7   :  { %2583 = vmatprep.subr.bf16.mxu1 %v6300_v56 }
 0x4da   :  { %2584 = vmatpush1.bf16.msra.mxu1 %v6298_v57 }
 0x4db   :  { %2585 = vmatprep.subr.bf16.mxu1 %v6303_v58 }
 0x4de   :  { %2586 = vmatpush1.bf16.msra.mxu1 %v6301_v60 }
 0x4df   :  { %2587 = vmatprep.subr.bf16.mxu1 %v6306_v61 }
 0x4e2   :  { %2588 = vmatpush1.bf16.msra.mxu1 %v6304_v62 }
 0x4e3   :  { %2589 = vmatprep.subr.bf16.mxu1 %v6309_v63 }
 0x4e6   :  { %2590 = vmatpush1.bf16.msra.mxu1 %v6307_v0 }
 0x4e7   :  { %2591 = vmatprep.subr.bf16.mxu1 %v6312_v1  ;;  %v6315_v1 = vld [vmem:[#allocation13 + $0xe4] ss:$8 sps:$4 sm:$0xff]  }
 0x4ea   :  { %2592 = vmatpush1.bf16.msra.mxu1 %v6310_v2  ;;  %v6313_v2 = vld [vmem:[#allocation13 + $0xe0] ss:$8 sps:$4 sm:$0xff]  }
 0x4eb   :  { %2593 = vmatprep.subr.bf16.mxu1 %v6315_v1 }
 0x4ee   :  { %2594 = vmatpush1.bf16.msra.mxu1 %v6313_v2  ;;  %v6336_v2 = vld [vmem:[#allocation19 + $0x54] ss:$8 sps:$4 sm:$0xff]  }
 0x4ef   :  { %2595 = vmatprep.subr.bf16.mxu1 %v6318_v3 }
 0x578   :  { %v1997_v6 = vpop.f32.mrb[32].mxu1 }
 0x579   :  { %v1998_v7 = vadd.f32 %v1997_v6, %v1796_v4  ;;  %v1999_v9 = vpop.f32.mrb[33].mxu1  ;;  %v6316_v6 = vld [vmem:[#allocation13 + $0xf0] ss:$8 sps:$4 sm:$0xff]  }
 0x57a   :  { %v2000_v13 = vadd.f32 %v1999_v9, %v1800_v5  ;;  %v2001_v14 = vpop.f32.mrb[34].mxu1  ;;  %2596 = vmatpush1.bf16.msra.mxu1 %v6316_v6 }
 0x57b   :  { %v2002_v15 = vadd.f32 %v2001_v14, %v1796_v4  ;;  %v2003_v16 = vpop.f32.mrb[35].mxu1  ;;  %v2036_v18 = vmax.f32 %v1998_v7, 0.0 }
 0x57c   :  { %v2004_v17 = vadd.f32 %v2003_v16, %v1800_v5  ;;  %v2037_v20 = vmax.f32 %v2000_v13, 0.0 }
 0x57d   :  { %v2038_v19 = vmax.f32 %v2002_v15, 0.0 }
 0x57e   :  { %v2039_v21 = vmax.f32 %v2004_v17, 0.0 }
 0x57f   :  { %v2052_v22 = vpack.c.bf16 %v2038_v19, %v2036_v18 }
 0x580   :  { %v2053_v23 = vpack.c.bf16 %v2039_v21, %v2037_v20  ;;  %v2007_v11 = vpop.f32.mrb[36].mxu1 }
 0x581   :  { %v2008_v12 = vadd.f32 %v2007_v11, %v1796_v4  ;;  %v2009_v24 = vpop.f32.mrb[37].mxu1 }
 0x582   :  { %v2010_v25 = vadd.f32 %v2009_v24, %v1800_v5  ;;  %v2011_v26 = vpop.f32.mrb[38].mxu1  ;;  %2296 = vmatprep.mubr.bf16.mxu0 %v2053_v23 }
 0x583   :  { %v2012_v27 = vadd.f32 %v2011_v26, %v1796_v4  ;;  %v2013_v28 = vpop.f32.mrb[39].mxu1  ;;  %2297 = vmatmul.mubr.bf16.vlgmr.msra.gmra.mrb[16].mxu0 %v2052_v22  ;;  %v2040_v30 = vmax.f32 %v2008_v12, 0.0  ;;  %v6319_v26 = vld [vmem:[#allocation19] ss:$8 sps:$4 sm:$0xff]  }
 0x584   :  { %v2014_v29 = vadd.f32 %v2013_v28, %v1800_v5  ;;  %v2041_v32 = vmax.f32 %v2010_v25, 0.0 }
 0x585   :  { %v2042_v31 = vmax.f32 %v2012_v27, 0.0 }
 0x586   :  { %v2043_v33 = vmax.f32 %v2014_v29, 0.0  ;;  %v6324_v29 = vld [vmem:[#allocation19 + $0x14] ss:$8 sps:$4 sm:$0xff]  }
 0x587   :  { %v2054_v34 = vpack.c.bf16 %v2042_v31, %v2040_v30 }
 0x588   :  { %v2055_v35 = vpack.c.bf16 %v2043_v33, %v2041_v32  ;;  %v2017_v36 = vpop.f32.mrb[40].mxu1 }
 0x589   :  { %v2018_v39 = vadd.f32 %v2017_v36, %v1796_v4  ;;  %v2019_v37 = vpop.f32.mrb[41].mxu1 }
 0x58a   :  { %v2020_v40 = vadd.f32 %v2019_v37, %v1800_v5  ;;  %v2021_v43 = vpop.f32.mrb[42].mxu1  ;;  %2306 = vmatprep.mubr.bf16.mxu0 %v2055_v35  ;;  %v6322_v35 = vld [vmem:[#allocation19 + $0x10] ss:$8 sps:$4 sm:$0xff]   ;;  %v6327_v37 = vld [vmem:[#allocation19 + $0x24] ss:$8 sps:$4 sm:$0xff]  }
 0x58b   :  { %v2022_v38 = vadd.f32 %v2021_v43, %v1796_v4  ;;  %v2023_v44 = vpop.f32.mrb[43].mxu1  ;;  %2307 = vmatmul.mubr.bf16.gmra.mrb[20].mxu0 %v2054_v34  ;;  %v2044_v46 = vmax.f32 %v2018_v39, 0.0 }
 0x58c   :  { %v2024_v45 = vadd.f32 %v2023_v44, %v1800_v5  ;;  %v2045_v48 = vmax.f32 %v2020_v40, 0.0 }
 0x58d   :  { %v2046_v47 = vmax.f32 %v2022_v38, 0.0 }
 0x58e   :  { %v2047_v49 = vmax.f32 %v2024_v45, 0.0 }
 0x58f   :  { %v2056_v50 = vpack.c.bf16 %v2046_v47, %v2044_v46  ;;  %v6325_v46 = vld [vmem:[#allocation19 + $0x20] ss:$8 sps:$4 sm:$0xff]  }
 0x590   :  { %v2057_v51 = vpack.c.bf16 %v2047_v49, %v2045_v48  ;;  %v2027_v52 = vpop.f32.mrb[44].mxu1  ;;  %v6330_v49 = vld [vmem:[#allocation19 + $0x34] ss:$8 sps:$4 sm:$0xff]  }
 0x591   :  { %v2028_v53 = vadd.f32 %v2027_v52, %v1796_v4  ;;  %v2029_v41 = vpop.f32.mrb[45].mxu1 }
 0x592   :  { %v2030_v42 = vadd.f32 %v2029_v41, %v1800_v5  ;;  %v2031_v54 = vpop.f32.mrb[46].mxu1  ;;  %2316 = vmatprep.mubr.bf16.mxu0 %v2057_v51 }
 0x593   :  { %v2032_v55 = vadd.f32 %v2031_v54, %v1796_v4  ;;  %v2033_v56 = vpop.f32.mrb[47].mxu1  ;;  %2317 = vmatmul.mubr.bf16.gmra.mrb[24].mxu0 %v2056_v50  ;;  %v2048_v58 = vmax.f32 %v2028_v53, 0.0  ;;  %v6321_v4 = vld [vmem:[#allocation19 + $0x4] ss:$8 sps:$4 sm:$0xff]  }
 0x594   :  { %v2034_v57 = vadd.f32 %v2033_v56, %v1800_v5  ;;  %v2049_v61 = vmax.f32 %v2030_v42, 0.0  ;;  %3522 = vmatprep.subr.bf16.mxu1 %v6321_v4  ;;  %v2092_v5 = vld [vmem:[%s7793_s19] sm:$0x3]  ;;  %v6328_v42 = vld [vmem:[#allocation19 + $0x30] ss:$8 sps:$4 sm:$0xff]  }
 0x595   :  { %v2050_v60 = vmax.f32 %v2032_v55, 0.0  ;;  %v7558_v7 = vrot.slane %v2092_v5, %v7490_v8  ;;  %v7561_v9 = vrot.slane %v2092_v5, %v7495_v10  ;;  %v6333_v56 = vld [vmem:[#allocation19 + $0x44] ss:$8 sps:$4 sm:$0xff]  }
 0x596   :  { %v2051_v62 = vmax.f32 %v2034_v57, 0.0 }
 0x597   :  { %v2058_v63 = vpack.c.bf16 %v2050_v60, %v2048_v58 }
 0x598   :  { %v2059_v0 = vpack.c.bf16 %v2051_v62, %v2049_v61 }
 0x59a   :  { %2326 = vmatprep.mubr.bf16.mxu0 %v2059_v0 }
 0x59b   :  { %2327 = vmatmul.mubr.bf16.gmra.mrb[28].mxu0 %v2058_v63  ;;  %v6331_v63 = vld [vmem:[#allocation19 + $0x40] ss:$8 sps:$4 sm:$0xff]  }
 0x656   :  { %v2298_v13 = vpop.f32.mrb[16].mxu0 }
 0x657   :  { %v2299_v14 = vadd.f32 %v2298_v13, %v7558_v7  ;;  %v2300_v15 = vpop.f32.mrb[17].mxu0 }
 0x658   :  { %v2301_v16 = vadd.f32 %v2300_v15, %v7561_v9  ;;  %v2302_v17 = vpop.f32.mrb[18].mxu0 }
 0x659   :  { %v2303_v18 = vadd.f32 %v2302_v17, %v7558_v7  ;;  %v2304_v19 = vpop.f32.mrb[19].mxu0  ;;  %v2337_v21 = vmax.f32 %v2299_v14, 0.0  ;;  %v6334_v14 = vld [vmem:[#allocation19 + $0x50] ss:$8 sps:$4 sm:$0xff]   ;;  %v6339_v17 = vld [vmem:[#allocation19 + $0x64] ss:$8 sps:$4 sm:$0xff]  }
 0x65a   :  { %v2305_v20 = vadd.f32 %v2304_v19, %v7561_v9  ;;  %v2338_v23 = vmax.f32 %v2301_v16, 0.0 }
 0x65b   :  { %v2339_v22 = vmax.f32 %v2303_v18, 0.0 }
 0x65c   :  { %v2340_v11 = vmax.f32 %v2305_v20, 0.0 }
 0x65d   :  { %v2353_v12 = vpack.c.bf16 %v2339_v22, %v2337_v21  ;;  %v6337_v22 = vld [vmem:[#allocation19 + $0x60] ss:$8 sps:$4 sm:$0xff]  }
 0x65e   :  { %v2354_v24 = vpack.c.bf16 %v2340_v11, %v2338_v23  ;;  %v2308_v25 = vpop.f32.mrb[20].mxu0  ;;  %v6342_v23 = vld [vmem:[#allocation19 + $0x74] ss:$8 sps:$4 sm:$0xff]   ;;  %v6671_v11 = vld [vmem:[#allocation2 + $0x4] ss:$20 sps:$4 sm:$0xff]  }
 0x65f   :  { %v2309_v27 = vadd.f32 %v2308_v25, %v7558_v7  ;;  %v2310_v28 = vpop.f32.mrb[21].mxu0  ;;  %v6346_v25 = vld [vmem:[#allocation19 + $0x90] ss:$8 sps:$4 sm:$0xff]  }
 0x660   :  { %v2311_v30 = vadd.f32 %v2310_v28, %v7561_v9  ;;  %v2312_v31 = vpop.f32.mrb[22].mxu0  ;;  %2597 = vmatprep.mubr.bf16.mxu1 %v2354_v24  ;;  %v6348_v24 = vld [vmem:[#allocation19 + $0x94] ss:$8 sps:$4 sm:$0xff]  }
 0x661   :  { %v2313_v32 = vadd.f32 %v2312_v31, %v7558_v7  ;;  %v2314_v33 = vpop.f32.mrb[23].mxu0  ;;  %2598 = vmatmul.mubr.bf16.vlgmr.msra.gmra.mrb[48].mxu1 %v2353_v12  ;;  %v2341_v36 = vmax.f32 %v2309_v27, 0.0  ;;  %v6343_v12 = vld [vmem:[#allocation19 + $0x80] ss:$8 sps:$4 sm:$0xff]   ;;  %v6354_v28 = vld [vmem:[#allocation19 + $0xb4] ss:$8 sps:$4 sm:$0xff]  }
 0x662   :  { %v2315_v34 = vadd.f32 %v2314_v33, %v7561_v9  ;;  %3523 = vmatpush1.bf16.msra.mxu1 %v6319_v26  ;;  %v2342_v40 = vmax.f32 %v2311_v30, 0.0  ;;  %v6351_v26 = vld [vmem:[#allocation19 + $0xa4] ss:$8 sps:$4 sm:$0xff]   ;;  %v6349_v27 = vld [vmem:[#allocation19 + $0xa0] ss:$8 sps:$4 sm:$0xff]  }
 0x663   :  { %v2343_v39 = vmax.f32 %v2313_v32, 0.0  ;;  %3524 = vmatprep.subr.bf16.mxu1 %v6324_v29  ;;  %v6352_v29 = vld [vmem:[#allocation19 + $0xb0] ss:$8 sps:$4 sm:$0xff]   ;;  %v6357_v30 = vld [vmem:[#allocation19 + $0xc4] ss:$8 sps:$4 sm:$0xff]  }
 0x664   :  { %v2344_v43 = vmax.f32 %v2315_v34, 0.0  ;;  %v6355_v31 = vld [vmem:[#allocation19 + $0xc0] ss:$8 sps:$4 sm:$0xff]   ;;  %v6360_v32 = vld [vmem:[#allocation19 + $0xd4] ss:$8 sps:$4 sm:$0xff]  }
 0x665   :  { %v2355_v38 = vpack.c.bf16 %v2343_v39, %v2341_v36  ;;  %v6358_v33 = vld [vmem:[#allocation19 + $0xd0] ss:$8 sps:$4 sm:$0xff]   ;;  %v6363_v34 = vld [vmem:[#allocation19 + $0xe4] ss:$8 sps:$4 sm:$0xff]   ;;  %v6366_v36 = vld [vmem:[#allocation19 + $0xf4] ss:$8 sps:$4 sm:$0xff]  }
 0x666   :  { %v2356_v44 = vpack.c.bf16 %v2344_v43, %v2342_v40  ;;  %3525 = vmatpush1.bf16.msra.mxu1 %v6322_v35  ;;  %v2318_v45 = vpop.f32.mrb[24].mxu0  ;;  %v6361_v35 = vld [vmem:[#allocation19 + $0xe0] ss:$8 sps:$4 sm:$0xff]   ;;  %v6364_v39 = vld [vmem:[#allocation19 + $0xf0] ss:$8 sps:$4 sm:$0xff]  }
 0x667   :  { %v2319_v47 = vadd.f32 %v2318_v45, %v7558_v7  ;;  %v2320_v48 = vpop.f32.mrb[25].mxu0  ;;  %3526 = vmatprep.subr.bf16.mxu1 %v6327_v37  ;;  %v6369_v37 = vld [vmem:[#allocation19 + $0x104] ss:$8 sps:$4 sm:$0xff]   ;;  %v6367_v40 = vld [vmem:[#allocation19 + $0x100] ss:$8 sps:$4 sm:$0xff]  }
 0x668   :  { %v2321_v50 = vadd.f32 %v2320_v48, %v7561_v9  ;;  %v2322_v51 = vpop.f32.mrb[26].mxu0  ;;  %2607 = vmatprep.mubr.bf16.mxu1 %v2356_v44  ;;  %v6463_v43 = vld [vmem:[#allocation14 + $0x40] sm:$0xff]   ;;  %v6372_v44 = vld [vmem:[#allocation19 + $0x114] ss:$8 sps:$4 sm:$0xff]   ;;  %v6468_v48 = vld [vmem:[#allocation14 + $0x48] sm:$0xff]  }
 0x669   :  { %v2323_v52 = vadd.f32 %v2322_v51, %v7558_v7  ;;  %v2324_v53 = vpop.f32.mrb[27].mxu0  ;;  %2608 = vmatmul.mubr.bf16.gmra.mrb[52].mxu1 %v2355_v38  ;;  %v2345_v54 = vmax.f32 %v2319_v47, 0.0  ;;  %v6464_v38 = vld [vmem:[#allocation14] sm:$0xff]   ;;  %5680 = vmatprep.subr.bf16.mxu0 %v6463_v43 }
 0x66a   :  { %v2325_v41 = vadd.f32 %v2324_v53, %v7561_v9  ;;  %3527 = vmatpush1.bf16.msra.mxu1 %v6325_v46  ;;  %v2346_v57 = vmax.f32 %v2321_v50, 0.0  ;;  %v6672_v45 = vld [vmem:[#allocation2] ss:$20 sps:$4 sm:$0xff]   ;;  %5681 = vmatpush3.bf16.msra.mxu0 %v6464_v38  ;;  %v6370_v46 = vld [vmem:[#allocation19 + $0x110] ss:$8 sps:$4 sm:$0xff]  }
 0x66b   :  { %v2347_v55 = vmax.f32 %v2323_v52, 0.0  ;;  %3528 = vmatprep.subr.bf16.mxu1 %v6330_v49  ;;  %v6673_v47 = vld [vmem:[#allocation2 + $0x2c] ss:$20 sps:$4 sm:$0xff]   ;;  %5682 = vmatprep.subr.bf16.mxu0 %v6468_v48  ;;  %v6473_v52 = vld [vmem:[#allocation14 + $0x50] sm:$0xff]  }
 0x66c   :  { %v2348_v58 = vmax.f32 %v2325_v41, 0.0  ;;  %v6469_v49 = vld [vmem:[#allocation14 + $0x8] sm:$0xff]   ;;  %v6474_v53 = vld [vmem:[#allocation14 + $0x10] sm:$0xff]  }
 0x66d   :  { %v2357_v60 = vpack.c.bf16 %v2347_v55, %v2345_v54  ;;  %v6375_v50 = vld [vmem:[#allocation19 + $0x124] ss:$8 sps:$4 sm:$0xff]   ;;  %v6373_v51 = vld [vmem:[#allocation19 + $0x120] ss:$8 sps:$4 sm:$0xff]   ;;  %v6378_v41 = vld [vmem:[#allocation19 + $0x134] ss:$8 sps:$4 sm:$0xff]  }
 0x66e   :  { %v2358_v61 = vpack.c.bf16 %v2348_v58, %v2346_v57  ;;  %3529 = vmatpush1.bf16.msra.mxu1 %v6328_v42  ;;  %v2328_v62 = vpop.f32.mrb[28].mxu0  ;;  %5683 = vmatpush3.bf16.msra.mxu0 %v6469_v49  ;;  %v6674_v42 = vld [vmem:[#allocation2 + $0x28] ss:$20 sps:$4 sm:$0xff]   ;;  %v6376_v54 = vld [vmem:[#allocation19 + $0x130] ss:$8 sps:$4 sm:$0xff]  }
 0x66f   :  { %v2329_v0 = vadd.f32 %v2328_v62, %v7558_v7  ;;  %v2330_v1 = vpop.f32.mrb[29].mxu0  ;;  %3530 = vmatprep.subr.bf16.mxu1 %v6333_v56  ;;  %5684 = vmatprep.subr.bf16.mxu0 %v6473_v52  ;;  %v6675_v55 = vld [vmem:[#allocation2 + $0x54] ss:$20 sps:$4 sm:$0xff]   ;;  %v6478_v56 = vld [vmem:[#allocation14 + $0x58] sm:$0xff]   ;;  %v6381_v58 = vld [vmem:[#allocation19 + $0x144] ss:$8 sps:$4 sm:$0xff]  }
 0x670   :  { %v2331_v3 = vadd.f32 %v2330_v1, %v7561_v9  ;;  %v2332_v6 = vpop.f32.mrb[30].mxu0  ;;  %2617 = vmatprep.mubr.bf16.mxu1 %v2358_v61  ;;  %v6479_v57 = vld [vmem:[#allocation14 + $0x18] sm:$0xff]   ;;  %v6483_v61 = vld [vmem:[#allocation14 + $0x60] sm:$0xff]  }
 0x671   :  { %v2333_v4 = vadd.f32 %v2332_v6, %v7558_v7  ;;  %v2334_v5 = vpop.f32.mrb[31].mxu0  ;;  %2618 = vmatmul.mubr.bf16.gmra.mrb[56].mxu1 %v2357_v60  ;;  %v2349_v15 = vmax.f32 %v2329_v0, 0.0  ;;  %v6340_v7 = vld [vmem:[#allocation19 + $0x70] ss:$8 sps:$4 sm:$0xff]   ;;  %v6379_v60 = vld [vmem:[#allocation19 + $0x140] ss:$8 sps:$4 sm:$0xff]  }
 0x672   :  { %v2335_v13 = vadd.f32 %v2334_v5, %v7561_v9  ;;  %3531 = vmatpush1.bf16.msra.mxu1 %v6331_v63  ;;  %v2350_v18 = vmax.f32 %v2331_v3, 0.0  ;;  %v6345_v9 = vld [vmem:[#allocation19 + $0x84] ss:$8 sps:$4 sm:$0xff]   ;;  %5685 = vmatpush3.bf16.msra.mxu0 %v6474_v53  ;;  %v6384_v63 = vld [vmem:[#allocation19 + $0x154] ss:$8 sps:$4 sm:$0xff]  }
 0x673   :  { %v2351_v16 = vmax.f32 %v2333_v4, 0.0  ;;  %3532 = vmatprep.subr.bf16.mxu1 %v6336_v2  ;;  %5686 = vmatprep.subr.bf16.mxu0 %v6478_v56  ;;  %v6484_v62 = vld [vmem:[#allocation14 + $0x20] sm:$0xff]   ;;  %v6382_v1 = vld [vmem:[#allocation19 + $0x150] ss:$8 sps:$4 sm:$0xff]   ;;  %v6488_v3 = vld [vmem:[#allocation14 + $0x68] sm:$0xff]  }
 0x674   :  { %v2352_v19 = vmax.f32 %v2335_v13, 0.0  ;;  %v6676_v0 = vld [vmem:[#allocation2 + $0x50] ss:$20 sps:$4 sm:$0xff]   ;;  %v6489_v4 = vld [vmem:[#allocation14 + $0x28] sm:$0xff]  }
 0x675   :  { %v2359_v20 = vpack.c.bf16 %v2351_v16, %v2349_v15  ;;  %v6677_v2 = vld [vmem:[#allocation2 + $0x7c] ss:$20 sps:$4 sm:$0xff]   ;;  %v6387_v6 = vld [vmem:[#allocation19 + $0x164] ss:$8 sps:$4 sm:$0xff]   ;;  %v6385_v5 = vld [vmem:[#allocation19 + $0x160] ss:$8 sps:$4 sm:$0xff]  }
 0x676   :  { %v2360_v21 = vpack.c.bf16 %v2352_v19, %v2350_v18  ;;  %3533 = vmatpush1.bf16.msra.mxu1 %v6334_v14  ;;  %5687 = vmatpush3.bf16.msra.mxu0 %v6479_v57  ;;  %v6493_v13 = vld [vmem:[#allocation14 + $0x70] sm:$0xff]   ;;  %v6678_v16 = vld [vmem:[#allocation2 + $0x78] ss:$20 sps:$4 sm:$0xff]   ;;  %v6421_v38 = vld [vmem:[#allocation19 + $0x220] ss:$8 sps:$4 sm:$0xff]  }
 0x677   :  { %3534 = vmatprep.subr.bf16.mxu1 %v6339_v17  ;;  %5688 = vmatprep.subr.bf16.mxu0 %v6483_v61  ;;  %v6390_v14 = vld [vmem:[#allocation19 + $0x174] ss:$8 sps:$4 sm:$0xff]   ;;  %v6388_v17 = vld [vmem:[#allocation19 + $0x170] ss:$8 sps:$4 sm:$0xff]   ;;  %v6679_v18 = vld [vmem:[#allocation2 + $0xc] ss:$20 sps:$4 sm:$0xff]  }
 0x678   :  { %2627 = vmatprep.mubr.bf16.mxu1 %v2360_v21  ;;  %v6494_v15 = vld [vmem:[#allocation14 + $0x30] sm:$0xff]   ;;  %v6498_v19 = vld [vmem:[#allocation14 + $0x78] sm:$0xff]   ;;  %v6423_v43 = vld [vmem:[#allocation19 + $0x224] ss:$8 sps:$4 sm:$0xff]  }
 0x679   :  { %2628 = vmatmul.mubr.bf16.gmra.mrb[60].mxu1 %v2359_v20  ;;  %v6393_v20 = vld [vmem:[#allocation19 + $0x184] ss:$8 sps:$4 sm:$0xff]   ;;  %v6499_v21 = vld [vmem:[#allocation14 + $0x38] sm:$0xff]   ;;  %v6427_v49 = vld [vmem:[#allocation19 + $0x240] ss:$8 sps:$4 sm:$0xff]  }
 0x67a   :  { %3535 = vmatpush1.bf16.msra.mxu1 %v6337_v22  ;;  %3554 = vmatprep.mubr.bf16.mxu1 %v6671_v11  ;;  %v6391_v22 = vld [vmem:[#allocation19 + $0x180] ss:$8 sps:$4 sm:$0xff]   ;;  %v6399_v11 = vld [vmem:[#allocation19 + $0x1a4] ss:$8 sps:$4 sm:$0xff]   ;;  %v6430_v52 = vld [vmem:[#allocation19 + $0x250] ss:$8 sps:$4 sm:$0xff]  }
 0x67b   :  { %3536 = vmatprep.subr.bf16.mxu1 %v6342_v23  ;;  %5689 = vmatpush3.bf16.msra.mxu0 %v6484_v62  ;;  %v6396_v23 = vld [vmem:[#allocation19 + $0x194] ss:$8 sps:$4 sm:$0xff]   ;;  %v6429_v48 = vld [vmem:[#allocation19 + $0x244] ss:$8 sps:$4 sm:$0xff]   ;;  %v6436_v56 = vld [vmem:[#allocation19 + $0x270] ss:$8 sps:$4 sm:$0xff]  }
 0x67c   :  { %5690 = vmatprep.subr.bf16.mxu0 %v6488_v3  ;;  %v6685_v53 = vld [vmem:[#allocation2 + $0x84] ss:$20 sps:$4 sm:$0xff]  }
 0x67d   :  { %v6441_v57 = vld [vmem:[#allocation17 + $0x4] ss:$8 sps:$4 sm:$0xff]   ;;  %v6442_v62 = vld [vmem:[#allocation17 + $0x10] ss:$8 sps:$4 sm:$0xff]  }
 0x67e   :  { %3537 = vmatpush1.bf16.msra.mxu1 %v6340_v7  ;;  %v6394_v7 = vld [vmem:[#allocation19 + $0x190] ss:$8 sps:$4 sm:$0xff]  }
 0x67f   :  { %3538 = vmatprep.subr.bf16.mxu1 %v6345_v9  ;;  %5691 = vmatpush3.bf16.msra.mxu0 %v6489_v4  ;;  %v6397_v9 = vld [vmem:[#allocation19 + $0x1a0] ss:$8 sps:$4 sm:$0xff]   ;;  %v6687_v61 = vld [vmem:[#allocation2 + $0x10] ss:$20 sps:$4 sm:$0xff]  }
 0x680   :  { %5692 = vmatprep.subr.bf16.mxu0 %v6493_v13  ;;  %v6448_v3 = vld [vmem:[#allocation17 + $0x30] ss:$8 sps:$4 sm:$0xff]   ;;  %v6451_v4 = vld [vmem:[#allocation17 + $0x40] ss:$8 sps:$4 sm:$0xff]  }
 0x681   :  { %v6689_v13 = vld [vmem:[#allocation2 + $0x60] ss:$20 sps:$4 sm:$0xff]  }
 0x682   :  { %3539 = vmatpush1.bf16.msra.mxu1 %v6343_v12  ;;  %v6402_v12 = vld [vmem:[#allocation19 + $0x1b4] ss:$8 sps:$4 sm:$0xff]  }
 0x683   :  { %3540 = vmatprep.subr.bf16.mxu1 %v6348_v24  ;;  %5693 = vmatpush3.bf16.msra.mxu0 %v6494_v15  ;;  %v6400_v24 = vld [vmem:[#allocation19 + $0x1b0] ss:$8 sps:$4 sm:$0xff]   ;;  %v6459_v15 = vld [vmem:[#allocation17 + $0x64] ss:$8 sps:$4 sm:$0xff]  }
 0x684   :  { %5694 = vmatprep.subr.bf16.mxu0 %v6498_v19  ;;  %v6460_v19 = vld [vmem:[#allocation17 + $0x70] ss:$8 sps:$4 sm:$0xff]  }
 0x686   :  { %3541 = vmatpush1.bf16.msra.mxu1 %v6346_v25  ;;  %v6405_v25 = vld [vmem:[#allocation19 + $0x1c4] ss:$8 sps:$4 sm:$0xff]  }
 0x687   :  { %3542 = vmatprep.subr.bf16.mxu1 %v6351_v26  ;;  %5695 = vmatpush3.bf16.msra.mxu0 %v6499_v21  ;;  %v6403_v26 = vld [vmem:[#allocation19 + $0x1c0] ss:$8 sps:$4 sm:$0xff]  }
 0x688   :  { %v6465_v21 = vld [vmem:[#allocation17 + $0x80] ss:$8 sps:$4 sm:$0xff]  }
 0x68a   :  { %3543 = vmatpush1.bf16.msra.mxu1 %v6349_v27  ;;  %v6408_v27 = vld [vmem:[#allocation19 + $0x1d4] ss:$8 sps:$4 sm:$0xff]  }
 0x68b   :  { %3544 = vmatprep.subr.bf16.mxu1 %v6354_v28  ;;  %v6406_v28 = vld [vmem:[#allocation19 + $0x1d0] ss:$8 sps:$4 sm:$0xff]  }
 0x68e   :  { %3545 = vmatpush1.bf16.msra.mxu1 %v6352_v29  ;;  %v6411_v29 = vld [vmem:[#allocation19 + $0x1e4] ss:$8 sps:$4 sm:$0xff]  }
 0x68f   :  { %3546 = vmatprep.subr.bf16.mxu1 %v6357_v30  ;;  %v6409_v30 = vld [vmem:[#allocation19 + $0x1e0] ss:$8 sps:$4 sm:$0xff]  }
 0x692   :  { %3547 = vmatpush1.bf16.msra.mxu1 %v6355_v31  ;;  %v6414_v31 = vld [vmem:[#allocation19 + $0x1f4] ss:$8 sps:$4 sm:$0xff]  }
 0x693   :  { %3548 = vmatprep.subr.bf16.mxu1 %v6360_v32  ;;  %v7579_v32 = vld [vmem:[#allocation16] sm:$0xff]  }
 0x694   :  { %5772 = vmatprep.subr.bf16.mxu0 %v7579_v32 }
 0x696   :  { %3549 = vmatpush1.bf16.msra.mxu1 %v6358_v33  ;;  %v6412_v33 = vld [vmem:[#allocation19 + $0x1f0] ss:$8 sps:$4 sm:$0xff]  }
 0x697   :  { %3550 = vmatprep.subr.bf16.mxu1 %v6363_v34  ;;  %v6417_v34 = vld [vmem:[#allocation19 + $0x204] ss:$8 sps:$4 sm:$0xff]  }
 0x69a   :  { %3551 = vmatpush1.bf16.msra.mxu1 %v6361_v35  ;;  %v6415_v35 = vld [vmem:[#allocation19 + $0x200] ss:$8 sps:$4 sm:$0xff]  }
 0x69b   :  { %3552 = vmatprep.subr.bf16.mxu1 %v6366_v36  ;;  %v6420_v36 = vld [vmem:[#allocation19 + $0x214] ss:$8 sps:$4 sm:$0xff]  }
 0x69e   :  { %3553 = vmatpush1.bf16.msra.mxu1 %v6364_v39  ;;  %v6680_v39 = vld [vmem:[#allocation2 + $0x8] ss:$20 sps:$4 sm:$0xff]  }
 0x69f   :  { %3595 = vmatprep.subr.bf16.mxu1 %v6369_v37  ;;  %v6418_v37 = vld [vmem:[#allocation19 + $0x210] ss:$8 sps:$4 sm:$0xff]  }
 0x6a1   :  { %3555 = vmatmul.mubr.bf16.vlgmr.msra.gmra.mrb[64].mxu1 %v6672_v45  ;;  %v6682_v45 = vld [vmem:[#allocation2 + $0x30] ss:$20 sps:$4 sm:$0xff]  }
 0x6a2   :  { %3596 = vmatpush1.bf16.msra.mxu1 %v6367_v40  ;;  %3564 = vmatprep.mubr.bf16.mxu1 %v6673_v47  ;;  %v6681_v40 = vld [vmem:[#allocation2 + $0x34] ss:$20 sps:$4 sm:$0xff]   ;;  %v6683_v47 = vld [vmem:[#allocation2 + $0x5c] ss:$20 sps:$4 sm:$0xff]  }
 0x6a3   :  { %3597 = vmatprep.subr.bf16.mxu1 %v6372_v44  ;;  %v6426_v44 = vld [vmem:[#allocation19 + $0x234] ss:$8 sps:$4 sm:$0xff]  }
 0x6a6   :  { %3598 = vmatpush1.bf16.msra.mxu1 %v6370_v46  ;;  %v6424_v46 = vld [vmem:[#allocation19 + $0x230] ss:$8 sps:$4 sm:$0xff]  }
 0x6a7   :  { %3599 = vmatprep.subr.bf16.mxu1 %v6375_v50  ;;  %v6432_v50 = vld [vmem:[#allocation19 + $0x254] ss:$8 sps:$4 sm:$0xff]  }
 0x6a9   :  { %3565 = vmatmul.mubr.bf16.gmra.mrb[68].mxu1 %v6674_v42  ;;  %v6433_v42 = vld [vmem:[#allocation19 + $0x260] ss:$8 sps:$4 sm:$0xff]  }
 0x6aa   :  { %3600 = vmatpush1.bf16.msra.mxu1 %v6373_v51  ;;  %3574 = vmatprep.mubr.bf16.mxu1 %v6675_v55  ;;  %v6684_v51 = vld [vmem:[#allocation2 + $0x58] ss:$20 sps:$4 sm:$0xff]   ;;  %v6686_v55 = vld [vmem:[#allocation2 + $0x80] ss:$20 sps:$4 sm:$0xff]  }
 0x6ab   :  { %3601 = vmatprep.subr.bf16.mxu1 %v6378_v41  ;;  %v6435_v41 = vld [vmem:[#allocation19 + $0x264] ss:$8 sps:$4 sm:$0xff]  }
 0x6ae   :  { %3602 = vmatpush1.bf16.msra.mxu1 %v6376_v54  ;;  %v6438_v54 = vld [vmem:[#allocation19 + $0x274] ss:$8 sps:$4 sm:$0xff]  }
 0x6af   :  { %3603 = vmatprep.subr.bf16.mxu1 %v6381_v58  ;;  %v6439_v58 = vld [vmem:[#allocation17] ss:$8 sps:$4 sm:$0xff]  }
 0x6b1   :  { %3575 = vmatmul.mubr.bf16.gmra.mrb[72].mxu1 %v6676_v0  ;;  %v6445_v0 = vld [vmem:[#allocation17 + $0x20] ss:$8 sps:$4 sm:$0xff]  }
 0x6b2   :  { %3604 = vmatpush1.bf16.msra.mxu1 %v6379_v60  ;;  %3584 = vmatprep.mubr.bf16.mxu1 %v6677_v2  ;;  %v6444_v60 = vld [vmem:[#allocation17 + $0x14] ss:$8 sps:$4 sm:$0xff]   ;;  %v6688_v2 = vld [vmem:[#allocation2 + $0x38] ss:$20 sps:$4 sm:$0xff]  }
 0x6b3   :  { %3605 = vmatprep.subr.bf16.mxu1 %v6384_v63  ;;  %v6447_v63 = vld [vmem:[#allocation17 + $0x24] ss:$8 sps:$4 sm:$0xff]  }
 0x6b6   :  { %3606 = vmatpush1.bf16.msra.mxu1 %v6382_v1  ;;  %v6450_v1 = vld [vmem:[#allocation17 + $0x34] ss:$8 sps:$4 sm:$0xff]  }
 0x6b7   :  { %3607 = vmatprep.subr.bf16.mxu1 %v6387_v6  ;;  %v6453_v6 = vld [vmem:[#allocation17 + $0x44] ss:$8 sps:$4 sm:$0xff]  }
 0x6b9   :  { %3585 = vmatmul.mubr.bf16.gmra.mrb[76].mxu1 %v6678_v16  ;;  %v6457_v16 = vld [vmem:[#allocation17 + $0x60] ss:$8 sps:$4 sm:$0xff]  }
 0x6ba   :  { %3608 = vmatpush1.bf16.msra.mxu1 %v6385_v5  ;;  %3627 = vmatprep.mubr.bf16.mxu1 %v6679_v18  ;;  %v6456_v5 = vld [vmem:[#allocation17 + $0x54] ss:$8 sps:$4 sm:$0xff]  }
 0x6bb   :  { %3609 = vmatprep.subr.bf16.mxu1 %v6390_v14  ;;  %v6454_v14 = vld [vmem:[#allocation17 + $0x50] ss:$8 sps:$4 sm:$0xff]   ;;  %v6690_v18 = vld [vmem:[#allocation2 + $0x88] ss:$20 sps:$4 sm:$0xff]  }
 0x6be   :  { %3610 = vmatpush1.bf16.msra.mxu1 %v6388_v17  ;;  %v6462_v17 = vld [vmem:[#allocation17 + $0x74] ss:$8 sps:$4 sm:$0xff]  }
 0x6bf   :  { %3611 = vmatprep.subr.bf16.mxu1 %v6393_v20  ;;  %v6467_v20 = vld [vmem:[#allocation17 + $0x84] ss:$8 sps:$4 sm:$0xff]  }
 0x6c2   :  { %3612 = vmatpush1.bf16.msra.mxu1 %v6391_v22  ;;  %v6472_v22 = vld [vmem:[#allocation17 + $0x94] ss:$8 sps:$4 sm:$0xff]  }
 0x6c3   :  { %3613 = vmatprep.subr.bf16.mxu1 %v6396_v23  ;;  %v6470_v23 = vld [vmem:[#allocation17 + $0x90] ss:$8 sps:$4 sm:$0xff]  }
 0x6c6   :  { %3614 = vmatpush1.bf16.msra.mxu1 %v6394_v7  ;;  %v6475_v7 = vld [vmem:[#allocation17 + $0xa0] ss:$8 sps:$4 sm:$0xff]  }
 0x6c7   :  { %3615 = vmatprep.subr.bf16.mxu1 %v6399_v11  ;;  %v6482_v11 = vld [vmem:[#allocation17 + $0xb4] ss:$8 sps:$4 sm:$0xff]  }
 0x6ca   :  { %3616 = vmatpush1.bf16.msra.mxu1 %v6397_v9  ;;  %v6480_v9 = vld [vmem:[#allocation17 + $0xb0] ss:$8 sps:$4 sm:$0xff]  }
 0x6cb   :  { %3617 = vmatprep.subr.bf16.mxu1 %v6402_v12  ;;  %v6487_v12 = vld [vmem:[#allocation17 + $0xc4] ss:$8 sps:$4 sm:$0xff]  }
 0x6ce   :  { %3618 = vmatpush1.bf16.msra.mxu1 %v6400_v24  ;;  %v6485_v24 = vld [vmem:[#allocation17 + $0xc0] ss:$8 sps:$4 sm:$0xff]  }
 0x6cf   :  { %3619 = vmatprep.subr.bf16.mxu1 %v6405_v25  ;;  %v2393_v25 = vld [vmem:[%s7794_s20] sm:$0x3] }
 0x6d2   :  { %3620 = vmatpush1.bf16.msra.mxu1 %v6403_v26  ;;  %v6492_v26 = vld [vmem:[#allocation17 + $0xd4] ss:$8 sps:$4 sm:$0xff]  }
 0x6d3   :  { %3621 = vmatprep.subr.bf16.mxu1 %v6408_v27  ;;  %v7590_v27 = vrot.slane %v2393_v25, %v7490_v8 }
 0x6d6   :  { %3622 = vmatpush1.bf16.msra.mxu1 %v6406_v28  ;;  %v6490_v28 = vld [vmem:[#allocation17 + $0xd0] ss:$8 sps:$4 sm:$0xff]  }
 0x6d7   :  { %3623 = vmatprep.subr.bf16.mxu1 %v6411_v29  ;;  %v7593_v29 = vrot.slane %v2393_v25, %v7495_v10 }
 0x6da   :  { %3624 = vmatpush1.bf16.msra.mxu1 %v6409_v30  ;;  %v6497_v30 = vld [vmem:[#allocation17 + $0xe4] ss:$8 sps:$4 sm:$0xff]  }
 0x6db   :  { %3625 = vmatprep.subr.bf16.mxu1 %v6414_v31 }
 0x6de   :  { %3626 = vmatpush1.bf16.msra.mxu1 %v6412_v33 }
 0x6df   :  { %3668 = vmatprep.subr.bf16.mxu1 %v6417_v34 }
 0x6e1   :  { %3628 = vmatmul.mubr.bf16.vlgmr.msra.gmra.mrb[64].mxu1 %v6680_v39  ;;  %v6495_v39 = vld [vmem:[#allocation17 + $0xe0] ss:$8 sps:$4 sm:$0xff]  }
 0x6e2   :  { %3669 = vmatpush1.bf16.msra.mxu1 %v6415_v35  ;;  %3637 = vmatprep.mubr.bf16.mxu1 %v6681_v40 }
 0x6e3   :  { %3670 = vmatprep.subr.bf16.mxu1 %v6420_v36 }
 0x6e6   :  { %3671 = vmatpush1.bf16.msra.mxu1 %v6418_v37 }
 0x6e7   :  { %3672 = vmatprep.subr.bf16.mxu1 %v6423_v43  ;;  %v6502_v43 = vld [vmem:[#allocation17 + $0xf4] ss:$8 sps:$4 sm:$0xff]  }
 0x6e9   :  { %3638 = vmatmul.mubr.bf16.gmra.mrb[68].mxu1 %v6682_v45 }
 0x6ea   :  { %3673 = vmatpush1.bf16.msra.mxu1 %v6421_v38  ;;  %3647 = vmatprep.mubr.bf16.mxu1 %v6683_v47 }
 0x6eb   :  { %3674 = vmatprep.subr.bf16.mxu1 %v6426_v44 }
 0x6ee   :  { %3675 = vmatpush1.bf16.msra.mxu1 %v6424_v46 }
 0x6ef   :  { %3676 = vmatprep.subr.bf16.mxu1 %v6429_v48  ;;  %v6500_v48 = vld [vmem:[#allocation17 + $0xf0] ss:$8 sps:$4 sm:$0xff]  }
 0x6f1   :  { %3648 = vmatmul.mubr.bf16.gmra.mrb[72].mxu1 %v6684_v51 }
 0x6f2   :  { %3677 = vmatpush1.bf16.msra.mxu1 %v6427_v49  ;;  %3657 = vmatprep.mubr.bf16.mxu1 %v6685_v53 }
 0x6f3   :  { %3678 = vmatprep.subr.bf16.mxu1 %v6432_v50 }
 0x6f6   :  { %3679 = vmatpush1.bf16.msra.mxu1 %v6430_v52 }
 0x6f7   :  { %3680 = vmatprep.subr.bf16.mxu1 %v6435_v41  ;;  %v6504_v41 = vld [vmem:[#allocation16 + $0x8] sm:$0xff]  }
 0x6f9   :  { %3658 = vmatmul.mubr.bf16.gmra.mrb[76].mxu1 %v6686_v55 }
 0x6fa   :  { %3681 = vmatpush1.bf16.msra.mxu1 %v6433_v42  ;;  %3700 = vmatprep.mubr.bf16.mxu1 %v7082_v59 }
 0x6fb   :  { %3682 = vmatprep.subr.bf16.mxu1 %v6438_v54 }
 0x6fe   :  { %3683 = vmatpush1.bf16.msra.mxu1 %v6436_v56 }
 0x6ff   :  { %3901 = vmatprep.subr.bf16.mxu1 %v6441_v57 }
 0x701   :  { %3701 = vmatmul.mubr.bf16.vlgmr.msra.gmra.mrb[64].mxu1 %v6687_v61  ;;  %v6505_v61 = vld [vmem:[#allocation16 + $0x10] sm:$0xff]  }
 0x702   :  { %3902 = vmatpush1.bf16.msra.mxu1 %v6439_v58  ;;  %3710 = vmatprep.mubr.bf16.mxu1 %v7082_v59 }
 0x703   :  { %3903 = vmatprep.subr.bf16.mxu1 %v6444_v60 }
 0x706   :  { %3904 = vmatpush1.bf16.msra.mxu1 %v6442_v62 }
 0x707   :  { %3905 = vmatprep.subr.bf16.mxu1 %v6447_v63 }
 0x709   :  { %3711 = vmatmul.mubr.bf16.gmra.mrb[68].mxu1 %v6688_v2 }
 0x70a   :  { %3906 = vmatpush1.bf16.msra.mxu1 %v6445_v0  ;;  %3720 = vmatprep.mubr.bf16.mxu1 %v7082_v59 }
 0x70b   :  { %3907 = vmatprep.subr.bf16.mxu1 %v6450_v1 }
 0x70e   :  { %3908 = vmatpush1.bf16.msra.mxu1 %v6448_v3 }
 0x70f   :  { %3909 = vmatprep.subr.bf16.mxu1 %v6453_v6 }
 0x711   :  { %3721 = vmatmul.mubr.bf16.gmra.mrb[72].mxu1 %v6689_v13 }
 0x712   :  { %3910 = vmatpush1.bf16.msra.mxu1 %v6451_v4  ;;  %3730 = vmatprep.mubr.bf16.mxu1 %v7082_v59  ;;  %v6477_v59 = vld [vmem:[#allocation17 + $0xa4] ss:$8 sps:$4 sm:$0xff]   ;;  %v6506_v4 = vld [vmem:[#allocation16 + $0x18] sm:$0xff]  }
 0x713   :  { %3911 = vmatprep.subr.bf16.mxu1 %v6456_v5 }
 0x716   :  { %3912 = vmatpush1.bf16.msra.mxu1 %v6454_v14 }
 0x717   :  { %3913 = vmatprep.subr.bf16.mxu1 %v6459_v15 }
 0x719   :  { %3731 = vmatmul.mubr.bf16.gmra.mrb[76].mxu1 %v6690_v18 }
 0x71a   :  { %3914 = vmatpush1.bf16.msra.mxu1 %v6457_v16 }
 0x71b   :  { %3915 = vmatprep.subr.bf16.mxu1 %v6462_v17 }
 0x71e   :  { %3916 = vmatpush1.bf16.msra.mxu1 %v6460_v19 }
 0x71f   :  { %3917 = vmatprep.subr.bf16.mxu1 %v6467_v20 }
 0x722   :  { %3918 = vmatpush1.bf16.msra.mxu1 %v6465_v21 }
 0x723   :  { %3919 = vmatprep.subr.bf16.mxu1 %v6472_v22 }
 0x726   :  { %3920 = vmatpush1.bf16.msra.mxu1 %v6470_v23 }
 0x727   :  { %3921 = vmatprep.subr.bf16.mxu1 %v6477_v59 }
 0x72a   :  { %3922 = vmatpush1.bf16.msra.mxu1 %v6475_v7 }
 0x72b   :  { %3923 = vmatprep.subr.bf16.mxu1 %v6482_v11 }
 0x72e   :  { %3924 = vmatpush1.bf16.msra.mxu1 %v6480_v9 }
 0x72f   :  { %3925 = vmatprep.subr.bf16.mxu1 %v6487_v12 }
 0x732   :  { %3926 = vmatpush1.bf16.msra.mxu1 %v6485_v24 }
 0x733   :  { %3927 = vmatprep.subr.bf16.mxu1 %v6492_v26 }
 0x734   :  { %v2599_v31 = vpop.f32.mrb[48].mxu1 }
 0x735   :  { %v2600_v33 = vadd.f32 %v2599_v31, %v7590_v27  ;;  %v2601_v34 = vpop.f32.mrb[49].mxu1 }
 0x736   :  { %v2602_v35 = vadd.f32 %v2601_v34, %v7593_v29  ;;  %3928 = vmatpush1.bf16.msra.mxu1 %v6490_v28  ;;  %v2603_v36 = vpop.f32.mrb[50].mxu1  ;;  %v6507_v34 = vld [vmem:[#allocation16 + $0x20] sm:$0xff]  }
 0x737   :  { %v2604_v37 = vadd.f32 %v2603_v36, %v7590_v27  ;;  %v2605_v40 = vpop.f32.mrb[51].mxu1  ;;  %3929 = vmatprep.subr.bf16.mxu1 %v6497_v30  ;;  %v2638_v44 = vmax.f32 %v2600_v33, 0.0  ;;  %v6513_v36 = vld [vmem:[#allocation20 + $0x4] ss:$8 sps:$4 sm:$0xff]  }
 0x738   :  { %v2606_v38 = vadd.f32 %v2605_v40, %v7593_v29  ;;  %v2639_v46 = vmax.f32 %v2602_v35, 0.0  ;;  %v6508_v35 = vld [vmem:[#allocation16 + $0x28] sm:$0xff]  }
 0x739   :  { %v2640_v45 = vmax.f32 %v2604_v37, 0.0 }
 0x73a   :  { %v2641_v47 = vmax.f32 %v2606_v38, 0.0  ;;  %3930 = vmatpush1.bf16.msra.mxu1 %v6495_v39  ;;  %v3974_v39 = vld [vmem:[%s7797_s23] sm:$0x3] }
 0x73b   :  { %v2654_v49 = vpack.c.bf16 %v2640_v45, %v2638_v44  ;;  %3931 = vmatprep.subr.bf16.mxu1 %v6502_v43  ;;  %v7616_v37 = vrot.slane %v3974_v39, %v7490_v8  ;;  %v7619_v43 = vrot.slane %v3974_v39, %v7495_v10  ;;  %v7624_v38 = vld [vmem:[%s7795_s21] ss:$0 sm:$0xff] }
 0x73c   :  { %v2655_v50 = vpack.c.bf16 %v2641_v47, %v2639_v46  ;;  %v2609_v51 = vpop.f32.mrb[52].mxu1 }
 0x73d   :  { %v2610_v52 = vadd.f32 %v2609_v51, %v7590_v27  ;;  %v2611_v53 = vpop.f32.mrb[53].mxu1 }
 0x73e   :  { %v2612_v42 = vadd.f32 %v2611_v53, %v7593_v29  ;;  %3932 = vmatpush1.bf16.msra.mxu1 %v6500_v48  ;;  %v2613_v54 = vpop.f32.mrb[54].mxu1  ;;  %2829 = vmatprep.mubr.bf16.mxu0 %v2655_v50 }
 0x73f   :  { %v2614_v55 = vadd.f32 %v2613_v54, %v7590_v27  ;;  %3933 = vmatprep.mubr.bf16.mxu1 %v2655_v50  ;;  %v2615_v56 = vpop.f32.mrb[55].mxu1  ;;  %2830 = vmatmul.mubr.bf16.vlgmr.msra.gmra.mrb[32].mxu0 %v2654_v49  ;;  %v2642_v58 = vmax.f32 %v2610_v52, 0.0 }
 0x740   :  { %v2616_v57 = vadd.f32 %v2615_v56, %v7593_v29  ;;  %5773 = vmatpush3.bf16.msra.mxu0 %v7579_v32  ;;  %v2643_v62 = vmax.f32 %v2612_v42, 0.0 }
 0x741   :  { %v2644_v60 = vmax.f32 %v2614_v55, 0.0  ;;  %3934 = vmatmul.mubr.bf16.vlgmr.msra.gmra.mrb[64].mxu1 %v2654_v49  ;;  %5774 = vmatprep.subr.bf16.mxu0 %v6504_v41 }
 0x742   :  { %v2645_v63 = vmax.f32 %v2616_v57, 0.0 }
 0x743   :  { %v2656_v0 = vpack.c.bf16 %v2644_v60, %v2642_v58 }
 0x744   :  { %v2657_v1 = vpack.c.bf16 %v2645_v63, %v2643_v62  ;;  %v2619_v2 = vpop.f32.mrb[56].mxu1  ;;  %5775 = vmatpush3.bf16.msra.mxu0 %v6504_v41 }
 0x745   :  { %v2620_v3 = vadd.f32 %v2619_v2, %v7590_v27  ;;  %v2621_v6 = vpop.f32.mrb[57].mxu1  ;;  %5776 = vmatprep.subr.bf16.mxu0 %v6505_v61 }
 0x746   :  { %v2622_v5 = vadd.f32 %v2621_v6, %v7593_v29  ;;  %v2623_v13 = vpop.f32.mrb[58].mxu1  ;;  %2837 = vmatprep.mubr.bf16.mxu0 %v2657_v1  ;;  %3943 = vmatprep.mubr.bf16.mxu1 %v2657_v1 }
 0x747   :  { %v2624_v32 = vadd.f32 %v2623_v13, %v7590_v27  ;;  %v2625_v14 = vpop.f32.mrb[59].mxu1  ;;  %2838 = vmatmul.mubr.bf16.gmra.mrb[36].mxu0 %v2656_v0  ;;  %v2646_v16 = vmax.f32 %v2620_v3, 0.0 }
 0x748   :  { %v2626_v15 = vadd.f32 %v2625_v14, %v7593_v29  ;;  %5777 = vmatpush3.bf16.msra.mxu0 %v6505_v61  ;;  %v2647_v18 = vmax.f32 %v2622_v5, 0.0 }
 0x749   :  { %v2648_v17 = vmax.f32 %v2624_v32, 0.0  ;;  %3944 = vmatmul.mubr.bf16.gmra.mrb[68].mxu1 %v2656_v0  ;;  %5778 = vmatprep.subr.bf16.mxu0 %v6506_v4 }
 0x74a   :  { %v2649_v19 = vmax.f32 %v2626_v15, 0.0 }
 0x74b   :  { %v2658_v20 = vpack.c.bf16 %v2648_v17, %v2646_v16 }
 0x74c   :  { %v2659_v21 = vpack.c.bf16 %v2649_v19, %v2647_v18  ;;  %v2629_v22 = vpop.f32.mrb[60].mxu1  ;;  %5779 = vmatpush3.bf16.msra.mxu0 %v6506_v4 }
 0x74d   :  { %v2630_v23 = vadd.f32 %v2629_v22, %v7590_v27  ;;  %v2631_v59 = vpop.f32.mrb[61].mxu1  ;;  %5780 = vmatprep.subr.bf16.mxu0 %v6507_v34 }
 0x74e   :  { %v2632_v7 = vadd.f32 %v2631_v59, %v7593_v29  ;;  %v2633_v11 = vpop.f32.mrb[62].mxu1  ;;  %2845 = vmatprep.mubr.bf16.mxu0 %v2659_v21  ;;  %3953 = vmatprep.mubr.bf16.mxu1 %v2659_v21 }
 0x74f   :  { %v2634_v9 = vadd.f32 %v2633_v11, %v7590_v27  ;;  %v2635_v12 = vpop.f32.mrb[63].mxu1  ;;  %2846 = vmatmul.mubr.bf16.gmra.mrb[40].mxu0 %v2658_v20  ;;  %v2650_v25 = vmax.f32 %v2630_v23, 0.0  ;;  %v6509_v27 = vld [vmem:[#allocation16 + $0x30] sm:$0xff]  }
 0x750   :  { %v2636_v24 = vadd.f32 %v2635_v12, %v7593_v29  ;;  %v2651_v28 = vmax.f32 %v2632_v7, 0.0  ;;  %5781 = vmatpush3.bf16.msra.mxu0 %v6507_v34  ;;  %v6510_v29 = vld [vmem:[#allocation16 + $0x38] sm:$0xff]  }
 0x751   :  { %v2652_v26 = vmax.f32 %v2634_v9, 0.0  ;;  %3954 = vmatmul.mubr.bf16.gmra.mrb[72].mxu1 %v2658_v20  ;;  %5782 = vmatprep.subr.bf16.mxu0 %v6508_v35 }
 0x752   :  { %v2653_v30 = vmax.f32 %v2636_v24, 0.0 }
 0x753   :  { %v2660_v31 = vpack.c.bf16 %v2652_v26, %v2650_v25 }
 0x754   :  { %v2661_v33 = vpack.c.bf16 %v2653_v30, %v2651_v28  ;;  %5783 = vmatpush3.bf16.msra.mxu0 %v6508_v35  ;;  %v6511_v30 = vld [vmem:[#allocation20] ss:$8 sps:$4 sm:$0xff]  }
 0x755   :  { %5784 = vmatprep.subr.bf16.mxu0 %v6509_v27 }
 0x756   :  { %2853 = vmatprep.mubr.bf16.mxu0 %v2661_v33  ;;  %3963 = vmatprep.mubr.bf16.mxu1 %v2661_v33 }
 0x757   :  { %2854 = vmatmul.mubr.bf16.gmra.mrb[44].mxu0 %v2660_v31 }
 0x758   :  { %5785 = vmatpush3.bf16.msra.mxu0 %v6509_v27 }
 0x759   :  { %3964 = vmatmul.mubr.bf16.gmra.mrb[76].mxu1 %v2660_v31  ;;  %5786 = vmatprep.subr.bf16.mxu0 %v6510_v29 }
 0x75c   :  { %5787 = vmatpush3.bf16.msra.mxu0 %v6510_v29  ;;  %v6516_v29 = vld [vmem:[#allocation20 + $0x14] ss:$8 sps:$4 sm:$0xff]  }
 0x75d   :  { %4230 = vmatprep.subr.bf16.mxu0 %v6513_v36 }
 0x812   :  { %v5696_v40 = vpop.f32.mrb[32].mxu0 }
 0x813   :  { %v5697_v44 = vpop.f32.mrb[33].mxu0 }
 0x814   :  { %v5698_v45 = vadd.f32 %v5697_v44, %v5696_v40  ;;  %v3935_v46 = vpop.f32.mrb[64].mxu1  ;;  %v5699_v47 = vpop.f32.mrb[34].mxu0 }
 0x815   :  { %v3986_v48 = vadd.f32 %v7616_v37, %v3935_v46  ;;  %v3937_v49 = vpop.f32.mrb[65].mxu1  ;;  %v5700_v50 = vpop.f32.mrb[35].mxu0 }
 0x816   :  { %v2832_v51 = vadd.f32 %v5698_v45, %v7624_v38  ;;  %v3987_v52 = vadd.f32 %v7619_v43, %v3937_v49  ;;  %v5701_v53 = vadd.f32 %v5700_v50, %v5699_v47  ;;  %v3939_v41 = vpop.f32.mrb[66].mxu1  ;;  %v6514_v50 = vld [vmem:[#allocation20 + $0x10] ss:$8 sps:$4 sm:$0xff]  }
 0x817   :  { %v3988_v42 = vadd.f32 %v7616_v37, %v3939_v41  ;;  %v3941_v54 = vpop.f32.mrb[67].mxu1  ;;  %v4002_v57 = vmax.f32 %v3986_v48, 0.0 }
 0x818   :  { %v2835_v55 = vadd.f32 %v5701_v53, %v7624_v38  ;;  %v3989_v56 = vadd.f32 %v7619_v43, %v3941_v54  ;;  %v2862_v60 = vmax.f32 %v2832_v51, 0.0  ;;  %v4003_v61 = vmax.f32 %v3987_v52, 0.0  ;;  %v6519_v53 = vld [vmem:[#allocation20 + $0x24] ss:$8 sps:$4 sm:$0xff]  }
 0x819   :  { %v4004_v58 = vmax.f32 %v3988_v42, 0.0 }
 0x81a   :  { %v2863_v62 = vmax.f32 %v2835_v55, 0.0  ;;  %v4005_v63 = vmax.f32 %v3989_v56, 0.0  ;;  %v5702_v0 = vpop.f32.mrb[36].mxu0 }
 0x81b   :  { %v7632_v1 = vpack.c.bf16 %v4004_v58, %v4002_v57  ;;  %v5703_v2 = vpop.f32.mrb[37].mxu0 }
 0x81c   :  { %v7634_v3 = vpack.c.bf16 %v4005_v63, %v4003_v61  ;;  %v5704_v6 = vadd.f32 %v5703_v2, %v5702_v0  ;;  %v3945_v4 = vpop.f32.mrb[68].mxu1  ;;  %v5705_v5 = vpop.f32.mrb[38].mxu0  ;;  %v2870_v13 = vpack.c.bf16 %v2863_v62, %v2862_v60  ;;  %v6517_v62 = vld [vmem:[#allocation20 + $0x20] ss:$8 sps:$4 sm:$0xff]  }
 0x81d   :  { %v3990_v32 = vadd.f32 %v7616_v37, %v3945_v4  ;;  %v3947_v14 = vpop.f32.mrb[69].mxu1  ;;  %v5706_v15 = vpop.f32.mrb[39].mxu0 }
 0x81e   :  { %v2840_v16 = vadd.f32 %v5704_v6, %v7624_v38  ;;  %v3991_v17 = vadd.f32 %v7619_v43, %v3947_v14  ;;  %v5707_v18 = vadd.f32 %v5706_v15, %v5705_v5  ;;  %v3949_v19 = vpop.f32.mrb[70].mxu1  ;;  %5788 = vmatprep.mubr.bf16.mxu0 %v2870_v13  ;;  %v6522_v5 = vld [vmem:[#allocation20 + $0x34] ss:$8 sps:$4 sm:$0xff]  }
 0x81f   :  { %v3992_v20 = vadd.f32 %v7616_v37, %v3949_v19  ;;  %v3951_v21 = vpop.f32.mrb[71].mxu1  ;;  %v4006_v59 = vmax.f32 %v3990_v32, 0.0 }
 0x820   :  { %v2843_v22 = vadd.f32 %v5707_v18, %v7624_v38  ;;  %v3993_v23 = vadd.f32 %v7619_v43, %v3951_v21  ;;  %v2864_v11 = vmax.f32 %v2840_v16, 0.0  ;;  %v4007_v9 = vmax.f32 %v3991_v17, 0.0  ;;  %v6520_v21 = vld [vmem:[#allocation20 + $0x30] ss:$8 sps:$4 sm:$0xff]  }
 0x821   :  { %v4008_v7 = vmax.f32 %v3992_v20, 0.0 }
 0x822   :  { %v2865_v12 = vmax.f32 %v2843_v22, 0.0  ;;  %v4009_v24 = vmax.f32 %v3993_v23, 0.0  ;;  %v5708_v25 = vpop.f32.mrb[40].mxu0 }
 0x823   :  { %v7642_v26 = vpack.c.bf16 %v4008_v7, %v4006_v59  ;;  %v5709_v28 = vpop.f32.mrb[41].mxu0  ;;  %v6525_v59 = vld [vmem:[#allocation20 + $0x44] ss:$8 sps:$4 sm:$0xff]  }
 0x824   :  { %v2871_v31 = vpack.c.bf16 %v2865_v12, %v2864_v11  ;;  %v7644_v33 = vpack.c.bf16 %v4009_v24, %v4007_v9  ;;  %v5710_v34 = vadd.f32 %v5709_v28, %v5708_v25  ;;  %v3955_v35 = vpop.f32.mrb[72].mxu1  ;;  %v5711_v27 = vpop.f32.mrb[42].mxu0 }
 0x825   :  { %v3994_v36 = vadd.f32 %v7616_v37, %v3955_v35  ;;  %v3957_v39 = vpop.f32.mrb[73].mxu1  ;;  %v5712_v40 = vpop.f32.mrb[43].mxu0  ;;  %v6529_v35 = vld [vmem:[#allocation20 + $0x60] ss:$8 sps:$4 sm:$0xff]  }
 0x826   :  { %v2848_v44 = vadd.f32 %v5710_v34, %v7624_v38  ;;  %v3995_v45 = vadd.f32 %v7619_v43, %v3957_v39  ;;  %v5713_v46 = vadd.f32 %v5712_v40, %v5711_v27  ;;  %v3959_v47 = vpop.f32.mrb[74].mxu1  ;;  %5789 = vmatmul.mubr.bf16.vlgmr.msra.gmra.mrb[48].mxu0 %v2871_v31  ;;  %v6528_v34 = vld [vmem:[#allocation20 + $0x54] ss:$8 sps:$4 sm:$0xff]   ;;  %v6535_v39 = vld [vmem:[#allocation20 + $0x80] ss:$8 sps:$4 sm:$0xff]  }
 0x827   :  { %v3996_v48 = vadd.f32 %v7616_v37, %v3959_v47  ;;  %v3961_v49 = vpop.f32.mrb[75].mxu1  ;;  %4231 = vmatpush1.bf16.msra.mxu0 %v6511_v30  ;;  %v4010_v41 = vmax.f32 %v3994_v36, 0.0  ;;  %v6523_v30 = vld [vmem:[#allocation20 + $0x40] ss:$8 sps:$4 sm:$0xff]   ;;  %v6534_v27 = vld [vmem:[#allocation20 + $0x74] ss:$8 sps:$4 sm:$0xff]  }
 0x828   :  { %v2851_v51 = vadd.f32 %v5713_v46, %v7624_v38  ;;  %v3997_v52 = vadd.f32 %v7619_v43, %v3961_v49  ;;  %4232 = vmatprep.subr.bf16.mxu0 %v6516_v29  ;;  %v2866_v54 = vmax.f32 %v2848_v44, 0.0  ;;  %v4011_v55 = vmax.f32 %v3995_v45, 0.0  ;;  %v6532_v29 = vld [vmem:[#allocation20 + $0x70] ss:$8 sps:$4 sm:$0xff]   ;;  %v6537_v36 = vld [vmem:[#allocation20 + $0x84] ss:$8 sps:$4 sm:$0xff]  }
 0x829   :  { %v4012_v42 = vmax.f32 %v3996_v48, 0.0  ;;  %v6540_v40 = vld [vmem:[#allocation20 + $0x94] ss:$8 sps:$4 sm:$0xff]   ;;  %v6538_v44 = vld [vmem:[#allocation20 + $0x90] ss:$8 sps:$4 sm:$0xff]  }
 0x82a   :  { %v2867_v56 = vmax.f32 %v2851_v51, 0.0  ;;  %v4013_v57 = vmax.f32 %v3997_v52, 0.0  ;;  %v5714_v58 = vpop.f32.mrb[44].mxu0  ;;  %v6543_v45 = vld [vmem:[#allocation20 + $0xa4] ss:$8 sps:$4 sm:$0xff]  }
 0x82b   :  { %v7652_v60 = vpack.c.bf16 %v4012_v42, %v4010_v41  ;;  %4233 = vmatpush1.bf16.msra.mxu0 %v6514_v50  ;;  %v5715_v61 = vpop.f32.mrb[45].mxu0  ;;  %v6546_v46 = vld [vmem:[#allocation20 + $0xb4] ss:$8 sps:$4 sm:$0xff]   ;;  %v6544_v47 = vld [vmem:[#allocation20 + $0xb0] ss:$8 sps:$4 sm:$0xff]  }
 0x82c   :  { %v7654_v63 = vpack.c.bf16 %v4013_v57, %v4011_v55  ;;  %v5716_v0 = vadd.f32 %v5715_v61, %v5714_v58  ;;  %v3965_v2 = vpop.f32.mrb[76].mxu1  ;;  %v5717_v6 = vpop.f32.mrb[46].mxu0  ;;  %4234 = vmatprep.subr.bf16.mxu0 %v6519_v53  ;;  %v2872_v4 = vpack.c.bf16 %v2867_v56, %v2866_v54  ;;  %v6549_v48 = vld [vmem:[#allocation20 + $0xc4] ss:$8 sps:$4 sm:$0xff]   ;;  %v6547_v49 = vld [vmem:[#allocation20 + $0xc0] ss:$8 sps:$4 sm:$0xff]  }
 0x82d   :  { %v3998_v13 = vadd.f32 %v7616_v37, %v3965_v2  ;;  %v3967_v32 = vpop.f32.mrb[77].mxu1  ;;  %v5718_v14 = vpop.f32.mrb[47].mxu0  ;;  %v6552_v50 = vld [vmem:[#allocation20 + $0xd4] ss:$8 sps:$4 sm:$0xff]   ;;  %v6550_v51 = vld [vmem:[#allocation20 + $0xd0] ss:$8 sps:$4 sm:$0xff]  }
 0x82e   :  { %v2856_v15 = vadd.f32 %v5716_v0, %v7624_v38  ;;  %v3999_v16 = vadd.f32 %v7619_v43, %v3967_v32  ;;  %v5719_v17 = vadd.f32 %v5718_v14, %v5717_v6  ;;  %v3969_v18 = vpop.f32.mrb[78].mxu1  ;;  %5792 = vmatprep.mubr.bf16.mxu0 %v2872_v4  ;;  %v6555_v52 = vld [vmem:[#allocation20 + $0xe4] ss:$8 sps:$4 sm:$0xff]   ;;  %v6553_v53 = vld [vmem:[#allocation20 + $0xe0] ss:$8 sps:$4 sm:$0xff]  }
 0x82f   :  { %v4000_v19 = vadd.f32 %v7616_v37, %v3969_v18  ;;  %v3971_v20 = vpop.f32.mrb[79].mxu1  ;;  %4235 = vmatpush1.bf16.msra.mxu0 %v6517_v62  ;;  %v4014_v7 = vmax.f32 %v3998_v13, 0.0  ;;  %v6558_v41 = vld [vmem:[#allocation20 + $0xf4] ss:$8 sps:$4 sm:$0xff]   ;;  %v6556_v42 = vld [vmem:[#allocation20 + $0xf0] ss:$8 sps:$4 sm:$0xff]  }
 0x830   :  { %v2859_v22 = vadd.f32 %v5719_v17, %v7624_v38  ;;  %v4001_v23 = vadd.f32 %v7619_v43, %v3971_v20  ;;  %4236 = vmatprep.subr.bf16.mxu0 %v6522_v5  ;;  %v2868_v9 = vmax.f32 %v2856_v15, 0.0  ;;  %v4015_v12 = vmax.f32 %v3999_v16, 0.0  ;;  %v6526_v43 = vld [vmem:[#allocation20 + $0x50] ss:$8 sps:$4 sm:$0xff]   ;;  %v6531_v38 = vld [vmem:[#allocation20 + $0x64] ss:$8 sps:$4 sm:$0xff]  }
 0x831   :  { %v4016_v11 = vmax.f32 %v4000_v19, 0.0  ;;  %v6559_v54 = vld [vmem:[#allocation22] ss:$8 sps:$4 sm:$0xff]   ;;  %v6561_v55 = vld [vmem:[#allocation22 + $0x4] ss:$8 sps:$4 sm:$0xff]  }
 0x832   :  { %v2869_v24 = vmax.f32 %v2859_v22, 0.0  ;;  %v4017_v25 = vmax.f32 %v4001_v23, 0.0  ;;  %v6564_v56 = vld [vmem:[#allocation22 + $0x14] ss:$8 sps:$4 sm:$0xff]   ;;  %v6562_v57 = vld [vmem:[#allocation22 + $0x10] ss:$8 sps:$4 sm:$0xff]  }
 0x833   :  { %v4024_v28 = vpack.c.bf16 %v4016_v11, %v4014_v7  ;;  %4237 = vmatpush1.bf16.msra.mxu0 %v6520_v21  ;;  %v6567_v58 = vld [vmem:[#allocation22 + $0x24] ss:$8 sps:$4 sm:$0xff]   ;;  %v6576_v62 = vld [vmem:[#allocation22 + $0x54] ss:$8 sps:$4 sm:$0xff]   ;;  %v6577_v2 = vld [vmem:[#allocation22 + $0x60] ss:$8 sps:$4 sm:$0xff]  }
 0x834   :  { %v4025_v31 = vpack.c.bf16 %v4017_v25, %v4015_v12  ;;  %4238 = vmatprep.subr.bf16.mxu0 %v6525_v59  ;;  %v2873_v37 = vpack.c.bf16 %v2869_v24, %v2868_v9  ;;  %v6573_v61 = vld [vmem:[#allocation22 + $0x44] ss:$8 sps:$4 sm:$0xff]   ;;  %v6582_v6 = vld [vmem:[#allocation22 + $0x74] ss:$8 sps:$4 sm:$0xff]   ;;  %v6580_v4 = vld [vmem:[#allocation22 + $0x70] ss:$8 sps:$4 sm:$0xff]  }
 0x835   :  { %v6579_v0 = vld [vmem:[#allocation22 + $0x64] ss:$8 sps:$4 sm:$0xff]   ;;  %v6583_v13 = vld [vmem:[#allocation22 + $0x80] ss:$8 sps:$4 sm:$0xff]   ;;  %v6588_v32 = vld [vmem:[#allocation22 + $0x94] ss:$8 sps:$4 sm:$0xff]  }
 0x836   :  { %5793 = vmatmul.mubr.bf16.gmra.mrb[52].mxu0 %v2873_v37  ;;  %v6585_v5 = vld [vmem:[#allocation22 + $0x84] ss:$8 sps:$4 sm:$0xff]   ;;  %v6586_v14 = vld [vmem:[#allocation22 + $0x90] ss:$8 sps:$4 sm:$0xff]   ;;  %v6589_v16 = vld [vmem:[#allocation22 + $0xa0] ss:$8 sps:$4 sm:$0xff]  }
 0x837   :  { %4239 = vmatpush1.bf16.msra.mxu0 %v6523_v30  ;;  %4262 = vmatprep.mubr.bf16.mxu0 %v7634_v3  ;;  %v6541_v3 = vld [vmem:[#allocation20 + $0xa0] ss:$8 sps:$4 sm:$0xff]   ;;  %v6591_v15 = vld [vmem:[#allocation22 + $0xa4] ss:$8 sps:$4 sm:$0xff]   ;;  %v6594_v17 = vld [vmem:[#allocation22 + $0xb4] ss:$8 sps:$4 sm:$0xff]  }
 0x838   :  { %4240 = vmatprep.subr.bf16.mxu0 %v6528_v34  ;;  %v6592_v18 = vld [vmem:[#allocation22 + $0xb0] ss:$8 sps:$4 sm:$0xff]   ;;  %v6597_v19 = vld [vmem:[#allocation22 + $0xc4] ss:$8 sps:$4 sm:$0xff]   ;;  %v6595_v20 = vld [vmem:[#allocation22 + $0xc0] ss:$8 sps:$4 sm:$0xff]  }
 0x839   :  { %v6600_v21 = vld [vmem:[#allocation22 + $0xd4] ss:$8 sps:$4 sm:$0xff]   ;;  %v6598_v22 = vld [vmem:[#allocation22 + $0xd0] ss:$8 sps:$4 sm:$0xff]   ;;  %v6603_v23 = vld [vmem:[#allocation22 + $0xe4] ss:$8 sps:$4 sm:$0xff]  }
 0x83a   :  { %v6601_v59 = vld [vmem:[#allocation22 + $0xe0] ss:$8 sps:$4 sm:$0xff]   ;;  %v6606_v7 = vld [vmem:[#allocation22 + $0xf4] ss:$8 sps:$4 sm:$0xff]   ;;  %v6604_v11 = vld [vmem:[#allocation22 + $0xf0] ss:$8 sps:$4 sm:$0xff]  }
 0x83b   :  { %4241 = vmatpush1.bf16.msra.mxu0 %v6526_v43  ;;  %v6609_v9 = vld [vmem:[#allocation23 + $0x4] ss:$8 sps:$4 sm:$0xff]   ;;  %v4058_v43 = vld [vmem:[%s7798_s24] sm:$0x3] }
 0x83c   :  { %4242 = vmatprep.subr.bf16.mxu0 %v6531_v38  ;;  %v7688_v38 = vrot.slane %v4058_v43, %v7490_v8 }
 0x83f   :  { %4243 = vmatpush1.bf16.msra.mxu0 %v6529_v35  ;;  %v7691_v35 = vrot.slane %v4058_v43, %v7495_v10  ;;  %v6619_v43 = vld [vmem:[#allocation23 + $0x40] ss:$8 sps:$4 sm:$0xff]  }
 0x840   :  { %4244 = vmatprep.subr.bf16.mxu0 %v6534_v27 }
 0x843   :  { %4245 = vmatpush1.bf16.msra.mxu0 %v6532_v29 }
 0x844   :  { %4246 = vmatprep.subr.bf16.mxu0 %v6537_v36 }
 0x847   :  { %4247 = vmatpush1.bf16.msra.mxu0 %v6535_v39 }
 0x848   :  { %4248 = vmatprep.subr.bf16.mxu0 %v6540_v40 }
 0x84b   :  { %4249 = vmatpush1.bf16.msra.mxu0 %v6538_v44 }
 0x84c   :  { %4250 = vmatprep.subr.bf16.mxu0 %v6543_v45 }
 0x84f   :  { %4251 = vmatpush1.bf16.msra.mxu0 %v6541_v3 }
 0x850   :  { %4252 = vmatprep.subr.bf16.mxu0 %v6546_v46 }
 0x853   :  { %4253 = vmatpush1.bf16.msra.mxu0 %v6544_v47 }
 0x854   :  { %4254 = vmatprep.subr.bf16.mxu0 %v6549_v48 }
 0x857   :  { %4255 = vmatpush1.bf16.msra.mxu0 %v6547_v49 }
 0x858   :  { %4256 = vmatprep.subr.bf16.mxu0 %v6552_v50 }
 0x85b   :  { %4257 = vmatpush1.bf16.msra.mxu0 %v6550_v51 }
 0x85c   :  { %4258 = vmatprep.subr.bf16.mxu0 %v6555_v52 }
 0x85f   :  { %4259 = vmatpush1.bf16.msra.mxu0 %v6553_v53  ;;  %v6607_v53 = vld [vmem:[#allocation23] ss:$8 sps:$4 sm:$0xff]  }
 0x860   :  { %4260 = vmatprep.subr.bf16.mxu0 %v6558_v41 }
 0x863   :  { %4261 = vmatpush1.bf16.msra.mxu0 %v6556_v42 }
 0x864   :  { %4531 = vmatprep.subr.bf16.mxu0 %v6561_v55 }
 0x866   :  { %4263 = vmatmul.mubr.bf16.vlgmr.msra.gmra.mrb[56].mxu0 %v7632_v1  ;;  %v6565_v1 = vld [vmem:[#allocation22 + $0x20] ss:$8 sps:$4 sm:$0xff]  }
 0x867   :  { %4272 = vmatprep.mubr.bf16.mxu0 %v7644_v33  ;;  %4532 = vmatpush1.bf16.msra.mxu0 %v6559_v54  ;;  %v6568_v33 = vld [vmem:[#allocation22 + $0x30] ss:$8 sps:$4 sm:$0xff]   ;;  %v6612_v54 = vld [vmem:[#allocation23 + $0x14] ss:$8 sps:$4 sm:$0xff]  }
 0x868   :  { %4533 = vmatprep.subr.bf16.mxu0 %v6564_v56 }
 0x86b   :  { %4534 = vmatpush1.bf16.msra.mxu0 %v6562_v57 }
 0x86c   :  { %4535 = vmatprep.subr.bf16.mxu0 %v6567_v58 }
 0x86e   :  { %4273 = vmatmul.mubr.bf16.gmra.mrb[60].mxu0 %v7642_v26  ;;  %v6570_v26 = vld [vmem:[#allocation22 + $0x34] ss:$8 sps:$4 sm:$0xff]  }
 0x86f   :  { %4282 = vmatprep.mubr.bf16.mxu0 %v7654_v63  ;;  %4536 = vmatpush1.bf16.msra.mxu0 %v6565_v1  ;;  %v6574_v63 = vld [vmem:[#allocation22 + $0x50] ss:$8 sps:$4 sm:$0xff]  }
 0x870   :  { %4537 = vmatprep.subr.bf16.mxu0 %v6570_v26 }
 0x873   :  { %4538 = vmatpush1.bf16.msra.mxu0 %v6568_v33  ;;  %v6610_v33 = vld [vmem:[#allocation23 + $0x10] ss:$8 sps:$4 sm:$0xff]  }
 0x874   :  { %4539 = vmatprep.subr.bf16.mxu0 %v6573_v61 }
 0x876   :  { %4283 = vmatmul.mubr.bf16.gmra.mrb[64].mxu0 %v7652_v60  ;;  %v6571_v60 = vld [vmem:[#allocation22 + $0x40] ss:$8 sps:$4 sm:$0xff]  }
 0x877   :  { %4292 = vmatprep.mubr.bf16.mxu0 %v4025_v31  ;;  %4540 = vmatpush1.bf16.msra.mxu0 %v6571_v60  ;;  %v6615_v60 = vld [vmem:[#allocation23 + $0x24] ss:$8 sps:$4 sm:$0xff]  }
 0x878   :  { %4541 = vmatprep.subr.bf16.mxu0 %v6576_v62 }
 0x87b   :  { %4542 = vmatpush1.bf16.msra.mxu0 %v6574_v63 }
 0x87c   :  { %4543 = vmatprep.subr.bf16.mxu0 %v6579_v0 }
 0x87e   :  { %4293 = vmatmul.mubr.bf16.gmra.mrb[68].mxu0 %v4024_v28 }
 0x87f   :  { %4544 = vmatpush1.bf16.msra.mxu0 %v6577_v2 }
 0x880   :  { %4545 = vmatprep.subr.bf16.mxu0 %v6582_v6 }
 0x883   :  { %4546 = vmatpush1.bf16.msra.mxu0 %v6580_v4  ;;  %v6613_v4 = vld [vmem:[#allocation23 + $0x20] ss:$8 sps:$4 sm:$0xff]  }
 0x884   :  { %4547 = vmatprep.subr.bf16.mxu0 %v6585_v5 }
 0x887   :  { %4548 = vmatpush1.bf16.msra.mxu0 %v6583_v13 }
 0x888   :  { %4549 = vmatprep.subr.bf16.mxu0 %v6588_v32  ;;  %v6618_v32 = vld [vmem:[#allocation23 + $0x34] ss:$8 sps:$4 sm:$0xff]  }
 0x88b   :  { %4550 = vmatpush1.bf16.msra.mxu0 %v6586_v14 }
 0x88c   :  { %4551 = vmatprep.subr.bf16.mxu0 %v6591_v15 }
 0x88f   :  { %4552 = vmatpush1.bf16.msra.mxu0 %v6589_v16 }
 0x890   :  { %4553 = vmatprep.subr.bf16.mxu0 %v6594_v17 }
 0x893   :  { %4554 = vmatpush1.bf16.msra.mxu0 %v6592_v18 }
 0x894   :  { %4555 = vmatprep.subr.bf16.mxu0 %v6597_v19  ;;  %v6616_v19 = vld [vmem:[#allocation23 + $0x30] ss:$8 sps:$4 sm:$0xff]  }
 0x897   :  { %4556 = vmatpush1.bf16.msra.mxu0 %v6595_v20 }
 0x898   :  { %4557 = vmatprep.subr.bf16.mxu0 %v6600_v21 }
 0x89b   :  { %4558 = vmatpush1.bf16.msra.mxu0 %v6598_v22  ;;  %v6621_v22 = vld [vmem:[#allocation23 + $0x44] ss:$8 sps:$4 sm:$0xff]  }
 0x89c   :  { %4559 = vmatprep.subr.bf16.mxu0 %v6603_v23 }
 0x89f   :  { %4560 = vmatpush1.bf16.msra.mxu0 %v6601_v59 }
 0x8a0   :  { %4561 = vmatprep.subr.bf16.mxu0 %v6606_v7 }
 0x8a3   :  { %4562 = vmatpush1.bf16.msra.mxu0 %v6604_v11 }
 0x8a4   :  { %4832 = vmatprep.subr.bf16.mxu0 %v6609_v9 }
 0x8f9   :  { %v7668_v12 = vpop.f32.mrb[48].mxu0 }
 0x8fa   :  { %v7670_v24 = vpop.f32.mrb[49].mxu0 }
 0x8fb   :  { %v7672_v25 = vpop.f32.mrb[50].mxu0 }
 0x8fc   :  { %v7674_v28 = vpop.f32.mrb[51].mxu0 }
 0x909   :  { %v7676_v30 = vpop.f32.mrb[52].mxu0 }
 0x90a   :  { %v7678_v31 = vpop.f32.mrb[53].mxu0 }
 0x90b   :  { %v7680_v37 = vpop.f32.mrb[54].mxu0 }
 0x90c   :  { %v7682_v34 = vpop.f32.mrb[55].mxu0 }
 0x939   :  { %v4264_v27 = vpop.f32.mrb[56].mxu0 }
 0x93a   :  { %v4265_v29 = vadd.f32 %v4264_v27, %v7688_v38  ;;  %v4266_v36 = vpop.f32.mrb[57].mxu0 }
 0x93b   :  { %v4267_v39 = vadd.f32 %v4266_v36, %v7691_v35  ;;  %v4268_v40 = vpop.f32.mrb[58].mxu0  ;;  %v6624_v36 = vld [vmem:[#allocation23 + $0x54] ss:$8 sps:$4 sm:$0xff]  }
 0x93c   :  { %v4269_v44 = vadd.f32 %v4268_v40, %v7688_v38  ;;  %v4270_v45 = vpop.f32.mrb[59].mxu0  ;;  %v4303_v46 = vmax.f32 %v4265_v29, 0.0 }
 0x93d   :  { %v4271_v3 = vadd.f32 %v4270_v45, %v7691_v35  ;;  %v4304_v48 = vmax.f32 %v4267_v39, 0.0 }
 0x93e   :  { %v4305_v47 = vmax.f32 %v4269_v44, 0.0 }
 0x93f   :  { %v4306_v49 = vmax.f32 %v4271_v3, 0.0 }
 0x940   :  { %v4319_v50 = vpack.c.bf16 %v4305_v47, %v4303_v46  ;;  %v6622_v46 = vld [vmem:[#allocation23 + $0x50] ss:$8 sps:$4 sm:$0xff]  }
 0x941   :  { %v4320_v51 = vpack.c.bf16 %v4306_v49, %v4304_v48  ;;  %v4274_v52 = vpop.f32.mrb[60].mxu0  ;;  %v6627_v49 = vld [vmem:[#allocation23 + $0x64] ss:$8 sps:$4 sm:$0xff]  }
 0x942   :  { %v4275_v41 = vadd.f32 %v4274_v52, %v7688_v38  ;;  %v4276_v42 = vpop.f32.mrb[61].mxu0 }
 0x943   :  { %v4277_v55 = vadd.f32 %v4276_v42, %v7691_v35  ;;  %v4278_v56 = vpop.f32.mrb[62].mxu0  ;;  %4563 = vmatprep.mubr.bf16.mxu0 %v4320_v51  ;;  %v6630_v42 = vld [vmem:[#allocation23 + $0x74] ss:$8 sps:$4 sm:$0xff]  }
 0x944   :  { %v4279_v57 = vadd.f32 %v4278_v56, %v7688_v38  ;;  %v4280_v58 = vpop.f32.mrb[63].mxu0  ;;  %4564 = vmatmul.mubr.bf16.vlgmr.msra.gmra.mrb[72].mxu0 %v4319_v50  ;;  %v4307_v26 = vmax.f32 %v4275_v41, 0.0  ;;  %v6625_v41 = vld [vmem:[#allocation23 + $0x60] ss:$8 sps:$4 sm:$0xff]   ;;  %v6634_v56 = vld [vmem:[#allocation23 + $0x90] ss:$8 sps:$4 sm:$0xff]  }
 0x945   :  { %v4281_v1 = vadd.f32 %v4280_v58, %v7691_v35  ;;  %4833 = vmatpush1.bf16.msra.mxu0 %v6607_v53  ;;  %v4308_v62 = vmax.f32 %v4277_v55, 0.0  ;;  %v6636_v55 = vld [vmem:[#allocation23 + $0x94] ss:$8 sps:$4 sm:$0xff]   ;;  %v6637_v58 = vld [vmem:[#allocation23 + $0xa0] ss:$8 sps:$4 sm:$0xff]  }
 0x946   :  { %v4309_v61 = vmax.f32 %v4279_v57, 0.0  ;;  %4834 = vmatprep.subr.bf16.mxu0 %v6612_v54  ;;  %v6631_v54 = vld [vmem:[#allocation23 + $0x80] ss:$8 sps:$4 sm:$0xff]   ;;  %v6639_v57 = vld [vmem:[#allocation23 + $0xa4] ss:$8 sps:$4 sm:$0xff]  }
 0x947   :  { %v4310_v63 = vmax.f32 %v4281_v1, 0.0  ;;  %v6642_v1 = vld [vmem:[#allocation23 + $0xb4] ss:$8 sps:$4 sm:$0xff]  }
 0x948   :  { %v4321_v0 = vpack.c.bf16 %v4309_v61, %v4307_v26  ;;  %v6645_v26 = vld [vmem:[#allocation23 + $0xc4] ss:$8 sps:$4 sm:$0xff]   ;;  %v6643_v61 = vld [vmem:[#allocation23 + $0xc0] ss:$8 sps:$4 sm:$0xff]  }
 0x949   :  { %v4322_v2 = vpack.c.bf16 %v4310_v63, %v4308_v62  ;;  %v4284_v6 = vpop.f32.mrb[64].mxu0  ;;  %4835 = vmatpush1.bf16.msra.mxu0 %v6610_v33  ;;  %v6640_v33 = vld [vmem:[#allocation23 + $0xb0] ss:$8 sps:$4 sm:$0xff]   ;;  %v6651_v63 = vld [vmem:[#allocation23 + $0xe4] ss:$8 sps:$4 sm:$0xff]  }
 0x94a   :  { %v4285_v5 = vadd.f32 %v4284_v6, %v7688_v38  ;;  %v4286_v13 = vpop.f32.mrb[65].mxu0  ;;  %4836 = vmatprep.subr.bf16.mxu0 %v6615_v60  ;;  %v6648_v60 = vld [vmem:[#allocation23 + $0xd4] ss:$8 sps:$4 sm:$0xff]   ;;  %v6646_v62 = vld [vmem:[#allocation23 + $0xd0] ss:$8 sps:$4 sm:$0xff]  }
 0x94b   :  { %v4287_v14 = vadd.f32 %v4286_v13, %v7691_v35  ;;  %v4288_v15 = vpop.f32.mrb[66].mxu0  ;;  %4573 = vmatprep.mubr.bf16.mxu0 %v4322_v2  ;;  %v6654_v2 = vld [vmem:[#allocation23 + $0xf4] ss:$8 sps:$4 sm:$0xff]   ;;  %v6652_v6 = vld [vmem:[#allocation23 + $0xf0] ss:$8 sps:$4 sm:$0xff]   ;;  %v6657_v13 = vld [vmem:[#allocation25 + $0x48] sm:$0xff]  }
 0x94c   :  { %v4289_v16 = vadd.f32 %v4288_v15, %v7688_v38  ;;  %v4290_v17 = vpop.f32.mrb[67].mxu0  ;;  %4574 = vmatmul.mubr.bf16.gmra.mrb[76].mxu0 %v4321_v0  ;;  %v4311_v20 = vmax.f32 %v4285_v5, 0.0  ;;  %v6649_v0 = vld [vmem:[#allocation23 + $0xe0] ss:$8 sps:$4 sm:$0xff]   ;;  %v6660_v15 = vld [vmem:[#allocation25 + $0x10] sm:$0xff]  }
 0x94d   :  { %v4291_v18 = vadd.f32 %v4290_v17, %v7691_v35  ;;  %4837 = vmatpush1.bf16.msra.mxu0 %v6613_v4  ;;  %v4312_v23 = vmax.f32 %v4287_v14, 0.0  ;;  %v6655_v4 = vld [vmem:[#allocation25 + $0x40] sm:$0xff]   ;;  %v6659_v14 = vld [vmem:[#allocation25 + $0x50] sm:$0xff]   ;;  %v7709_v17 = vld [vmem:[#allocation25 + $0x18] sm:$0xff]  }
 0x94e   :  { %v4313_v21 = vmax.f32 %v4289_v16, 0.0  ;;  %4838 = vmatprep.subr.bf16.mxu0 %v6618_v32  ;;  %v6656_v5 = vld [vmem:[#allocation25] sm:$0xff]   ;;  %5796 = vmatprep.subr.bf16.mxu1 %v6655_v4  ;;  %v6658_v32 = vld [vmem:[#allocation25 + $0x8] sm:$0xff]   ;;  %v6661_v16 = vld [vmem:[#allocation25 + $0x58] sm:$0xff]  }
 0x94f   :  { %v4314_v59 = vmax.f32 %v4291_v18, 0.0  ;;  %5804 = vmatpush3.bf16.msra.mxu1 %v6656_v5  ;;  %v7711_v18 = vld [vmem:[#allocation25 + $0x60] sm:$0xff]  }
 0x950   :  { %v4323_v7 = vpack.c.bf16 %v4313_v21, %v4311_v20  ;;  %5797 = vmatprep.subr.bf16.mxu1 %v6657_v13  ;;  %v7717_v20 = vld [vmem:[#allocation25 + $0x68] sm:$0xff]   ;;  %v4359_v21 = vld [vmem:[%s7799_s25] sm:$0x3] }
 0x951   :  { %v4324_v11 = vpack.c.bf16 %v4314_v59, %v4312_v23  ;;  %v4294_v9 = vpop.f32.mrb[68].mxu0  ;;  %4839 = vmatpush1.bf16.msra.mxu0 %v6616_v19  ;;  %v7715_v19 = vld [vmem:[#allocation25 + $0x20] sm:$0xff]   ;;  %v7726_v23 = vrot.slane %v4359_v21, %v7495_v10 }
 0x952   :  { %v4295_v27 = vadd.f32 %v4294_v9, %v7688_v38  ;;  %v4296_v29 = vpop.f32.mrb[69].mxu0  ;;  %4840 = vmatprep.subr.bf16.mxu0 %v6621_v22  ;;  %v4364_v22 = vrot.slane %v4359_v21, %v7490_v8 }
 0x953   :  { %v4297_v39 = vadd.f32 %v4296_v29, %v7691_v35  ;;  %v4298_v40 = vpop.f32.mrb[70].mxu0  ;;  %4583 = vmatprep.mubr.bf16.mxu0 %v4324_v11  ;;  %5805 = vmatpush3.bf16.msra.mxu1 %v6658_v32 }
 0x954   :  { %v4299_v44 = vadd.f32 %v4298_v40, %v7688_v38  ;;  %v4300_v45 = vpop.f32.mrb[71].mxu0  ;;  %4584 = vmatmul.mubr.bf16.gmra.mrb[80].mxu0 %v4323_v7  ;;  %v4315_v47 = vmax.f32 %v4295_v27, 0.0  ;;  %v6628_v38 = vld [vmem:[#allocation23 + $0x70] ss:$8 sps:$4 sm:$0xff]   ;;  %5798 = vmatprep.subr.bf16.mxu1 %v6659_v14 }
 0x955   :  { %v4301_v3 = vadd.f32 %v4300_v45, %v7691_v35  ;;  %4841 = vmatpush1.bf16.msra.mxu0 %v6619_v43  ;;  %v4316_v50 = vmax.f32 %v4297_v39, 0.0  ;;  %v6633_v35 = vld [vmem:[#allocation23 + $0x84] ss:$8 sps:$4 sm:$0xff]  }
 0x956   :  { %v4317_v48 = vmax.f32 %v4299_v44, 0.0  ;;  %4842 = vmatprep.subr.bf16.mxu0 %v6624_v36 }
 0x957   :  { %v4318_v51 = vmax.f32 %v4301_v3, 0.0  ;;  %5806 = vmatpush3.bf16.msra.mxu1 %v6660_v15 }
 0x958   :  { %v4325_v52 = vpack.c.bf16 %v4317_v48, %v4315_v47  ;;  %5799 = vmatprep.subr.bf16.mxu1 %v6661_v16 }
 0x959   :  { %v4326_v53 = vpack.c.bf16 %v4318_v51, %v4316_v50  ;;  %4843 = vmatpush1.bf16.msra.mxu0 %v6622_v46 }
 0x95a   :  { %4844 = vmatprep.subr.bf16.mxu0 %v6627_v49 }
 0x95b   :  { %4593 = vmatprep.mubr.bf16.mxu0 %v4326_v53  ;;  %5807 = vmatpush3.bf16.msra.mxu1 %v7709_v17 }
 0x95c   :  { %4594 = vmatmul.mubr.bf16.gmra.mrb[84].mxu0 %v4325_v52  ;;  %5800 = vmatprep.subr.bf16.mxu1 %v7711_v18 }
 0x95d   :  { %4845 = vmatpush1.bf16.msra.mxu0 %v6625_v41 }
 0x95e   :  { %4846 = vmatprep.subr.bf16.mxu0 %v6630_v42 }
 0x95f   :  { %5808 = vmatpush3.bf16.msra.mxu1 %v7715_v19 }
 0x960   :  { %5801 = vmatprep.subr.bf16.mxu1 %v7717_v20 }
 0x961   :  { %4847 = vmatpush1.bf16.msra.mxu0 %v6628_v38 }
 0x962   :  { %4848 = vmatprep.subr.bf16.mxu0 %v6633_v35 }
 0x965   :  { %4849 = vmatpush1.bf16.msra.mxu0 %v6631_v54 }
 0x966   :  { %4850 = vmatprep.subr.bf16.mxu0 %v6636_v55 }
 0x969   :  { %4851 = vmatpush1.bf16.msra.mxu0 %v6634_v56 }
 0x96a   :  { %4852 = vmatprep.subr.bf16.mxu0 %v6639_v57 }
 0x96d   :  { %4853 = vmatpush1.bf16.msra.mxu0 %v6637_v58 }
 0x96e   :  { %4854 = vmatprep.subr.bf16.mxu0 %v6642_v1 }
 0x971   :  { %4855 = vmatpush1.bf16.msra.mxu0 %v6640_v33 }
 0x972   :  { %4856 = vmatprep.subr.bf16.mxu0 %v6645_v26 }
 0x975   :  { %4857 = vmatpush1.bf16.msra.mxu0 %v6643_v61 }
 0x976   :  { %4858 = vmatprep.subr.bf16.mxu0 %v6648_v60 }
 0x979   :  { %4859 = vmatpush1.bf16.msra.mxu0 %v6646_v62 }
 0x97a   :  { %4860 = vmatprep.subr.bf16.mxu0 %v6651_v63 }
 0x97d   :  { %4861 = vmatpush1.bf16.msra.mxu0 %v6649_v0 }
 0x97e   :  { %4862 = vmatprep.subr.bf16.mxu0 %v6654_v2 }
 0x981   :  { %4863 = vmatpush1.bf16.msra.mxu0 %v6652_v6 }
 0x982   :  { %5732 = vmatprep.subr.bf16.mxu0 %v6655_v4 }
 0xa17   :  { %v4565_v59 = vpop.f32.mrb[72].mxu0 }
 0xa18   :  { %v4566_v7 = vadd.f32 %v4565_v59, %v4364_v22  ;;  %v4567_v11 = vpop.f32.mrb[73].mxu0 }
 0xa19   :  { %v4568_v9 = vadd.f32 %v4567_v11, %v7726_v23  ;;  %v4569_v43 = vpop.f32.mrb[74].mxu0 }
 0xa1a   :  { %v4570_v27 = vadd.f32 %v4569_v43, %v4364_v22  ;;  %v4571_v29 = vpop.f32.mrb[75].mxu0  ;;  %v4604_v39 = vmax.f32 %v4566_v7, 0.0 }
 0xa1b   :  { %v4572_v36 = vadd.f32 %v4571_v29, %v7726_v23  ;;  %v4605_v44 = vmax.f32 %v4568_v9, 0.0 }
 0xa1c   :  { %v4606_v40 = vmax.f32 %v4570_v27, 0.0 }
 0xa1d   :  { %v4607_v45 = vmax.f32 %v4572_v36, 0.0  ;;  %v6668_v36 = vld [vmem:[#allocation25 + $0x30] sm:$0xff]  }
 0xa1e   :  { %v4620_v3 = vpack.c.bf16 %v4606_v40, %v4604_v39 }
 0xa1f   :  { %v4621_v46 = vpack.c.bf16 %v4607_v45, %v4605_v44  ;;  %v4575_v47 = vpop.f32.mrb[76].mxu0 }
 0xa20   :  { %v4576_v48 = vadd.f32 %v4575_v47, %v4364_v22  ;;  %v4577_v49 = vpop.f32.mrb[77].mxu0 }
 0xa21   :  { %v4578_v50 = vadd.f32 %v4577_v49, %v7726_v23  ;;  %v4579_v51 = vpop.f32.mrb[78].mxu0  ;;  %4864 = vmatprep.mubr.bf16.mxu0 %v4621_v46 }
 0xa22   :  { %v4580_v52 = vadd.f32 %v4579_v51, %v4364_v22  ;;  %v4581_v53 = vpop.f32.mrb[79].mxu0  ;;  %4865 = vmatmul.mubr.bf16.vlgmr.msra.gmra.mrb[88].mxu0 %v4620_v3  ;;  %v4608_v42 = vmax.f32 %v4576_v48, 0.0 }
 0xa23   :  { %v4582_v41 = vadd.f32 %v4581_v53, %v7726_v23  ;;  %5733 = vmatpush3.bf16.msra.mxu0 %v6656_v5  ;;  %v4609_v35 = vmax.f32 %v4578_v50, 0.0 }
 0xa24   :  { %v4610_v38 = vmax.f32 %v4580_v52, 0.0  ;;  %5734 = vmatprep.subr.bf16.mxu0 %v6657_v13 }
 0xa25   :  { %v4611_v54 = vmax.f32 %v4582_v41, 0.0 }
 0xa26   :  { %v4622_v55 = vpack.c.bf16 %v4610_v38, %v4608_v42 }
 0xa27   :  { %v4623_v56 = vpack.c.bf16 %v4611_v54, %v4609_v35  ;;  %v4585_v57 = vpop.f32.mrb[80].mxu0  ;;  %5735 = vmatpush3.bf16.msra.mxu0 %v6658_v32 }
 0xa28   :  { %v4586_v58 = vadd.f32 %v4585_v57, %v4364_v22  ;;  %v4587_v1 = vpop.f32.mrb[81].mxu0  ;;  %5736 = vmatprep.subr.bf16.mxu0 %v6659_v14 }
 0xa29   :  { %v4588_v33 = vadd.f32 %v4587_v1, %v7726_v23  ;;  %v4589_v26 = vpop.f32.mrb[82].mxu0  ;;  %4874 = vmatprep.mubr.bf16.mxu0 %v4623_v56 }
 0xa2a   :  { %v4590_v61 = vadd.f32 %v4589_v26, %v4364_v22  ;;  %v4591_v60 = vpop.f32.mrb[83].mxu0  ;;  %4875 = vmatmul.mubr.bf16.gmra.mrb[92].mxu0 %v4622_v55  ;;  %v4612_v63 = vmax.f32 %v4586_v58, 0.0 }
 0xa2b   :  { %v4592_v62 = vadd.f32 %v4591_v60, %v7726_v23  ;;  %5737 = vmatpush3.bf16.msra.mxu0 %v6660_v15  ;;  %v4613_v2 = vmax.f32 %v4588_v33, 0.0 }
 0xa2c   :  { %v4614_v0 = vmax.f32 %v4590_v61, 0.0  ;;  %5738 = vmatprep.subr.bf16.mxu0 %v6661_v16 }
 0xa2d   :  { %v4615_v6 = vmax.f32 %v4592_v62, 0.0 }
 0xa2e   :  { %v4624_v4 = vpack.c.bf16 %v4614_v0, %v4612_v63 }
 0xa2f   :  { %v4625_v5 = vpack.c.bf16 %v4615_v6, %v4613_v2  ;;  %v4595_v13 = vpop.f32.mrb[84].mxu0  ;;  %5739 = vmatpush3.bf16.msra.mxu0 %v7709_v17 }
 0xa30   :  { %v4596_v32 = vadd.f32 %v4595_v13, %v4364_v22  ;;  %v4597_v14 = vpop.f32.mrb[85].mxu0  ;;  %5740 = vmatprep.subr.bf16.mxu0 %v7711_v18  ;;  %v6666_v18 = vld [vmem:[#allocation25 + $0x28] sm:$0xff]  }
 0xa31   :  { %v4598_v21 = vadd.f32 %v4597_v14, %v7726_v23  ;;  %v4599_v59 = vpop.f32.mrb[86].mxu0  ;;  %4884 = vmatprep.mubr.bf16.mxu0 %v4625_v5  ;;  %5809 = vmatpush3.bf16.msra.mxu1 %v6666_v18 }
 0xa32   :  { %v4600_v7 = vadd.f32 %v4599_v59, %v4364_v22  ;;  %v4601_v15 = vpop.f32.mrb[87].mxu0  ;;  %4885 = vmatmul.mubr.bf16.gmra.mrb[96].mxu0 %v4624_v4  ;;  %v4616_v11 = vmax.f32 %v4596_v32, 0.0  ;;  %v6667_v22 = vld [vmem:[#allocation25 + $0x70] sm:$0xff]  }
 0xa33   :  { %v4602_v16 = vadd.f32 %v4601_v15, %v7726_v23  ;;  %5741 = vmatpush3.bf16.msra.mxu0 %v7715_v19  ;;  %v4617_v17 = vmax.f32 %v4598_v21, 0.0  ;;  %5802 = vmatprep.subr.bf16.mxu1 %v6667_v22  ;;  %v6669_v19 = vld [vmem:[#allocation25 + $0x78] sm:$0xff]  }
 0xa34   :  { %v4618_v9 = vmax.f32 %v4600_v7, 0.0  ;;  %5742 = vmatprep.subr.bf16.mxu0 %v7717_v20  ;;  %v6670_v23 = vld [vmem:[#allocation25 + $0x38] sm:$0xff]   ;;  %v4660_v20 = vld [vmem:[%s7859_s8] sm:$0x3] }
 0xa35   :  { %v4619_v43 = vmax.f32 %v4602_v16, 0.0  ;;  %5810 = vmatpush3.bf16.msra.mxu1 %v6668_v36  ;;  %v4665_v39 = vrot.slane %v4660_v20, %v7490_v8  ;;  %v4669_v40 = vrot.slane %v4660_v20, %v7495_v10 }
 0xa36   :  { %v4626_v27 = vpack.c.bf16 %v4618_v9, %v4616_v11  ;;  %5803 = vmatprep.subr.bf16.mxu1 %v6669_v19 }
 0xa37   :  { %v4627_v29 = vpack.c.bf16 %v4619_v43, %v4617_v17  ;;  %5743 = vmatpush3.bf16.msra.mxu0 %v6666_v18 }
 0xa38   :  { %5744 = vmatprep.subr.bf16.mxu0 %v6667_v22 }
 0xa39   :  { %4894 = vmatprep.mubr.bf16.mxu0 %v4627_v29  ;;  %5811 = vmatpush3.bf16.msra.mxu1 %v6670_v23 }
 0xa3a   :  { %4895 = vmatmul.mubr.bf16.gmra.mrb[100].mxu0 %v4626_v27 }
 0xa3b   :  { %5745 = vmatpush3.bf16.msra.mxu0 %v6668_v36 }
 0xa3c   :  { %5746 = vmatprep.subr.bf16.mxu0 %v6669_v19 }
 0xa3f   :  { %5747 = vmatpush3.bf16.msra.mxu0 %v6670_v23 }
 0xaf5   :  { %v4866_v44 = vpop.f32.mrb[88].mxu0 }
 0xaf6   :  { %v4867_v45 = vadd.f32 %v4866_v44, %v4665_v39  ;;  %v4868_v3 = vpop.f32.mrb[89].mxu0 }
 0xaf7   :  { %v4869_v46 = vadd.f32 %v4868_v3, %v4669_v40  ;;  %v4870_v47 = vpop.f32.mrb[90].mxu0 }
 0xaf8   :  { %v4871_v48 = vadd.f32 %v4870_v47, %v4665_v39  ;;  %v4872_v49 = vpop.f32.mrb[91].mxu0  ;;  %v4905_v51 = vmax.f32 %v4867_v45, 0.0 }
 0xaf9   :  { %v4873_v50 = vadd.f32 %v4872_v49, %v4669_v40  ;;  %v4906_v53 = vmax.f32 %v4869_v46, 0.0  ;;  %v5446_v46 = vld [vmem:[%s7860_s0] ss:$0 sm:$0xff] }
 0xafa   :  { %v4907_v52 = vmax.f32 %v4871_v48, 0.0 }
 0xafb   :  { %v4908_v41 = vmax.f32 %v4873_v50, 0.0  ;;  %v2980_v50 = vadd.f32 %v5446_v46, %v7670_v24  ;;  %v2991_v24 = vadd.f32 %v7672_v25, %v5446_v46 }
 0xafc   :  { %v4921_v42 = vpack.c.bf16 %v4907_v52, %v4905_v51 }
 0xafd   :  { %v4922_v38 = vpack.c.bf16 %v4908_v41, %v4906_v53  ;;  %v4876_v35 = vpop.f32.mrb[92].mxu0  ;;  %v2983_v53 = vadd.f32 %v5446_v46, %v7674_v28 }
 0xafe   :  { %v4877_v54 = vadd.f32 %v4876_v35, %v4665_v39  ;;  %v4878_v55 = vpop.f32.mrb[93].mxu0 }
 0xaff   :  { %v4879_v8 = vadd.f32 %v4878_v55, %v4669_v40  ;;  %v4880_v56 = vpop.f32.mrb[94].mxu0  ;;  %5096 = vmatprep.mubr.bf16.mxu0 %v4922_v38 }
 0xb00   :  { %v4881_v10 = vadd.f32 %v4880_v56, %v4665_v39  ;;  %v4882_v57 = vpop.f32.mrb[95].mxu0  ;;  %5097 = vmatmul.mubr.bf16.vlgmr.msra.gmra.mrb[104].mxu0 %v4921_v42  ;;  %v4909_v1 = vmax.f32 %v4877_v54, 0.0 }
 0xb01   :  { %v4883_v58 = vadd.f32 %v4882_v57, %v4669_v40  ;;  %v4910_v26 = vmax.f32 %v4879_v8, 0.0 }
 0xb02   :  { %v4911_v33 = vmax.f32 %v4881_v10, 0.0  ;;  %v2988_v10 = vadd.f32 %v7668_v12, %v5446_v46  ;;  %v2999_v12 = vadd.f32 %v5446_v46, %v7682_v34 }
 0xb03   :  { %v4912_v61 = vmax.f32 %v4883_v58, 0.0 }
 0xb04   :  { %v4923_v60 = vpack.c.bf16 %v4911_v33, %v4909_v1 }
 0xb05   :  { %v4924_v62 = vpack.c.bf16 %v4912_v61, %v4910_v26  ;;  %v4886_v63 = vpop.f32.mrb[96].mxu0 }
 0xb06   :  { %v4887_v0 = vadd.f32 %v4886_v63, %v4665_v39  ;;  %v4888_v2 = vpop.f32.mrb[97].mxu0 }
 0xb07   :  { %v4889_v6 = vadd.f32 %v4888_v2, %v4669_v40  ;;  %v4890_v4 = vpop.f32.mrb[98].mxu0  ;;  %5104 = vmatprep.mubr.bf16.mxu0 %v4924_v62 }
 0xb08   :  { %v4891_v5 = vadd.f32 %v4890_v4, %v4665_v39  ;;  %v4892_v13 = vpop.f32.mrb[99].mxu0  ;;  %5105 = vmatmul.mubr.bf16.gmra.mrb[108].mxu0 %v4923_v60  ;;  %v4913_v14 = vmax.f32 %v4887_v0, 0.0  ;;  %v2996_v0 = vadd.f32 %v5446_v46, %v7678_v31  ;;  %v3007_v31 = vadd.f32 %v7680_v37, %v5446_v46 }
 0xb09   :  { %v4893_v32 = vadd.f32 %v4892_v13, %v4669_v40  ;;  %v4914_v59 = vmax.f32 %v4889_v6, 0.0 }
 0xb0a   :  { %v4915_v21 = vmax.f32 %v4891_v5, 0.0 }
 0xb0b   :  { %v4916_v7 = vmax.f32 %v4893_v32, 0.0 }
 0xb0c   :  { %v4925_v15 = vpack.c.bf16 %v4915_v21, %v4913_v14 }
 0xb0d   :  { %v4926_v16 = vpack.c.bf16 %v4916_v7, %v4914_v59  ;;  %v4896_v11 = vpop.f32.mrb[100].mxu0  ;;  %v3004_v7 = vadd.f32 %v7676_v30, %v5446_v46 }
 0xb0e   :  { %v4897_v9 = vadd.f32 %v4896_v11, %v4665_v39  ;;  %v4898_v17 = vpop.f32.mrb[101].mxu0 }
 0xb0f   :  { %v4899_v43 = vadd.f32 %v4898_v17, %v4669_v40  ;;  %v4900_v27 = vpop.f32.mrb[102].mxu0  ;;  %5112 = vmatprep.mubr.bf16.mxu1 %v4926_v16 }
 0xb10   :  { %v4901_v29 = vadd.f32 %v4900_v27, %v4665_v39  ;;  %v4902_v18 = vpop.f32.mrb[103].mxu0  ;;  %5113 = vmatmul.mubr.bf16.vlgmr.msra.gmra.mrb[80].mxu1 %v4925_v15  ;;  %v4917_v36 = vmax.f32 %v4897_v9, 0.0  ;;  %v5663_v39 = vld [vmem:[%s7861_s26] ss:$0 sm:$0xff] }
 0xb11   :  { %v4903_v22 = vadd.f32 %v4902_v18, %v4669_v40  ;;  %v4918_v23 = vmax.f32 %v4899_v43, 0.0 }
 0xb12   :  { %v4919_v19 = vmax.f32 %v4901_v29, 0.0 }
 0xb13   :  { %v4920_v20 = vmax.f32 %v4903_v22, 0.0 }
 0xb14   :  { %v4927_v44 = vpack.c.bf16 %v4919_v19, %v4917_v36 }
 0xb15   :  { %v4928_v45 = vpack.c.bf16 %v4920_v20, %v4918_v23 }
 0xb17   :  { %5120 = vmatprep.mubr.bf16.mxu1 %v4928_v45 }
 0xb18   :  { %5121 = vmatmul.mubr.bf16.gmra.mrb[84].mxu1 %v4927_v44 }
 0xbd3   :  { %v5748_v3 = vpop.f32.mrb[104].mxu0 }
 0xbd4   :  { %v5749_v47 = vpop.f32.mrb[105].mxu0 }
 0xbd5   :  { %v5750_v48 = vadd.f32 %v5749_v47, %v5748_v3  ;;  %v5751_v40 = vpop.f32.mrb[106].mxu0 }
 0xbd6   :  { %v5752_v49 = vpop.f32.mrb[107].mxu0 }
 0xbd7   :  { %v5099_v51 = vadd.f32 %v5750_v48, %v5663_v39  ;;  %v5753_v52 = vadd.f32 %v5752_v49, %v5751_v40 }
 0xbd9   :  { %v5129_v41 = vadd.f32 %v5099_v51, %v2980_v50  ;;  %v5102_v42 = vadd.f32 %v5753_v52, %v5663_v39 }
 0xbdb   :  { %5137 = vst [vmem:[#allocation26] sm:$0xff] %v5129_v41  ;;  %v5130_v38 = vadd.f32 %v5102_v42, %v2983_v53  ;;  %v5754_v35 = vpop.f32.mrb[108].mxu0 }
 0xbdc   :  { %v5755_v54 = vpop.f32.mrb[109].mxu0 }
 0xbdd   :  { %5138 = vst [vmem:[#allocation26 + $0x8] sm:$0xff] %v5130_v38  ;;  %v5756_v55 = vadd.f32 %v5755_v54, %v5754_v35  ;;  %v5757_v8 = vpop.f32.mrb[110].mxu0 }
 0xbde   :  { %v5758_v56 = vpop.f32.mrb[111].mxu0 }
 0xbdf   :  { %v5107_v57 = vadd.f32 %v5756_v55, %v5663_v39  ;;  %v5759_v58 = vadd.f32 %v5758_v56, %v5757_v8 }
 0xbe1   :  { %v5131_v1 = vadd.f32 %v5107_v57, %v2988_v10  ;;  %v5110_v33 = vadd.f32 %v5759_v58, %v5663_v39 }
 0xbe3   :  { %5139 = vst [vmem:[#allocation26 + $0x10] sm:$0xff] %v5131_v1  ;;  %v5132_v28 = vadd.f32 %v5110_v33, %v2991_v24  ;;  %v5760_v26 = vpop.f32.mrb[80].mxu1 }
 0xbe4   :  { %v5761_v61 = vpop.f32.mrb[81].mxu1 }
 0xbe5   :  { %5140 = vst [vmem:[#allocation26 + $0x18] sm:$0xff] %v5132_v28  ;;  %v5762_v60 = vadd.f32 %v5761_v61, %v5760_v26  ;;  %v5763_v62 = vpop.f32.mrb[82].mxu1 }
 0xbe6   :  { %v5764_v63 = vpop.f32.mrb[83].mxu1 }
 0xbe7   :  { %v5115_v2 = vadd.f32 %v5762_v60, %v5663_v39  ;;  %v5765_v6 = vadd.f32 %v5764_v63, %v5763_v62 }
 0xbe9   :  { %v5133_v4 = vadd.f32 %v5115_v2, %v2996_v0  ;;  %v5118_v5 = vadd.f32 %v5765_v6, %v5663_v39 }
 0xbeb   :  { %5141 = vst [vmem:[#allocation26 + $0x20] sm:$0xff] %v5133_v4  ;;  %v5134_v25 = vadd.f32 %v5118_v5, %v2999_v12  ;;  %v5766_v13 = vpop.f32.mrb[84].mxu1 }
 0xbec   :  { %v5767_v32 = vpop.f32.mrb[85].mxu1 }
 0xbed   :  { %5142 = vst [vmem:[#allocation26 + $0x28] sm:$0xff] %v5134_v25  ;;  %v5768_v14 = vadd.f32 %v5767_v32, %v5766_v13  ;;  %v5769_v21 = vpop.f32.mrb[86].mxu1 }
 0xbee   :  { %v5770_v59 = vpop.f32.mrb[87].mxu1 }
 0xbef   :  { %v5123_v15 = vadd.f32 %v5768_v14, %v5663_v39  ;;  %v5771_v16 = vadd.f32 %v5770_v59, %v5769_v21 }
 0xbf1   :  { %v5135_v11 = vadd.f32 %v5123_v15, %v3004_v7  ;;  %v5126_v34 = vadd.f32 %v5771_v16, %v5663_v39 }
 0xbf3   :  { %5143 = vst [vmem:[#allocation26 + $0x30] sm:$0xff] %v5135_v11  ;;  %v5136_v9 = vadd.f32 %v5126_v34, %v3007_v31 }
 0xbf5   :  { %5144 = vst [vmem:[#allocation26 + $0x38] sm:$0xff] %v5136_v9 }
 0xbf6   :  { %7032 = shalt.err (!%p7029_p12)
}
 0xbf7   :  { %s7862_s13 = sld [smem:[#allocation52_spill]] }
 0xbfd   :  { %s7033_s17 = scalar_lea.hbm %s7862_s13, 1024 }
 0xbfe   :  { %p7034_p13 = scmp.ne.s32.totalorder %s7862_s13, %s7033_s17  ;;  %p7037_p0 = scmp.lt.u32.totalorder %s7033_s17, %s7862_s13 }
 0xc00   :  { %p7039_p1 = pnand %p7037_p0, %p7034_p13 }
 0xc02   :  { %7042 = shalt.err (!%p7039_p1)
}
 0xc03   :  { %5156 = dma.vmem_to_hbm [thread:$0]  %s5151_s10, 1024, %s7862_s13, [#allocation4], %s7848_s29, %s7848_s29, %s7847_s28  }
 0xc04   :  { %7059 = dma.done.wait [#allocation4], 1024  }
 0xc05   :  { %7060 = vsyncadd [#allocation4], 4294966272 }
 0xc06   :  { %5160 = vsyncpa [#allocation3], 1 }
 0xc07   :  { %5161 = vsyncpa [#allocation6], 1 }
 0xc08   :  { %5162 = vsyncpa [#allocation9], 1 }
 0xc09   :  { %5163 = vsyncpa [#allocation12], 1 }
 0xc0a   :  { %5164 = vsyncpa [#allocation15], 1 }
 0xc0b   :  { %5165 = vsyncpa [#allocation18], 1 }
 0xc0c   :  { %5166 = vsyncpa [#allocation21], 1 }
 0xc0d   :  { %5167 = vsyncpa [#allocation24], 1 }
 0xc0e   :  { %5168 = vsyncpa [#allocation4], 1 }

</bundles_post_ra>
